<compile_context>
chip_gen: v7x
topology: tpu7x:2x2x1
jax: 0.10.0
libtpu: 0.0.40
codegen_flags: <defaults>
</compile_context>

<pallas_src>
import functools

import jax
import jax.numpy as jnp
from jax import lax
from jax.experimental import pallas as pl
from jax.experimental.pallas import tpu as pltpu

N_ITERS = 3000   # fixed PDHG iteration count
UNROLL = 4       # manual unroll of the PDHG loop
B_TILE = 128     # QPs per grid step (batch lives on the 128-wide lane axis)


def _round_up(x, m):
    return ((x + m - 1) // m) * m


def _qp_pdhg_kernel(tKTt_ref, tq_ref, sAt_ref, sGt_ref, sb_ref, sh_ref,
                    x_out_ref, *, n_iters, unroll):
    """Solves B_TILE independent QPs, one per lane.

    Block layouts seen by the kernel (bt == B_TILE lanes, operands already
    prescaled by the per-QP step sizes tau / sigma in the wrapper):
      tKTt_ref: (nc,  npd, bt)  tKTt[j,i,b] = tau_b * [Qs | A^T | G^T]_b[i,j]
      tq_ref:   (npd, bt)       tau_b * q_b
      sAt_ref:  (npd, mep, bt)  sAt[i,k,b]  = sigma_b * A_b[k,i]
      sGt_ref:  (npd, mip, bt)  sGt[i,k,b]  = sigma_b * G_b[k,i]
      sb_ref:   (mep, bt)       sigma_b * b_b
      sh_ref:   (mip, bt)       sigma_b * h_b
      x_out:    (npd, bt)       primal solution (lane-dense output)

    Every matvec contracts over the leading (vreg-major) axis, so it is an
    unrolled sum of sublane-broadcast * full-vreg multiplies on the VPU; every
    vector op is dense over the 128 lanes (128 QPs at once).
    """
    f32 = jnp.float32
    npd, bt = tq_ref.shape
    mep = sb_ref.shape[0]
    mip = sh_ref.shape[0]

    # loop-invariant vectors held in vregs
    tq = tq_ref[...]
    sb = sb_ref[...]
    sh = sh_ref[...]

    x0 = jnp.zeros((npd, bt), f32)   # primal
    y0 = jnp.zeros((mep, bt), f32)   # equality duals
    z0 = jnp.zeros((mip, bt), f32)   # inequality duals (>= 0)

    def one_step(carry):
        x, y, z = carry
        # g = tau * (Qs x + q + A^T y + G^T z)   (tau pre-folded into operands)
        g = tq
        for j in range(npd):
            g = g + tKTt_ref[j] * jnp.broadcast_to(x[j:j + 1, :], (npd, bt))
        for j in range(mep):
            g = g + tKTt_ref[npd + j] * jnp.broadcast_to(y[j:j + 1, :], (npd, bt))
        for j in range(mip):
            g = g + tKTt_ref[npd + mep + j] * jnp.broadcast_to(z[j:j + 1, :],
                                                               (npd, bt))
        x_new = x - g
        x_bar = x_new + (x_new - x)                  # 2*x_new - x, no const splat

        # dual residuals: sigma*(A x_bar + b), sigma*(G x_bar + h)
        ax = sb
        gx = sh
        for i in range(npd):
            xe = jnp.broadcast_to(x_bar[i:i + 1, :], (mep, bt))
            ax = ax + sAt_ref[i] * xe
            xg = xe if mip == mep else jnp.broadcast_to(x_bar[i:i + 1, :],
                                                        (mip, bt))
            gx = gx + sGt_ref[i] * xg
        y_new = y + ax                               # equality duals: free sign
        z_new = jnp.maximum(z + gx, 0.0)             # inequality duals: >= 0
        return x_new, y_new, z_new

    def body(_, carry):
        for _u in range(unroll):
            carry = one_step(carry)
        return carry

    carry = lax.fori_loop(0, n_iters // unroll, body, (x0, y0, z0))
    for _ in range(n_iters % unroll):
        carry = one_step(carry)
    x, _, _ = carry
    x_out_ref[...] = x


@functools.partial(jax.jit, static_argnums=(1, 2, 3))
def qp_casadilayer_forward(param, n_dim, n_equ, n_inequ):
    """JAX/Pallas equivalent of QP_CasadiLayer.forward.

    param: (batch, n_param) with n_param = n^2 + n + me*n + me + mi*n + mi.
    Returns the QP primal solution, shape (batch, n_dim) (then squeezed,
    matching the torch module's .squeeze()).
    """
    B = param.shape[0]
    n, me, mi = n_dim, n_equ, n_inequ
    f32 = jnp.float32
    param = param.astype(f32)

    # ---- glue: unpack the flattened parameter vector ----
    off = 0
    Q = param[:, off:off + n * n].reshape(B, n, n); off += n * n
    q = param[:, off:off + n].reshape(B, n); off += n
    A = param[:, off:off + me * n].reshape(B, me, n); off += me * n
    b = param[:, off:off + me].reshape(B, me); off += me
    G = param[:, off:off + mi * n].reshape(B, mi, n); off += mi * n
    h = param[:, off:off + mi].reshape(B, mi); off += mi

    # gradient of 1/2 x'Qx uses the symmetric part of Q
    Qs = 0.5 * (Q + jnp.swapaxes(Q, -1, -2))

    # ---- per-QP step sizes from Frobenius-norm bounds (Condat-Vu safe) ----
    qfro = jnp.sqrt(jnp.sum(Qs * Qs, axis=(-2, -1))) + 1e-6        # >= ||Qs||_2
    kfro2 = (jnp.sum(A * A, axis=(-2, -1))
             + jnp.sum(G * G, axis=(-2, -1)) + 1e-6)               # >= ||[A;G]||_2^2
    kfro = jnp.sqrt(kfro2)
    sigma = 1.0 / kfro
    tau = 0.9 / (0.5 * qfro + kfro)   # tau*(L/2 + sigma*||K||^2) <= 0.9 < 1

    # pad problem dims to multiples of 8 (zero padding is benign for the QP)
    npd = max(8, _round_up(n, 8))
    mep = max(8, _round_up(max(me, 1), 8))
    mip = max(8, _round_up(max(mi, 1), 8))
    nc = npd + mep + mip

    # pad batch to the lane-tile size
    Bp = _round_up(max(B, 1), B_TILE)

    def pad_to(x, shape):
        return jnp.pad(x, [(0, s - d) for s, d in zip(shape, x.shape)])

    tau_b = tau[:, None, None]
    sig_b = sigma[:, None, None]

    # tau-prescaled KT = [Qs | A^T | G^T], contraction-major, batch on lanes:
    # tKTt[j, i, b] = tau_b * KT_b[i, j]
    Qs_p = pad_to(Qs, (B, npd, npd))
    AT_p = pad_to(jnp.swapaxes(A, -1, -2), (B, npd, mep))
    GT_p = pad_to(jnp.swapaxes(G, -1, -2), (B, npd, mip))
    tKT = tau_b * jnp.concatenate([Qs_p, AT_p, GT_p], axis=-1)       # (B,npd,nc)
    tKTt = pad_to(jnp.transpose(tKT, (2, 1, 0)), (nc, npd, Bp))      # (nc,npd,Bp)

    # sigma-prescaled A and G, contraction-major: sAt[i, k, b] = sigma_b*A_b[k, i]
    sA = sig_b * pad_to(A, (B, mep, npd))
    sG = sig_b * pad_to(G, (B, mip, npd))
    sAt = pad_to(jnp.transpose(sA, (2, 1, 0)), (npd, mep, Bp))       # (npd,mep,Bp)
    sGt = pad_to(jnp.transpose(sG, (2, 1, 0)), (npd, mip, Bp))       # (npd,mip,Bp)

    tq_l = pad_to((tau[:, None] * pad_to(q, (B, npd))).T, (npd, Bp))   # (npd, Bp)
    sb_l = pad_to((sigma[:, None] * pad_to(b, (B, mep))).T, (mep, Bp)) # (mep, Bp)
    sh_l = pad_to((sigma[:, None] * pad_to(h, (B, mip))).T, (mip, Bp)) # (mip, Bp)

    kernel = functools.partial(_qp_pdhg_kernel, n_iters=N_ITERS, unroll=UNROLL)

    x_l = pl.pallas_call(
        kernel,
        out_shape=jax.ShapeDtypeStruct((npd, Bp), f32),
        grid=(Bp // B_TILE,),
        in_specs=[
            pl.BlockSpec((nc, npd, B_TILE), lambda i: (0, 0, i)),    # tau*KT^T
            pl.BlockSpec((npd, B_TILE), lambda i: (0, i)),           # tau*q
            pl.BlockSpec((npd, mep, B_TILE), lambda i: (0, 0, i)),   # sigma*A^T
            pl.BlockSpec((npd, mip, B_TILE), lambda i: (0, 0, i)),   # sigma*G^T
            pl.BlockSpec((mep, B_TILE), lambda i: (0, i)),           # sigma*b
            pl.BlockSpec((mip, B_TILE), lambda i: (0, i)),           # sigma*h
        ],
        out_specs=pl.BlockSpec((npd, B_TILE), lambda i: (0, i)),     # lane-dense
        compiler_params=pltpu.CompilerParams(
            dimension_semantics=("parallel",)),                      # megacore
    )(tKTt, tq_l, sAt, sGt, sb_l, sh_l)

    sol = x_l[:n, :B].T            # (B, n_dim)
    return jnp.squeeze(sol)        # mirrors torch's .squeeze()


if __name__ == "__main__":
    key = jax.random.PRNGKey(0)
    batch_size, n_dim, n_equ, n_inequ = 2, 6, 3, 2
    k1, k2, k3, k4, k5 = jax.random.split(key, 5)

    # deterministic, well-posed QP data (strongly convex, strictly feasible)
    Q_sqrt = jax.random.normal(k1, (batch_size, n_dim, n_dim), jnp.float32)
    Q = jnp.matmul(jnp.swapaxes(Q_sqrt, -1, -2), Q_sqrt) + 0.5 * jnp.eye(n_dim)
    q = jax.random.normal(k2, (batch_size, n_dim), jnp.float32)
    A = jax.random.normal(k3, (batch_size, n_equ, n_dim), jnp.float32)
    b = jax.random.normal(k4, (batch_size, n_equ), jnp.float32)
    G = jax.random.normal(k5, (batch_size, n_inequ, n_dim), jnp.float32)
    # pick h so a strictly feasible point exists: G x_feas + h = -1 < 0
    x_feas = jnp.einsum('bij,bj->bi', jnp.linalg.pinv(A), -b)
    h = -jnp.einsum('bij,bj->bi', G, x_feas) - 1.0

    # param layout identical to the torch example:
    # concat(Q.flatten, q, A.flatten, b, G.flatten, h) along last dim
    param = jnp.concatenate([
        Q.reshape(batch_size, -1),
        q,
        A.reshape(batch_size, -1),
        b,
        G.reshape(batch_size, -1),
        h,
    ], axis=1)

    sol = qp_casadilayer_forward(param, n_dim, n_equ, n_inequ)
    jax.block_until_ready(sol)
    assert sol.shape == (batch_size, n_dim)
    assert bool(jnp.all(jnp.isfinite(sol)))
    print("KERNEL_OK")
</pallas_src>

<mosaic_0001>
module attributes {stable_mosaic.version = 11 : i64} {
  func.func @_qp_pdhg_kernel(%arg0: i32, %arg1: memref<24x8x128xf32, #tpu.memory_space<vmem>>, %arg2: memref<8x128xf32, #tpu.memory_space<vmem>>, %arg3: memref<8x8x128xf32, #tpu.memory_space<vmem>>, %arg4: memref<8x8x128xf32, #tpu.memory_space<vmem>>, %arg5: memref<8x128xf32, #tpu.memory_space<vmem>>, %arg6: memref<8x128xf32, #tpu.memory_space<vmem>>, %arg7: memref<8x128xf32, #tpu.memory_space<vmem>>) attributes {dimension_semantics = [#tpu.dimension_semantics<parallel>], iteration_bounds = array<i64: 1>, scalar_prefetch = 0 : i64, scratch_operands = 0 : i64, tpu.core_type = #tpu.core_type<tc>, window_params = [{transform_indices = @transform_0, window_bounds = array<i64: 24, 8, 128>}, {transform_indices = @transform_1, window_bounds = array<i64: 8, 128>}, {transform_indices = @transform_2, window_bounds = array<i64: 8, 8, 128>}, {transform_indices = @transform_3, window_bounds = array<i64: 8, 8, 128>}, {transform_indices = @transform_4, window_bounds = array<i64: 8, 128>}, {transform_indices = @transform_5, window_bounds = array<i64: 8, 128>}, {transform_indices = @transform_6, window_bounds = array<i64: 8, 128>}]} {
    %c0 = arith.constant 0 : index
    %c0_0 = arith.constant 0 : index
    %0 = vector.load %arg2[%c0, %c0_0] : memref<8x128xf32, #tpu.memory_space<vmem>>, vector<8x128xf32>
    %c0_1 = arith.constant 0 : index
    %c0_2 = arith.constant 0 : index
    %1 = vector.load %arg5[%c0_1, %c0_2] : memref<8x128xf32, #tpu.memory_space<vmem>>, vector<8x128xf32>
    %c0_3 = arith.constant 0 : index
    %c0_4 = arith.constant 0 : index
    %2 = vector.load %arg6[%c0_3, %c0_4] : memref<8x128xf32, #tpu.memory_space<vmem>>, vector<8x128xf32>
    %cst = arith.constant 0.000000e+00 : f32
    %3 = vector.broadcast %cst : f32 to vector<8x128xf32>
    %cst_5 = arith.constant 0.000000e+00 : f32
    %4 = vector.broadcast %cst_5 : f32 to vector<8x128xf32>
    %cst_6 = arith.constant 0.000000e+00 : f32
    %5 = vector.broadcast %cst_6 : f32 to vector<8x128xf32>
    %c0_i32 = arith.constant 0 : i32
    %c750_i32 = arith.constant 750 : i32
    %6 = arith.addi %c0_i32, %c750_i32 : i32
    %c1_i32 = arith.constant 1 : i32
    %7:3 = scf.for %arg8 = %c0_i32 to %6 step %c1_i32 iter_args(%arg9 = %3, %arg10 = %4, %arg11 = %5) -> (vector<8x128xf32>, vector<8x128xf32>, vector<8x128xf32>)  : i32 {
      %c0_9 = arith.constant 0 : index
      %c0_10 = arith.constant 0 : index
      %c0_11 = arith.constant 0 : index
      %9 = vector.load %arg1[%c0_9, %c0_10, %c0_11] : memref<24x8x128xf32, #tpu.memory_space<vmem>>, vector<1x8x128xf32>
      %10 = vector.shape_cast %9 : vector<1x8x128xf32> to vector<8x128xf32>
      %11 = vector.extract_strided_slice %arg9 {offsets = [0, 0], sizes = [1, 128], strides = [1, 1]} : vector<8x128xf32> to vector<1x128xf32>
      %12 = vector.shape_cast %11 : vector<1x128xf32> to vector<1x128xf32>
      %13 = vector.broadcast %12 : vector<1x128xf32> to vector<8x128xf32>
      %14 = arith.mulf %10, %13 : vector<8x128xf32>
      %15 = arith.addf %0, %14 : vector<8x128xf32>
      %c1 = arith.constant 1 : index
      %c0_12 = arith.constant 0 : index
      %c0_13 = arith.constant 0 : index
      %16 = vector.load %arg1[%c1, %c0_12, %c0_13] : memref<24x8x128xf32, #tpu.memory_space<vmem>>, vector<1x8x128xf32>
      %17 = vector.shape_cast %16 : vector<1x8x128xf32> to vector<8x128xf32>
      %18 = vector.extract_strided_slice %arg9 {offsets = [1, 0], sizes = [1, 128], strides = [1, 1]} : vector<8x128xf32> to vector<1x128xf32>
      %19 = vector.shape_cast %18 : vector<1x128xf32> to vector<1x128xf32>
      %20 = vector.broadcast %19 : vector<1x128xf32> to vector<8x128xf32>
      %21 = arith.mulf %17, %20 : vector<8x128xf32>
      %22 = arith.addf %15, %21 : vector<8x128xf32>
      %c2 = arith.constant 2 : index
      %c0_14 = arith.constant 0 : index
      %c0_15 = arith.constant 0 : index
      %23 = vector.load %arg1[%c2, %c0_14, %c0_15] : memref<24x8x128xf32, #tpu.memory_space<vmem>>, vector<1x8x128xf32>
      %24 = vector.shape_cast %23 : vector<1x8x128xf32> to vector<8x128xf32>
      %25 = vector.extract_strided_slice %arg9 {offsets = [2, 0], sizes = [1, 128], strides = [1, 1]} : vector<8x128xf32> to vector<1x128xf32>
      %26 = vector.shape_cast %25 : vector<1x128xf32> to vector<1x128xf32>
      %27 = vector.broadcast %26 : vector<1x128xf32> to vector<8x128xf32>
      %28 = arith.mulf %24, %27 : vector<8x128xf32>
      %29 = arith.addf %22, %28 : vector<8x128xf32>
      %c3 = arith.constant 3 : index
      %c0_16 = arith.constant 0 : index
      %c0_17 = arith.constant 0 : index
      %30 = vector.load %arg1[%c3, %c0_16, %c0_17] : memref<24x8x128xf32, #tpu.memory_space<vmem>>, vector<1x8x128xf32>
      %31 = vector.shape_cast %30 : vector<1x8x128xf32> to vector<8x128xf32>
      %32 = vector.extract_strided_slice %arg9 {offsets = [3, 0], sizes = [1, 128], strides = [1, 1]} : vector<8x128xf32> to vector<1x128xf32>
      %33 = vector.shape_cast %32 : vector<1x128xf32> to vector<1x128xf32>
      %34 = vector.broadcast %33 : vector<1x128xf32> to vector<8x128xf32>
      %35 = arith.mulf %31, %34 : vector<8x128xf32>
      %36 = arith.addf %29, %35 : vector<8x128xf32>
      %c4 = arith.constant 4 : index
      %c0_18 = arith.constant 0 : index
      %c0_19 = arith.constant 0 : index
      %37 = vector.load %arg1[%c4, %c0_18, %c0_19] : memref<24x8x128xf32, #tpu.memory_space<vmem>>, vector<1x8x128xf32>
      %38 = vector.shape_cast %37 : vector<1x8x128xf32> to vector<8x128xf32>
      %39 = vector.extract_strided_slice %arg9 {offsets = [4, 0], sizes = [1, 128], strides = [1, 1]} : vector<8x128xf32> to vector<1x128xf32>
      %40 = vector.shape_cast %39 : vector<1x128xf32> to vector<1x128xf32>
      %41 = vector.broadcast %40 : vector<1x128xf32> to vector<8x128xf32>
      %42 = arith.mulf %38, %41 : vector<8x128xf32>
      %43 = arith.addf %36, %42 : vector<8x128xf32>
      %c5 = arith.constant 5 : index
      %c0_20 = arith.constant 0 : index
      %c0_21 = arith.constant 0 : index
      %44 = vector.load %arg1[%c5, %c0_20, %c0_21] : memref<24x8x128xf32, #tpu.memory_space<vmem>>, vector<1x8x128xf32>
      %45 = vector.shape_cast %44 : vector<1x8x128xf32> to vector<8x128xf32>
      %46 = vector.extract_strided_slice %arg9 {offsets = [5, 0], sizes = [1, 128], strides = [1, 1]} : vector<8x128xf32> to vector<1x128xf32>
      %47 = vector.shape_cast %46 : vector<1x128xf32> to vector<1x128xf32>
      %48 = vector.broadcast %47 : vector<1x128xf32> to vector<8x128xf32>
      %49 = arith.mulf %45, %48 : vector<8x128xf32>
      %50 = arith.addf %43, %49 : vector<8x128xf32>
      %c6 = arith.constant 6 : index
      %c0_22 = arith.constant 0 : index
      %c0_23 = arith.constant 0 : index
      %51 = vector.load %arg1[%c6, %c0_22, %c0_23] : memref<24x8x128xf32, #tpu.memory_space<vmem>>, vector<1x8x128xf32>
      %52 = vector.shape_cast %51 : vector<1x8x128xf32> to vector<8x128xf32>
      %53 = vector.extract_strided_slice %arg9 {offsets = [6, 0], sizes = [1, 128], strides = [1, 1]} : vector<8x128xf32> to vector<1x128xf32>
      %54 = vector.shape_cast %53 : vector<1x128xf32> to vector<1x128xf32>
      %55 = vector.broadcast %54 : vector<1x128xf32> to vector<8x128xf32>
      %56 = arith.mulf %52, %55 : vector<8x128xf32>
      %57 = arith.addf %50, %56 : vector<8x128xf32>
      %c7 = arith.constant 7 : index
      %c0_24 = arith.constant 0 : index
      %c0_25 = arith.constant 0 : index
      %58 = vector.load %arg1[%c7, %c0_24, %c0_25] : memref<24x8x128xf32, #tpu.memory_space<vmem>>, vector<1x8x128xf32>
      %59 = vector.shape_cast %58 : vector<1x8x128xf32> to vector<8x128xf32>
      %60 = vector.extract_strided_slice %arg9 {offsets = [7, 0], sizes = [1, 128], strides = [1, 1]} : vector<8x128xf32> to vector<1x128xf32>
      %61 = vector.shape_cast %60 : vector<1x128xf32> to vector<1x128xf32>
      %62 = vector.broadcast %61 : vector<1x128xf32> to vector<8x128xf32>
      %63 = arith.mulf %59, %62 : vector<8x128xf32>
      %64 = arith.addf %57, %63 : vector<8x128xf32>
      %c8 = arith.constant 8 : index
      %c0_26 = arith.constant 0 : index
      %c0_27 = arith.constant 0 : index
      %65 = vector.load %arg1[%c8, %c0_26, %c0_27] : memref<24x8x128xf32, #tpu.memory_space<vmem>>, vector<1x8x128xf32>
      %66 = vector.shape_cast %65 : vector<1x8x128xf32> to vector<8x128xf32>
      %67 = vector.extract_strided_slice %arg10 {offsets = [0, 0], sizes = [1, 128], strides = [1, 1]} : vector<8x128xf32> to vector<1x128xf32>
      %68 = vector.shape_cast %67 : vector<1x128xf32> to vector<1x128xf32>
      %69 = vector.broadcast %68 : vector<1x128xf32> to vector<8x128xf32>
      %70 = arith.mulf %66, %69 : vector<8x128xf32>
      %71 = arith.addf %64, %70 : vector<8x128xf32>
      %c9 = arith.constant 9 : index
      %c0_28 = arith.constant 0 : index
      %c0_29 = arith.constant 0 : index
      %72 = vector.load %arg1[%c9, %c0_28, %c0_29] : memref<24x8x128xf32, #tpu.memory_space<vmem>>, vector<1x8x128xf32>
      %73 = vector.shape_cast %72 : vector<1x8x128xf32> to vector<8x128xf32>
      %74 = vector.extract_strided_slice %arg10 {offsets = [1, 0], sizes = [1, 128], strides = [1, 1]} : vector<8x128xf32> to vector<1x128xf32>
      %75 = vector.shape_cast %74 : vector<1x128xf32> to vector<1x128xf32>
      %76 = vector.broadcast %75 : vector<1x128xf32> to vector<8x128xf32>
      %77 = arith.mulf %73, %76 : vector<8x128xf32>
      %78 = arith.addf %71, %77 : vector<8x128xf32>
      %c10 = arith.constant 10 : index
      %c0_30 = arith.constant 0 : index
      %c0_31 = arith.constant 0 : index
      %79 = vector.load %arg1[%c10, %c0_30, %c0_31] : memref<24x8x128xf32, #tpu.memory_space<vmem>>, vector<1x8x128xf32>
      %80 = vector.shape_cast %79 : vector<1x8x128xf32> to vector<8x128xf32>
      %81 = vector.extract_strided_slice %arg10 {offsets = [2, 0], sizes = [1, 128], strides = [1, 1]} : vector<8x128xf32> to vector<1x128xf32>
      %82 = vector.shape_cast %81 : vector<1x128xf32> to vector<1x128xf32>
      %83 = vector.broadcast %82 : vector<1x128xf32> to vector<8x128xf32>
      %84 = arith.mulf %80, %83 : vector<8x128xf32>
      %85 = arith.addf %78, %84 : vector<8x128xf32>
      %c11 = arith.constant 11 : index
      %c0_32 = arith.constant 0 : index
      %c0_33 = arith.constant 0 : index
      %86 = vector.load %arg1[%c11, %c0_32, %c0_33] : memref<24x8x128xf32, #tpu.memory_space<vmem>>, vector<1x8x128xf32>
      %87 = vector.shape_cast %86 : vector<1x8x128xf32> to vector<8x128xf32>
      %88 = vector.extract_strided_slice %arg10 {offsets = [3, 0], sizes = [1, 128], strides = [1, 1]} : vector<8x128xf32> to vector<1x128xf32>
      %89 = vector.shape_cast %88 : vector<1x128xf32> to vector<1x128xf32>
      %90 = vector.broadcast %89 : vector<1x128xf32> to vector<8x128xf32>
      %91 = arith.mulf %87, %90 : vector<8x128xf32>
      %92 = arith.addf %85, %91 : vector<8x128xf32>
      %c12 = arith.constant 12 : index
      %c0_34 = arith.constant 0 : index
      %c0_35 = arith.constant 0 : index
      %93 = vector.load %arg1[%c12, %c0_34, %c0_35] : memref<24x8x128xf32, #tpu.memory_space<vmem>>, vector<1x8x128xf32>
      %94 = vector.shape_cast %93 : vector<1x8x128xf32> to vector<8x128xf32>
      %95 = vector.extract_strided_slice %arg10 {offsets = [4, 0], sizes = [1, 128], strides = [1, 1]} : vector<8x128xf32> to vector<1x128xf32>
      %96 = vector.shape_cast %95 : vector<1x128xf32> to vector<1x128xf32>
      %97 = vector.broadcast %96 : vector<1x128xf32> to vector<8x128xf32>
      %98 = arith.mulf %94, %97 : vector<8x128xf32>
      %99 = arith.addf %92, %98 : vector<8x128xf32>
      %c13 = arith.constant 13 : index
      %c0_36 = arith.constant 0 : index
      %c0_37 = arith.constant 0 : index
      %100 = vector.load %arg1[%c13, %c0_36, %c0_37] : memref<24x8x128xf32, #tpu.memory_space<vmem>>, vector<1x8x128xf32>
      %101 = vector.shape_cast %100 : vector<1x8x128xf32> to vector<8x128xf32>
      %102 = vector.extract_strided_slice %arg10 {offsets = [5, 0], sizes = [1, 128], strides = [1, 1]} : vector<8x128xf32> to vector<1x128xf32>
      %103 = vector.shape_cast %102 : vector<1x128xf32> to vector<1x128xf32>
      %104 = vector.broadcast %103 : vector<1x128xf32> to vector<8x128xf32>
      %105 = arith.mulf %101, %104 : vector<8x128xf32>
      %106 = arith.addf %99, %105 : vector<8x128xf32>
      %c14 = arith.constant 14 : index
      %c0_38 = arith.constant 0 : index
      %c0_39 = arith.constant 0 : index
      %107 = vector.load %arg1[%c14, %c0_38, %c0_39] : memref<24x8x128xf32, #tpu.memory_space<vmem>>, vector<1x8x128xf32>
      %108 = vector.shape_cast %107 : vector<1x8x128xf32> to vector<8x128xf32>
      %109 = vector.extract_strided_slice %arg10 {offsets = [6, 0], sizes = [1, 128], strides = [1, 1]} : vector<8x128xf32> to vector<1x128xf32>
      %110 = vector.shape_cast %109 : vector<1x128xf32> to vector<1x128xf32>
      %111 = vector.broadcast %110 : vector<1x128xf32> to vector<8x128xf32>
      %112 = arith.mulf %108, %111 : vector<8x128xf32>
      %113 = arith.addf %106, %112 : vector<8x128xf32>
      %c15 = arith.constant 15 : index
      %c0_40 = arith.constant 0 : index
      %c0_41 = arith.constant 0 : index
      %114 = vector.load %arg1[%c15, %c0_40, %c0_41] : memref<24x8x128xf32, #tpu.memory_space<vmem>>, vector<1x8x128xf32>
      %115 = vector.shape_cast %114 : vector<1x8x128xf32> to vector<8x128xf32>
      %116 = vector.extract_strided_slice %arg10 {offsets = [7, 0], sizes = [1, 128], strides = [1, 1]} : vector<8x128xf32> to vector<1x128xf32>
      %117 = vector.shape_cast %116 : vector<1x128xf32> to vector<1x128xf32>
      %118 = vector.broadcast %117 : vector<1x128xf32> to vector<8x128xf32>
      %119 = arith.mulf %115, %118 : vector<8x128xf32>
      %120 = arith.addf %113, %119 : vector<8x128xf32>
      %c16 = arith.constant 16 : index
      %c0_42 = arith.constant 0 : index
      %c0_43 = arith.constant 0 : index
      %121 = vector.load %arg1[%c16, %c0_42, %c0_43] : memref<24x8x128xf32, #tpu.memory_space<vmem>>, vector<1x8x128xf32>
      %122 = vector.shape_cast %121 : vector<1x8x128xf32> to vector<8x128xf32>
      %123 = vector.extract_strided_slice %arg11 {offsets = [0, 0], sizes = [1, 128], strides = [1, 1]} : vector<8x128xf32> to vector<1x128xf32>
      %124 = vector.shape_cast %123 : vector<1x128xf32> to vector<1x128xf32>
      %125 = vector.broadcast %124 : vector<1x128xf32> to vector<8x128xf32>
      %126 = arith.mulf %122, %125 : vector<8x128xf32>
      %127 = arith.addf %120, %126 : vector<8x128xf32>
      %c17 = arith.constant 17 : index
      %c0_44 = arith.constant 0 : index
      %c0_45 = arith.constant 0 : index
      %128 = vector.load %arg1[%c17, %c0_44, %c0_45] : memref<24x8x128xf32, #tpu.memory_space<vmem>>, vector<1x8x128xf32>
      %129 = vector.shape_cast %128 : vector<1x8x128xf32> to vector<8x128xf32>
      %130 = vector.extract_strided_slice %arg11 {offsets = [1, 0], sizes = [1, 128], strides = [1, 1]} : vector<8x128xf32> to vector<1x128xf32>
      %131 = vector.shape_cast %130 : vector<1x128xf32> to vector<1x128xf32>
      %132 = vector.broadcast %131 : vector<1x128xf32> to vector<8x128xf32>
      %133 = arith.mulf %129, %132 : vector<8x128xf32>
      %134 = arith.addf %127, %133 : vector<8x128xf32>
      %c18 = arith.constant 18 : index
      %c0_46 = arith.constant 0 : index
      %c0_47 = arith.constant 0 : index
      %135 = vector.load %arg1[%c18, %c0_46, %c0_47] : memref<24x8x128xf32, #tpu.memory_space<vmem>>, vector<1x8x128xf32>
      %136 = vector.shape_cast %135 : vector<1x8x128xf32> to vector<8x128xf32>
      %137 = vector.extract_strided_slice %arg11 {offsets = [2, 0], sizes = [1, 128], strides = [1, 1]} : vector<8x128xf32> to vector<1x128xf32>
      %138 = vector.shape_cast %137 : vector<1x128xf32> to vector<1x128xf32>
      %139 = vector.broadcast %138 : vector<1x128xf32> to vector<8x128xf32>
      %140 = arith.mulf %136, %139 : vector<8x128xf32>
      %141 = arith.addf %134, %140 : vector<8x128xf32>
      %c19 = arith.constant 19 : index
      %c0_48 = arith.constant 0 : index
      %c0_49 = arith.constant 0 : index
      %142 = vector.load %arg1[%c19, %c0_48, %c0_49] : memref<24x8x128xf32, #tpu.memory_space<vmem>>, vector<1x8x128xf32>
      %143 = vector.shape_cast %142 : vector<1x8x128xf32> to vector<8x128xf32>
      %144 = vector.extract_strided_slice %arg11 {offsets = [3, 0], sizes = [1, 128], strides = [1, 1]} : vector<8x128xf32> to vector<1x128xf32>
      %145 = vector.shape_cast %144 : vector<1x128xf32> to vector<1x128xf32>
      %146 = vector.broadcast %145 : vector<1x128xf32> to vector<8x128xf32>
      %147 = arith.mulf %143, %146 : vector<8x128xf32>
      %148 = arith.addf %141, %147 : vector<8x128xf32>
      %c20 = arith.constant 20 : index
      %c0_50 = arith.constant 0 : index
      %c0_51 = arith.constant 0 : index
      %149 = vector.load %arg1[%c20, %c0_50, %c0_51] : memref<24x8x128xf32, #tpu.memory_space<vmem>>, vector<1x8x128xf32>
      %150 = vector.shape_cast %149 : vector<1x8x128xf32> to vector<8x128xf32>
      %151 = vector.extract_strided_slice %arg11 {offsets = [4, 0], sizes = [1, 128], strides = [1, 1]} : vector<8x128xf32> to vector<1x128xf32>
      %152 = vector.shape_cast %151 : vector<1x128xf32> to vector<1x128xf32>
      %153 = vector.broadcast %152 : vector<1x128xf32> to vector<8x128xf32>
      %154 = arith.mulf %150, %153 : vector<8x128xf32>
      %155 = arith.addf %148, %154 : vector<8x128xf32>
      %c21 = arith.constant 21 : index
      %c0_52 = arith.constant 0 : index
      %c0_53 = arith.constant 0 : index
      %156 = vector.load %arg1[%c21, %c0_52, %c0_53] : memref<24x8x128xf32, #tpu.memory_space<vmem>>, vector<1x8x128xf32>
      %157 = vector.shape_cast %156 : vector<1x8x128xf32> to vector<8x128xf32>
      %158 = vector.extract_strided_slice %arg11 {offsets = [5, 0], sizes = [1, 128], strides = [1, 1]} : vector<8x128xf32> to vector<1x128xf32>
      %159 = vector.shape_cast %158 : vector<1x128xf32> to vector<1x128xf32>
      %160 = vector.broadcast %159 : vector<1x128xf32> to vector<8x128xf32>
      %161 = arith.mulf %157, %160 : vector<8x128xf32>
      %162 = arith.addf %155, %161 : vector<8x128xf32>
      %c22 = arith.constant 22 : index
      %c0_54 = arith.constant 0 : index
      %c0_55 = arith.constant 0 : index
      %163 = vector.load %arg1[%c22, %c0_54, %c0_55] : memref<24x8x128xf32, #tpu.memory_space<vmem>>, vector<1x8x128xf32>
      %164 = vector.shape_cast %163 : vector<1x8x128xf32> to vector<8x128xf32>
      %165 = vector.extract_strided_slice %arg11 {offsets = [6, 0], sizes = [1, 128], strides = [1, 1]} : vector<8x128xf32> to vector<1x128xf32>
      %166 = vector.shape_cast %165 : vector<1x128xf32> to vector<1x128xf32>
      %167 = vector.broadcast %166 : vector<1x128xf32> to vector<8x128xf32>
      %168 = arith.mulf %164, %167 : vector<8x128xf32>
      %169 = arith.addf %162, %168 : vector<8x128xf32>
      %c23 = arith.constant 23 : index
      %c0_56 = arith.constant 0 : index
      %c0_57 = arith.constant 0 : index
      %170 = vector.load %arg1[%c23, %c0_56, %c0_57] : memref<24x8x128xf32, #tpu.memory_space<vmem>>, vector<1x8x128xf32>
      %171 = vector.shape_cast %170 : vector<1x8x128xf32> to vector<8x128xf32>
      %172 = vector.extract_strided_slice %arg11 {offsets = [7, 0], sizes = [1, 128], strides = [1, 1]} : vector<8x128xf32> to vector<1x128xf32>
      %173 = vector.shape_cast %172 : vector<1x128xf32> to vector<1x128xf32>
      %174 = vector.broadcast %173 : vector<1x128xf32> to vector<8x128xf32>
      %175 = arith.mulf %171, %174 : vector<8x128xf32>
      %176 = arith.addf %169, %175 : vector<8x128xf32>
      %177 = arith.subf %arg9, %176 : vector<8x128xf32>
      %178 = arith.subf %177, %arg9 : vector<8x128xf32>
      %179 = arith.addf %177, %178 : vector<8x128xf32>
      %180 = vector.extract_strided_slice %179 {offsets = [0, 0], sizes = [1, 128], strides = [1, 1]} : vector<8x128xf32> to vector<1x128xf32>
      %181 = vector.shape_cast %180 : vector<1x128xf32> to vector<1x128xf32>
      %182 = vector.broadcast %181 : vector<1x128xf32> to vector<8x128xf32>
      %c0_58 = arith.constant 0 : index
      %c0_59 = arith.constant 0 : index
      %c0_60 = arith.constant 0 : index
      %183 = vector.load %arg3[%c0_58, %c0_59, %c0_60] : memref<8x8x128xf32, #tpu.memory_space<vmem>>, vector<1x8x128xf32>
      %184 = vector.shape_cast %183 : vector<1x8x128xf32> to vector<8x128xf32>
      %185 = arith.mulf %184, %182 : vector<8x128xf32>
      %186 = arith.addf %1, %185 : vector<8x128xf32>
      %c0_61 = arith.constant 0 : index
      %c0_62 = arith.constant 0 : index
      %c0_63 = arith.constant 0 : index
      %187 = vector.load %arg4[%c0_61, %c0_62, %c0_63] : memref<8x8x128xf32, #tpu.memory_space<vmem>>, vector<1x8x128xf32>
      %188 = vector.shape_cast %187 : vector<1x8x128xf32> to vector<8x128xf32>
      %189 = arith.mulf %188, %182 : vector<8x128xf32>
      %190 = arith.addf %2, %189 : vector<8x128xf32>
      %191 = vector.extract_strided_slice %179 {offsets = [1, 0], sizes = [1, 128], strides = [1, 1]} : vector<8x128xf32> to vector<1x128xf32>
      %192 = vector.shape_cast %191 : vector<1x128xf32> to vector<1x128xf32>
      %193 = vector.broadcast %192 : vector<1x128xf32> to vector<8x128xf32>
      %c1_64 = arith.constant 1 : index
      %c0_65 = arith.constant 0 : index
      %c0_66 = arith.constant 0 : index
      %194 = vector.load %arg3[%c1_64, %c0_65, %c0_66] : memref<8x8x128xf32, #tpu.memory_space<vmem>>, vector<1x8x128xf32>
      %195 = vector.shape_cast %194 : vector<1x8x128xf32> to vector<8x128xf32>
      %196 = arith.mulf %195, %193 : vector<8x128xf32>
      %197 = arith.addf %186, %196 : vector<8x128xf32>
      %c1_67 = arith.constant 1 : index
      %c0_68 = arith.constant 0 : index
      %c0_69 = arith.constant 0 : index
      %198 = vector.load %arg4[%c1_67, %c0_68, %c0_69] : memref<8x8x128xf32, #tpu.memory_space<vmem>>, vector<1x8x128xf32>
      %199 = vector.shape_cast %198 : vector<1x8x128xf32> to vector<8x128xf32>
      %200 = arith.mulf %199, %193 : vector<8x128xf32>
      %201 = arith.addf %190, %200 : vector<8x128xf32>
      %202 = vector.extract_strided_slice %179 {offsets = [2, 0], sizes = [1, 128], strides = [1, 1]} : vector<8x128xf32> to vector<1x128xf32>
      %203 = vector.shape_cast %202 : vector<1x128xf32> to vector<1x128xf32>
      %204 = vector.broadcast %203 : vector<1x128xf32> to vector<8x128xf32>
      %c2_70 = arith.constant 2 : index
      %c0_71 = arith.constant 0 : index
      %c0_72 = arith.constant 0 : index
      %205 = vector.load %arg3[%c2_70, %c0_71, %c0_72] : memref<8x8x128xf32, #tpu.memory_space<vmem>>, vector<1x8x128xf32>
      %206 = vector.shape_cast %205 : vector<1x8x128xf32> to vector<8x128xf32>
      %207 = arith.mulf %206, %204 : vector<8x128xf32>
      %208 = arith.addf %197, %207 : vector<8x128xf32>
      %c2_73 = arith.constant 2 : index
      %c0_74 = arith.constant 0 : index
      %c0_75 = arith.constant 0 : index
      %209 = vector.load %arg4[%c2_73, %c0_74, %c0_75] : memref<8x8x128xf32, #tpu.memory_space<vmem>>, vector<1x8x128xf32>
      %210 = vector.shape_cast %209 : vector<1x8x128xf32> to vector<8x128xf32>
      %211 = arith.mulf %210, %204 : vector<8x128xf32>
      %212 = arith.addf %201, %211 : vector<8x128xf32>
      %213 = vector.extract_strided_slice %179 {offsets = [3, 0], sizes = [1, 128], strides = [1, 1]} : vector<8x128xf32> to vector<1x128xf32>
      %214 = vector.shape_cast %213 : vector<1x128xf32> to vector<1x128xf32>
      %215 = vector.broadcast %214 : vector<1x128xf32> to vector<8x128xf32>
      %c3_76 = arith.constant 3 : index
      %c0_77 = arith.constant 0 : index
      %c0_78 = arith.constant 0 : index
      %216 = vector.load %arg3[%c3_76, %c0_77, %c0_78] : memref<8x8x128xf32, #tpu.memory_space<vmem>>, vector<1x8x128xf32>
      %217 = vector.shape_cast %216 : vector<1x8x128xf32> to vector<8x128xf32>
      %218 = arith.mulf %217, %215 : vector<8x128xf32>
      %219 = arith.addf %208, %218 : vector<8x128xf32>
      %c3_79 = arith.constant 3 : index
      %c0_80 = arith.constant 0 : index
      %c0_81 = arith.constant 0 : index
      %220 = vector.load %arg4[%c3_79, %c0_80, %c0_81] : memref<8x8x128xf32, #tpu.memory_space<vmem>>, vector<1x8x128xf32>
      %221 = vector.shape_cast %220 : vector<1x8x128xf32> to vector<8x128xf32>
      %222 = arith.mulf %221, %215 : vector<8x128xf32>
      %223 = arith.addf %212, %222 : vector<8x128xf32>
      %224 = vector.extract_strided_slice %179 {offsets = [4, 0], sizes = [1, 128], strides = [1, 1]} : vector<8x128xf32> to vector<1x128xf32>
      %225 = vector.shape_cast %224 : vector<1x128xf32> to vector<1x128xf32>
      %226 = vector.broadcast %225 : vector<1x128xf32> to vector<8x128xf32>
      %c4_82 = arith.constant 4 : index
      %c0_83 = arith.constant 0 : index
      %c0_84 = arith.constant 0 : index
      %227 = vector.load %arg3[%c4_82, %c0_83, %c0_84] : memref<8x8x128xf32, #tpu.memory_space<vmem>>, vector<1x8x128xf32>
      %228 = vector.shape_cast %227 : vector<1x8x128xf32> to vector<8x128xf32>
      %229 = arith.mulf %228, %226 : vector<8x128xf32>
      %230 = arith.addf %219, %229 : vector<8x128xf32>
      %c4_85 = arith.constant 4 : index
      %c0_86 = arith.constant 0 : index
      %c0_87 = arith.constant 0 : index
      %231 = vector.load %arg4[%c4_85, %c0_86, %c0_87] : memref<8x8x128xf32, #tpu.memory_space<vmem>>, vector<1x8x128xf32>
      %232 = vector.shape_cast %231 : vector<1x8x128xf32> to vector<8x128xf32>
      %233 = arith.mulf %232, %226 : vector<8x128xf32>
      %234 = arith.addf %223, %233 : vector<8x128xf32>
      %235 = vector.extract_strided_slice %179 {offsets = [5, 0], sizes = [1, 128], strides = [1, 1]} : vector<8x128xf32> to vector<1x128xf32>
      %236 = vector.shape_cast %235 : vector<1x128xf32> to vector<1x128xf32>
      %237 = vector.broadcast %236 : vector<1x128xf32> to vector<8x128xf32>
      %c5_88 = arith.constant 5 : index
      %c0_89 = arith.constant 0 : index
      %c0_90 = arith.constant 0 : index
      %238 = vector.load %arg3[%c5_88, %c0_89, %c0_90] : memref<8x8x128xf32, #tpu.memory_space<vmem>>, vector<1x8x128xf32>
      %239 = vector.shape_cast %238 : vector<1x8x128xf32> to vector<8x128xf32>
      %240 = arith.mulf %239, %237 : vector<8x128xf32>
      %241 = arith.addf %230, %240 : vector<8x128xf32>
      %c5_91 = arith.constant 5 : index
      %c0_92 = arith.constant 0 : index
      %c0_93 = arith.constant 0 : index
      %242 = vector.load %arg4[%c5_91, %c0_92, %c0_93] : memref<8x8x128xf32, #tpu.memory_space<vmem>>, vector<1x8x128xf32>
      %243 = vector.shape_cast %242 : vector<1x8x128xf32> to vector<8x128xf32>
      %244 = arith.mulf %243, %237 : vector<8x128xf32>
      %245 = arith.addf %234, %244 : vector<8x128xf32>
      %246 = vector.extract_strided_slice %179 {offsets = [6, 0], sizes = [1, 128], strides = [1, 1]} : vector<8x128xf32> to vector<1x128xf32>
      %247 = vector.shape_cast %246 : vector<1x128xf32> to vector<1x128xf32>
      %248 = vector.broadcast %247 : vector<1x128xf32> to vector<8x128xf32>
      %c6_94 = arith.constant 6 : index
      %c0_95 = arith.constant 0 : index
      %c0_96 = arith.constant 0 : index
      %249 = vector.load %arg3[%c6_94, %c0_95, %c0_96] : memref<8x8x128xf32, #tpu.memory_space<vmem>>, vector<1x8x128xf32>
      %250 = vector.shape_cast %249 : vector<1x8x128xf32> to vector<8x128xf32>
      %251 = arith.mulf %250, %248 : vector<8x128xf32>
      %252 = arith.addf %241, %251 : vector<8x128xf32>
      %c6_97 = arith.constant 6 : index
      %c0_98 = arith.constant 0 : index
      %c0_99 = arith.constant 0 : index
      %253 = vector.load %arg4[%c6_97, %c0_98, %c0_99] : memref<8x8x128xf32, #tpu.memory_space<vmem>>, vector<1x8x128xf32>
      %254 = vector.shape_cast %253 : vector<1x8x128xf32> to vector<8x128xf32>
      %255 = arith.mulf %254, %248 : vector<8x128xf32>
      %256 = arith.addf %245, %255 : vector<8x128xf32>
      %257 = vector.extract_strided_slice %179 {offsets = [7, 0], sizes = [1, 128], strides = [1, 1]} : vector<8x128xf32> to vector<1x128xf32>
      %258 = vector.shape_cast %257 : vector<1x128xf32> to vector<1x128xf32>
      %259 = vector.broadcast %258 : vector<1x128xf32> to vector<8x128xf32>
      %c7_100 = arith.constant 7 : index
      %c0_101 = arith.constant 0 : index
      %c0_102 = arith.constant 0 : index
      %260 = vector.load %arg3[%c7_100, %c0_101, %c0_102] : memref<8x8x128xf32, #tpu.memory_space<vmem>>, vector<1x8x128xf32>
      %261 = vector.shape_cast %260 : vector<1x8x128xf32> to vector<8x128xf32>
      %262 = arith.mulf %261, %259 : vector<8x128xf32>
      %263 = arith.addf %252, %262 : vector<8x128xf32>
      %c7_103 = arith.constant 7 : index
      %c0_104 = arith.constant 0 : index
      %c0_105 = arith.constant 0 : index
      %264 = vector.load %arg4[%c7_103, %c0_104, %c0_105] : memref<8x8x128xf32, #tpu.memory_space<vmem>>, vector<1x8x128xf32>
      %265 = vector.shape_cast %264 : vector<1x8x128xf32> to vector<8x128xf32>
      %266 = arith.mulf %265, %259 : vector<8x128xf32>
      %267 = arith.addf %256, %266 : vector<8x128xf32>
      %268 = arith.addf %arg10, %263 : vector<8x128xf32>
      %269 = arith.addf %arg11, %267 : vector<8x128xf32>
      %cst_106 = arith.constant 0.000000e+00 : f32
      %270 = vector.broadcast %cst_106 : f32 to vector<8x128xf32>
      %271 = arith.maximumf %269, %270 : vector<8x128xf32>
      %c0_107 = arith.constant 0 : index
      %c0_108 = arith.constant 0 : index
      %c0_109 = arith.constant 0 : index
      %272 = vector.load %arg1[%c0_107, %c0_108, %c0_109] : memref<24x8x128xf32, #tpu.memory_space<vmem>>, vector<1x8x128xf32>
      %273 = vector.shape_cast %272 : vector<1x8x128xf32> to vector<8x128xf32>
      %274 = vector.extract_strided_slice %177 {offsets = [0, 0], sizes = [1, 128], strides = [1, 1]} : vector<8x128xf32> to vector<1x128xf32>
      %275 = vector.shape_cast %274 : vector<1x128xf32> to vector<1x128xf32>
      %276 = vector.broadcast %275 : vector<1x128xf32> to vector<8x128xf32>
      %277 = arith.mulf %273, %276 : vector<8x128xf32>
      %278 = arith.addf %0, %277 : vector<8x128xf32>
      %c1_110 = arith.constant 1 : index
      %c0_111 = arith.constant 0 : index
      %c0_112 = arith.constant 0 : index
      %279 = vector.load %arg1[%c1_110, %c0_111, %c0_112] : memref<24x8x128xf32, #tpu.memory_space<vmem>>, vector<1x8x128xf32>
      %280 = vector.shape_cast %279 : vector<1x8x128xf32> to vector<8x128xf32>
      %281 = vector.extract_strided_slice %177 {offsets = [1, 0], sizes = [1, 128], strides = [1, 1]} : vector<8x128xf32> to vector<1x128xf32>
      %282 = vector.shape_cast %281 : vector<1x128xf32> to vector<1x128xf32>
      %283 = vector.broadcast %282 : vector<1x128xf32> to vector<8x128xf32>
      %284 = arith.mulf %280, %283 : vector<8x128xf32>
      %285 = arith.addf %278, %284 : vector<8x128xf32>
      %c2_113 = arith.constant 2 : index
      %c0_114 = arith.constant 0 : index
      %c0_115 = arith.constant 0 : index
      %286 = vector.load %arg1[%c2_113, %c0_114, %c0_115] : memref<24x8x128xf32, #tpu.memory_space<vmem>>, vector<1x8x128xf32>
      %287 = vector.shape_cast %286 : vector<1x8x128xf32> to vector<8x128xf32>
      %288 = vector.extract_strided_slice %177 {offsets = [2, 0], sizes = [1, 128], strides = [1, 1]} : vector<8x128xf32> to vector<1x128xf32>
      %289 = vector.shape_cast %288 : vector<1x128xf32> to vector<1x128xf32>
      %290 = vector.broadcast %289 : vector<1x128xf32> to vector<8x128xf32>
      %291 = arith.mulf %287, %290 : vector<8x128xf32>
      %292 = arith.addf %285, %291 : vector<8x128xf32>
      %c3_116 = arith.constant 3 : index
      %c0_117 = arith.constant 0 : index
      %c0_118 = arith.constant 0 : index
      %293 = vector.load %arg1[%c3_116, %c0_117, %c0_118] : memref<24x8x128xf32, #tpu.memory_space<vmem>>, vector<1x8x128xf32>
      %294 = vector.shape_cast %293 : vector<1x8x128xf32> to vector<8x128xf32>
      %295 = vector.extract_strided_slice %177 {offsets = [3, 0], sizes = [1, 128], strides = [1, 1]} : vector<8x128xf32> to vector<1x128xf32>
      %296 = vector.shape_cast %295 : vector<1x128xf32> to vector<1x128xf32>
      %297 = vector.broadcast %296 : vector<1x128xf32> to vector<8x128xf32>
      %298 = arith.mulf %294, %297 : vector<8x128xf32>
      %299 = arith.addf %292, %298 : vector<8x128xf32>
      %c4_119 = arith.constant 4 : index
      %c0_120 = arith.constant 0 : index
      %c0_121 = arith.constant 0 : index
      %300 = vector.load %arg1[%c4_119, %c0_120, %c0_121] : memref<24x8x128xf32, #tpu.memory_space<vmem>>, vector<1x8x128xf32>
      %301 = vector.shape_cast %300 : vector<1x8x128xf32> to vector<8x128xf32>
      %302 = vector.extract_strided_slice %177 {offsets = [4, 0], sizes = [1, 128], strides = [1, 1]} : vector<8x128xf32> to vector<1x128xf32>
      %303 = vector.shape_cast %302 : vector<1x128xf32> to vector<1x128xf32>
      %304 = vector.broadcast %303 : vector<1x128xf32> to vector<8x128xf32>
      %305 = arith.mulf %301, %304 : vector<8x128xf32>
      %306 = arith.addf %299, %305 : vector<8x128xf32>
      %c5_122 = arith.constant 5 : index
      %c0_123 = arith.constant 0 : index
      %c0_124 = arith.constant 0 : index
      %307 = vector.load %arg1[%c5_122, %c0_123, %c0_124] : memref<24x8x128xf32, #tpu.memory_space<vmem>>, vector<1x8x128xf32>
      %308 = vector.shape_cast %307 : vector<1x8x128xf32> to vector<8x128xf32>
      %309 = vector.extract_strided_slice %177 {offsets = [5, 0], sizes = [1, 128], strides = [1, 1]} : vector<8x128xf32> to vector<1x128xf32>
      %310 = vector.shape_cast %309 : vector<1x128xf32> to vector<1x128xf32>
      %311 = vector.broadcast %310 : vector<1x128xf32> to vector<8x128xf32>
      %312 = arith.mulf %308, %311 : vector<8x128xf32>
      %313 = arith.addf %306, %312 : vector<8x128xf32>
      %c6_125 = arith.constant 6 : index
      %c0_126 = arith.constant 0 : index
      %c0_127 = arith.constant 0 : index
      %314 = vector.load %arg1[%c6_125, %c0_126, %c0_127] : memref<24x8x128xf32, #tpu.memory_space<vmem>>, vector<1x8x128xf32>
      %315 = vector.shape_cast %314 : vector<1x8x128xf32> to vector<8x128xf32>
      %316 = vector.extract_strided_slice %177 {offsets = [6, 0], sizes = [1, 128], strides = [1, 1]} : vector<8x128xf32> to vector<1x128xf32>
      %317 = vector.shape_cast %316 : vector<1x128xf32> to vector<1x128xf32>
      %318 = vector.broadcast %317 : vector<1x128xf32> to vector<8x128xf32>
      %319 = arith.mulf %315, %318 : vector<8x128xf32>
      %320 = arith.addf %313, %319 : vector<8x128xf32>
      %c7_128 = arith.constant 7 : index
      %c0_129 = arith.constant 0 : index
      %c0_130 = arith.constant 0 : index
      %321 = vector.load %arg1[%c7_128, %c0_129, %c0_130] : memref<24x8x128xf32, #tpu.memory_space<vmem>>, vector<1x8x128xf32>
      %322 = vector.shape_cast %321 : vector<1x8x128xf32> to vector<8x128xf32>
      %323 = vector.extract_strided_slice %177 {offsets = [7, 0], sizes = [1, 128], strides = [1, 1]} : vector<8x128xf32> to vector<1x128xf32>
      %324 = vector.shape_cast %323 : vector<1x128xf32> to vector<1x128xf32>
      %325 = vector.broadcast %324 : vector<1x128xf32> to vector<8x128xf32>
      %326 = arith.mulf %322, %325 : vector<8x128xf32>
      %327 = arith.addf %320, %326 : vector<8x128xf32>
      %c8_131 = arith.constant 8 : index
      %c0_132 = arith.constant 0 : index
      %c0_133 = arith.constant 0 : index
      %328 = vector.load %arg1[%c8_131, %c0_132, %c0_133] : memref<24x8x128xf32, #tpu.memory_space<vmem>>, vector<1x8x128xf32>
      %329 = vector.shape_cast %328 : vector<1x8x128xf32> to vector<8x128xf32>
      %330 = vector.extract_strided_slice %268 {offsets = [0, 0], sizes = [1, 128], strides = [1, 1]} : vector<8x128xf32> to vector<1x128xf32>
      %331 = vector.shape_cast %330 : vector<1x128xf32> to vector<1x128xf32>
      %332 = vector.broadcast %331 : vector<1x128xf32> to vector<8x128xf32>
      %333 = arith.mulf %329, %332 : vector<8x128xf32>
      %334 = arith.addf %327, %333 : vector<8x128xf32>
      %c9_134 = arith.constant 9 : index
      %c0_135 = arith.constant 0 : index
      %c0_136 = arith.constant 0 : index
      %335 = vector.load %arg1[%c9_134, %c0_135, %c0_136] : memref<24x8x128xf32, #tpu.memory_space<vmem>>, vector<1x8x128xf32>
      %336 = vector.shape_cast %335 : vector<1x8x128xf32> to vector<8x128xf32>
      %337 = vector.extract_strided_slice %268 {offsets = [1, 0], sizes = [1, 128], strides = [1, 1]} : vector<8x128xf32> to vector<1x128xf32>
      %338 = vector.shape_cast %337 : vector<1x128xf32> to vector<1x128xf32>
      %339 = vector.broadcast %338 : vector<1x128xf32> to vector<8x128xf32>
      %340 = arith.mulf %336, %339 : vector<8x128xf32>
      %341 = arith.addf %334, %340 : vector<8x128xf32>
      %c10_137 = arith.constant 10 : index
      %c0_138 = arith.constant 0 : index
      %c0_139 = arith.constant 0 : index
      %342 = vector.load %arg1[%c10_137, %c0_138, %c0_139] : memref<24x8x128xf32, #tpu.memory_space<vmem>>, vector<1x8x128xf32>
      %343 = vector.shape_cast %342 : vector<1x8x128xf32> to vector<8x128xf32>
      %344 = vector.extract_strided_slice %268 {offsets = [2, 0], sizes = [1, 128], strides = [1, 1]} : vector<8x128xf32> to vector<1x128xf32>
      %345 = vector.shape_cast %344 : vector<1x128xf32> to vector<1x128xf32>
      %346 = vector.broadcast %345 : vector<1x128xf32> to vector<8x128xf32>
      %347 = arith.mulf %343, %346 : vector<8x128xf32>
      %348 = arith.addf %341, %347 : vector<8x128xf32>
      %c11_140 = arith.constant 11 : index
      %c0_141 = arith.constant 0 : index
      %c0_142 = arith.constant 0 : index
      %349 = vector.load %arg1[%c11_140, %c0_141, %c0_142] : memref<24x8x128xf32, #tpu.memory_space<vmem>>, vector<1x8x128xf32>
      %350 = vector.shape_cast %349 : vector<1x8x128xf32> to vector<8x128xf32>
      %351 = vector.extract_strided_slice %268 {offsets = [3, 0], sizes = [1, 128], strides = [1, 1]} : vector<8x128xf32> to vector<1x128xf32>
      %352 = vector.shape_cast %351 : vector<1x128xf32> to vector<1x128xf32>
      %353 = vector.broadcast %352 : vector<1x128xf32> to vector<8x128xf32>
      %354 = arith.mulf %350, %353 : vector<8x128xf32>
      %355 = arith.addf %348, %354 : vector<8x128xf32>
      %c12_143 = arith.constant 12 : index
      %c0_144 = arith.constant 0 : index
      %c0_145 = arith.constant 0 : index
      %356 = vector.load %arg1[%c12_143, %c0_144, %c0_145] : memref<24x8x128xf32, #tpu.memory_space<vmem>>, vector<1x8x128xf32>
      %357 = vector.shape_cast %356 : vector<1x8x128xf32> to vector<8x128xf32>
      %358 = vector.extract_strided_slice %268 {offsets = [4, 0], sizes = [1, 128], strides = [1, 1]} : vector<8x128xf32> to vector<1x128xf32>
      %359 = vector.shape_cast %358 : vector<1x128xf32> to vector<1x128xf32>
      %360 = vector.broadcast %359 : vector<1x128xf32> to vector<8x128xf32>
      %361 = arith.mulf %357, %360 : vector<8x128xf32>
      %362 = arith.addf %355, %361 : vector<8x128xf32>
      %c13_146 = arith.constant 13 : index
      %c0_147 = arith.constant 0 : index
      %c0_148 = arith.constant 0 : index
      %363 = vector.load %arg1[%c13_146, %c0_147, %c0_148] : memref<24x8x128xf32, #tpu.memory_space<vmem>>, vector<1x8x128xf32>
      %364 = vector.shape_cast %363 : vector<1x8x128xf32> to vector<8x128xf32>
      %365 = vector.extract_strided_slice %268 {offsets = [5, 0], sizes = [1, 128], strides = [1, 1]} : vector<8x128xf32> to vector<1x128xf32>
      %366 = vector.shape_cast %365 : vector<1x128xf32> to vector<1x128xf32>
      %367 = vector.broadcast %366 : vector<1x128xf32> to vector<8x128xf32>
      %368 = arith.mulf %364, %367 : vector<8x128xf32>
      %369 = arith.addf %362, %368 : vector<8x128xf32>
      %c14_149 = arith.constant 14 : index
      %c0_150 = arith.constant 0 : index
      %c0_151 = arith.constant 0 : index
      %370 = vector.load %arg1[%c14_149, %c0_150, %c0_151] : memref<24x8x128xf32, #tpu.memory_space<vmem>>, vector<1x8x128xf32>
      %371 = vector.shape_cast %370 : vector<1x8x128xf32> to vector<8x128xf32>
      %372 = vector.extract_strided_slice %268 {offsets = [6, 0], sizes = [1, 128], strides = [1, 1]} : vector<8x128xf32> to vector<1x128xf32>
      %373 = vector.shape_cast %372 : vector<1x128xf32> to vector<1x128xf32>
      %374 = vector.broadcast %373 : vector<1x128xf32> to vector<8x128xf32>
      %375 = arith.mulf %371, %374 : vector<8x128xf32>
      %376 = arith.addf %369, %375 : vector<8x128xf32>
      %c15_152 = arith.constant 15 : index
      %c0_153 = arith.constant 0 : index
      %c0_154 = arith.constant 0 : index
      %377 = vector.load %arg1[%c15_152, %c0_153, %c0_154] : memref<24x8x128xf32, #tpu.memory_space<vmem>>, vector<1x8x128xf32>
      %378 = vector.shape_cast %377 : vector<1x8x128xf32> to vector<8x128xf32>
      %379 = vector.extract_strided_slice %268 {offsets = [7, 0], sizes = [1, 128], strides = [1, 1]} : vector<8x128xf32> to vector<1x128xf32>
      %380 = vector.shape_cast %379 : vector<1x128xf32> to vector<1x128xf32>
      %381 = vector.broadcast %380 : vector<1x128xf32> to vector<8x128xf32>
      %382 = arith.mulf %378, %381 : vector<8x128xf32>
      %383 = arith.addf %376, %382 : vector<8x128xf32>
      %c16_155 = arith.constant 16 : index
      %c0_156 = arith.constant 0 : index
      %c0_157 = arith.constant 0 : index
      %384 = vector.load %arg1[%c16_155, %c0_156, %c0_157] : memref<24x8x128xf32, #tpu.memory_space<vmem>>, vector<1x8x128xf32>
      %385 = vector.shape_cast %384 : vector<1x8x128xf32> to vector<8x128xf32>
      %386 = vector.extract_strided_slice %271 {offsets = [0, 0], sizes = [1, 128], strides = [1, 1]} : vector<8x128xf32> to vector<1x128xf32>
      %387 = vector.shape_cast %386 : vector<1x128xf32> to vector<1x128xf32>
      %388 = vector.broadcast %387 : vector<1x128xf32> to vector<8x128xf32>
      %389 = arith.mulf %385, %388 : vector<8x128xf32>
      %390 = arith.addf %383, %389 : vector<8x128xf32>
      %c17_158 = arith.constant 17 : index
      %c0_159 = arith.constant 0 : index
      %c0_160 = arith.constant 0 : index
      %391 = vector.load %arg1[%c17_158, %c0_159, %c0_160] : memref<24x8x128xf32, #tpu.memory_space<vmem>>, vector<1x8x128xf32>
      %392 = vector.shape_cast %391 : vector<1x8x128xf32> to vector<8x128xf32>
      %393 = vector.extract_strided_slice %271 {offsets = [1, 0], sizes = [1, 128], strides = [1, 1]} : vector<8x128xf32> to vector<1x128xf32>
      %394 = vector.shape_cast %393 : vector<1x128xf32> to vector<1x128xf32>
      %395 = vector.broadcast %394 : vector<1x128xf32> to vector<8x128xf32>
      %396 = arith.mulf %392, %395 : vector<8x128xf32>
      %397 = arith.addf %390, %396 : vector<8x128xf32>
      %c18_161 = arith.constant 18 : index
      %c0_162 = arith.constant 0 : index
      %c0_163 = arith.constant 0 : index
      %398 = vector.load %arg1[%c18_161, %c0_162, %c0_163] : memref<24x8x128xf32, #tpu.memory_space<vmem>>, vector<1x8x128xf32>
      %399 = vector.shape_cast %398 : vector<1x8x128xf32> to vector<8x128xf32>
      %400 = vector.extract_strided_slice %271 {offsets = [2, 0], sizes = [1, 128], strides = [1, 1]} : vector<8x128xf32> to vector<1x128xf32>
      %401 = vector.shape_cast %400 : vector<1x128xf32> to vector<1x128xf32>
      %402 = vector.broadcast %401 : vector<1x128xf32> to vector<8x128xf32>
      %403 = arith.mulf %399, %402 : vector<8x128xf32>
      %404 = arith.addf %397, %403 : vector<8x128xf32>
      %c19_164 = arith.constant 19 : index
      %c0_165 = arith.constant 0 : index
      %c0_166 = arith.constant 0 : index
      %405 = vector.load %arg1[%c19_164, %c0_165, %c0_166] : memref<24x8x128xf32, #tpu.memory_space<vmem>>, vector<1x8x128xf32>
      %406 = vector.shape_cast %405 : vector<1x8x128xf32> to vector<8x128xf32>
      %407 = vector.extract_strided_slice %271 {offsets = [3, 0], sizes = [1, 128], strides = [1, 1]} : vector<8x128xf32> to vector<1x128xf32>
      %408 = vector.shape_cast %407 : vector<1x128xf32> to vector<1x128xf32>
      %409 = vector.broadcast %408 : vector<1x128xf32> to vector<8x128xf32>
      %410 = arith.mulf %406, %409 : vector<8x128xf32>
      %411 = arith.addf %404, %410 : vector<8x128xf32>
      %c20_167 = arith.constant 20 : index
      %c0_168 = arith.constant 0 : index
      %c0_169 = arith.constant 0 : index
      %412 = vector.load %arg1[%c20_167, %c0_168, %c0_169] : memref<24x8x128xf32, #tpu.memory_space<vmem>>, vector<1x8x128xf32>
      %413 = vector.shape_cast %412 : vector<1x8x128xf32> to vector<8x128xf32>
      %414 = vector.extract_strided_slice %271 {offsets = [4, 0], sizes = [1, 128], strides = [1, 1]} : vector<8x128xf32> to vector<1x128xf32>
      %415 = vector.shape_cast %414 : vector<1x128xf32> to vector<1x128xf32>
      %416 = vector.broadcast %415 : vector<1x128xf32> to vector<8x128xf32>
      %417 = arith.mulf %413, %416 : vector<8x128xf32>
      %418 = arith.addf %411, %417 : vector<8x128xf32>
      %c21_170 = arith.constant 21 : index
      %c0_171 = arith.constant 0 : index
      %c0_172 = arith.constant 0 : index
      %419 = vector.load %arg1[%c21_170, %c0_171, %c0_172] : memref<24x8x128xf32, #tpu.memory_space<vmem>>, vector<1x8x128xf32>
      %420 = vector.shape_cast %419 : vector<1x8x128xf32> to vector<8x128xf32>
      %421 = vector.extract_strided_slice %271 {offsets = [5, 0], sizes = [1, 128], strides = [1, 1]} : vector<8x128xf32> to vector<1x128xf32>
      %422 = vector.shape_cast %421 : vector<1x128xf32> to vector<1x128xf32>
      %423 = vector.broadcast %422 : vector<1x128xf32> to vector<8x128xf32>
      %424 = arith.mulf %420, %423 : vector<8x128xf32>
      %425 = arith.addf %418, %424 : vector<8x128xf32>
      %c22_173 = arith.constant 22 : index
      %c0_174 = arith.constant 0 : index
      %c0_175 = arith.constant 0 : index
      %426 = vector.load %arg1[%c22_173, %c0_174, %c0_175] : memref<24x8x128xf32, #tpu.memory_space<vmem>>, vector<1x8x128xf32>
      %427 = vector.shape_cast %426 : vector<1x8x128xf32> to vector<8x128xf32>
      %428 = vector.extract_strided_slice %271 {offsets = [6, 0], sizes = [1, 128], strides = [1, 1]} : vector<8x128xf32> to vector<1x128xf32>
      %429 = vector.shape_cast %428 : vector<1x128xf32> to vector<1x128xf32>
      %430 = vector.broadcast %429 : vector<1x128xf32> to vector<8x128xf32>
      %431 = arith.mulf %427, %430 : vector<8x128xf32>
      %432 = arith.addf %425, %431 : vector<8x128xf32>
      %c23_176 = arith.constant 23 : index
      %c0_177 = arith.constant 0 : index
      %c0_178 = arith.constant 0 : index
      %433 = vector.load %arg1[%c23_176, %c0_177, %c0_178] : memref<24x8x128xf32, #tpu.memory_space<vmem>>, vector<1x8x128xf32>
      %434 = vector.shape_cast %433 : vector<1x8x128xf32> to vector<8x128xf32>
      %435 = vector.extract_strided_slice %271 {offsets = [7, 0], sizes = [1, 128], strides = [1, 1]} : vector<8x128xf32> to vector<1x128xf32>
      %436 = vector.shape_cast %435 : vector<1x128xf32> to vector<1x128xf32>
      %437 = vector.broadcast %436 : vector<1x128xf32> to vector<8x128xf32>
      %438 = arith.mulf %434, %437 : vector<8x128xf32>
      %439 = arith.addf %432, %438 : vector<8x128xf32>
      %440 = arith.subf %177, %439 : vector<8x128xf32>
      %441 = arith.subf %440, %177 : vector<8x128xf32>
      %442 = arith.addf %440, %441 : vector<8x128xf32>
      %443 = vector.extract_strided_slice %442 {offsets = [0, 0], sizes = [1, 128], strides = [1, 1]} : vector<8x128xf32> to vector<1x128xf32>
      %444 = vector.shape_cast %443 : vector<1x128xf32> to vector<1x128xf32>
      %445 = vector.broadcast %444 : vector<1x128xf32> to vector<8x128xf32>
      %c0_179 = arith.constant 0 : index
      %c0_180 = arith.constant 0 : index
      %c0_181 = arith.constant 0 : index
      %446 = vector.load %arg3[%c0_179, %c0_180, %c0_181] : memref<8x8x128xf32, #tpu.memory_space<vmem>>, vector<1x8x128xf32>
      %447 = vector.shape_cast %446 : vector<1x8x128xf32> to vector<8x128xf32>
      %448 = arith.mulf %447, %445 : vector<8x128xf32>
      %449 = arith.addf %1, %448 : vector<8x128xf32>
      %c0_182 = arith.constant 0 : index
      %c0_183 = arith.constant 0 : index
      %c0_184 = arith.constant 0 : index
      %450 = vector.load %arg4[%c0_182, %c0_183, %c0_184] : memref<8x8x128xf32, #tpu.memory_space<vmem>>, vector<1x8x128xf32>
      %451 = vector.shape_cast %450 : vector<1x8x128xf32> to vector<8x128xf32>
      %452 = arith.mulf %451, %445 : vector<8x128xf32>
      %453 = arith.addf %2, %452 : vector<8x128xf32>
      %454 = vector.extract_strided_slice %442 {offsets = [1, 0], sizes = [1, 128], strides = [1, 1]} : vector<8x128xf32> to vector<1x128xf32>
      %455 = vector.shape_cast %454 : vector<1x128xf32> to vector<1x128xf32>
      %456 = vector.broadcast %455 : vector<1x128xf32> to vector<8x128xf32>
      %c1_185 = arith.constant 1 : index
      %c0_186 = arith.constant 0 : index
      %c0_187 = arith.constant 0 : index
      %457 = vector.load %arg3[%c1_185, %c0_186, %c0_187] : memref<8x8x128xf32, #tpu.memory_space<vmem>>, vector<1x8x128xf32>
      %458 = vector.shape_cast %457 : vector<1x8x128xf32> to vector<8x128xf32>
      %459 = arith.mulf %458, %456 : vector<8x128xf32>
      %460 = arith.addf %449, %459 : vector<8x128xf32>
      %c1_188 = arith.constant 1 : index
      %c0_189 = arith.constant 0 : index
      %c0_190 = arith.constant 0 : index
      %461 = vector.load %arg4[%c1_188, %c0_189, %c0_190] : memref<8x8x128xf32, #tpu.memory_space<vmem>>, vector<1x8x128xf32>
      %462 = vector.shape_cast %461 : vector<1x8x128xf32> to vector<8x128xf32>
      %463 = arith.mulf %462, %456 : vector<8x128xf32>
      %464 = arith.addf %453, %463 : vector<8x128xf32>
      %465 = vector.extract_strided_slice %442 {offsets = [2, 0], sizes = [1, 128], strides = [1, 1]} : vector<8x128xf32> to vector<1x128xf32>
      %466 = vector.shape_cast %465 : vector<1x128xf32> to vector<1x128xf32>
      %467 = vector.broadcast %466 : vector<1x128xf32> to vector<8x128xf32>
      %c2_191 = arith.constant 2 : index
      %c0_192 = arith.constant 0 : index
      %c0_193 = arith.constant 0 : index
      %468 = vector.load %arg3[%c2_191, %c0_192, %c0_193] : memref<8x8x128xf32, #tpu.memory_space<vmem>>, vector<1x8x128xf32>
      %469 = vector.shape_cast %468 : vector<1x8x128xf32> to vector<8x128xf32>
      %470 = arith.mulf %469, %467 : vector<8x128xf32>
      %471 = arith.addf %460, %470 : vector<8x128xf32>
      %c2_194 = arith.constant 2 : index
      %c0_195 = arith.constant 0 : index
      %c0_196 = arith.constant 0 : index
      %472 = vector.load %arg4[%c2_194, %c0_195, %c0_196] : memref<8x8x128xf32, #tpu.memory_space<vmem>>, vector<1x8x128xf32>
      %473 = vector.shape_cast %472 : vector<1x8x128xf32> to vector<8x128xf32>
      %474 = arith.mulf %473, %467 : vector<8x128xf32>
      %475 = arith.addf %464, %474 : vector<8x128xf32>
      %476 = vector.extract_strided_slice %442 {offsets = [3, 0], sizes = [1, 128], strides = [1, 1]} : vector<8x128xf32> to vector<1x128xf32>
      %477 = vector.shape_cast %476 : vector<1x128xf32> to vector<1x128xf32>
      %478 = vector.broadcast %477 : vector<1x128xf32> to vector<8x128xf32>
      %c3_197 = arith.constant 3 : index
      %c0_198 = arith.constant 0 : index
      %c0_199 = arith.constant 0 : index
      %479 = vector.load %arg3[%c3_197, %c0_198, %c0_199] : memref<8x8x128xf32, #tpu.memory_space<vmem>>, vector<1x8x128xf32>
      %480 = vector.shape_cast %479 : vector<1x8x128xf32> to vector<8x128xf32>
      %481 = arith.mulf %480, %478 : vector<8x128xf32>
      %482 = arith.addf %471, %481 : vector<8x128xf32>
      %c3_200 = arith.constant 3 : index
      %c0_201 = arith.constant 0 : index
      %c0_202 = arith.constant 0 : index
      %483 = vector.load %arg4[%c3_200, %c0_201, %c0_202] : memref<8x8x128xf32, #tpu.memory_space<vmem>>, vector<1x8x128xf32>
      %484 = vector.shape_cast %483 : vector<1x8x128xf32> to vector<8x128xf32>
      %485 = arith.mulf %484, %478 : vector<8x128xf32>
      %486 = arith.addf %475, %485 : vector<8x128xf32>
      %487 = vector.extract_strided_slice %442 {offsets = [4, 0], sizes = [1, 128], strides = [1, 1]} : vector<8x128xf32> to vector<1x128xf32>
      %488 = vector.shape_cast %487 : vector<1x128xf32> to vector<1x128xf32>
      %489 = vector.broadcast %488 : vector<1x128xf32> to vector<8x128xf32>
      %c4_203 = arith.constant 4 : index
      %c0_204 = arith.constant 0 : index
      %c0_205 = arith.constant 0 : index
      %490 = vector.load %arg3[%c4_203, %c0_204, %c0_205] : memref<8x8x128xf32, #tpu.memory_space<vmem>>, vector<1x8x128xf32>
      %491 = vector.shape_cast %490 : vector<1x8x128xf32> to vector<8x128xf32>
      %492 = arith.mulf %491, %489 : vector<8x128xf32>
      %493 = arith.addf %482, %492 : vector<8x128xf32>
      %c4_206 = arith.constant 4 : index
      %c0_207 = arith.constant 0 : index
      %c0_208 = arith.constant 0 : index
      %494 = vector.load %arg4[%c4_206, %c0_207, %c0_208] : memref<8x8x128xf32, #tpu.memory_space<vmem>>, vector<1x8x128xf32>
      %495 = vector.shape_cast %494 : vector<1x8x128xf32> to vector<8x128xf32>
      %496 = arith.mulf %495, %489 : vector<8x128xf32>
      %497 = arith.addf %486, %496 : vector<8x128xf32>
      %498 = vector.extract_strided_slice %442 {offsets = [5, 0], sizes = [1, 128], strides = [1, 1]} : vector<8x128xf32> to vector<1x128xf32>
      %499 = vector.shape_cast %498 : vector<1x128xf32> to vector<1x128xf32>
      %500 = vector.broadcast %499 : vector<1x128xf32> to vector<8x128xf32>
      %c5_209 = arith.constant 5 : index
      %c0_210 = arith.constant 0 : index
      %c0_211 = arith.constant 0 : index
      %501 = vector.load %arg3[%c5_209, %c0_210, %c0_211] : memref<8x8x128xf32, #tpu.memory_space<vmem>>, vector<1x8x128xf32>
      %502 = vector.shape_cast %501 : vector<1x8x128xf32> to vector<8x128xf32>
      %503 = arith.mulf %502, %500 : vector<8x128xf32>
      %504 = arith.addf %493, %503 : vector<8x128xf32>
      %c5_212 = arith.constant 5 : index
      %c0_213 = arith.constant 0 : index
      %c0_214 = arith.constant 0 : index
      %505 = vector.load %arg4[%c5_212, %c0_213, %c0_214] : memref<8x8x128xf32, #tpu.memory_space<vmem>>, vector<1x8x128xf32>
      %506 = vector.shape_cast %505 : vector<1x8x128xf32> to vector<8x128xf32>
      %507 = arith.mulf %506, %500 : vector<8x128xf32>
      %508 = arith.addf %497, %507 : vector<8x128xf32>
      %509 = vector.extract_strided_slice %442 {offsets = [6, 0], sizes = [1, 128], strides = [1, 1]} : vector<8x128xf32> to vector<1x128xf32>
      %510 = vector.shape_cast %509 : vector<1x128xf32> to vector<1x128xf32>
      %511 = vector.broadcast %510 : vector<1x128xf32> to vector<8x128xf32>
      %c6_215 = arith.constant 6 : index
      %c0_216 = arith.constant 0 : index
      %c0_217 = arith.constant 0 : index
      %512 = vector.load %arg3[%c6_215, %c0_216, %c0_217] : memref<8x8x128xf32, #tpu.memory_space<vmem>>, vector<1x8x128xf32>
      %513 = vector.shape_cast %512 : vector<1x8x128xf32> to vector<8x128xf32>
      %514 = arith.mulf %513, %511 : vector<8x128xf32>
      %515 = arith.addf %504, %514 : vector<8x128xf32>
      %c6_218 = arith.constant 6 : index
      %c0_219 = arith.constant 0 : index
      %c0_220 = arith.constant 0 : index
      %516 = vector.load %arg4[%c6_218, %c0_219, %c0_220] : memref<8x8x128xf32, #tpu.memory_space<vmem>>, vector<1x8x128xf32>
      %517 = vector.shape_cast %516 : vector<1x8x128xf32> to vector<8x128xf32>
      %518 = arith.mulf %517, %511 : vector<8x128xf32>
      %519 = arith.addf %508, %518 : vector<8x128xf32>
      %520 = vector.extract_strided_slice %442 {offsets = [7, 0], sizes = [1, 128], strides = [1, 1]} : vector<8x128xf32> to vector<1x128xf32>
      %521 = vector.shape_cast %520 : vector<1x128xf32> to vector<1x128xf32>
      %522 = vector.broadcast %521 : vector<1x128xf32> to vector<8x128xf32>
      %c7_221 = arith.constant 7 : index
      %c0_222 = arith.constant 0 : index
      %c0_223 = arith.constant 0 : index
      %523 = vector.load %arg3[%c7_221, %c0_222, %c0_223] : memref<8x8x128xf32, #tpu.memory_space<vmem>>, vector<1x8x128xf32>
      %524 = vector.shape_cast %523 : vector<1x8x128xf32> to vector<8x128xf32>
      %525 = arith.mulf %524, %522 : vector<8x128xf32>
      %526 = arith.addf %515, %525 : vector<8x128xf32>
      %c7_224 = arith.constant 7 : index
      %c0_225 = arith.constant 0 : index
      %c0_226 = arith.constant 0 : index
      %527 = vector.load %arg4[%c7_224, %c0_225, %c0_226] : memref<8x8x128xf32, #tpu.memory_space<vmem>>, vector<1x8x128xf32>
      %528 = vector.shape_cast %527 : vector<1x8x128xf32> to vector<8x128xf32>
      %529 = arith.mulf %528, %522 : vector<8x128xf32>
      %530 = arith.addf %519, %529 : vector<8x128xf32>
      %531 = arith.addf %268, %526 : vector<8x128xf32>
      %532 = arith.addf %271, %530 : vector<8x128xf32>
      %cst_227 = arith.constant 0.000000e+00 : f32
      %533 = vector.broadcast %cst_227 : f32 to vector<8x128xf32>
      %534 = arith.maximumf %532, %533 : vector<8x128xf32>
      %c0_228 = arith.constant 0 : index
      %c0_229 = arith.constant 0 : index
      %c0_230 = arith.constant 0 : index
      %535 = vector.load %arg1[%c0_228, %c0_229, %c0_230] : memref<24x8x128xf32, #tpu.memory_space<vmem>>, vector<1x8x128xf32>
      %536 = vector.shape_cast %535 : vector<1x8x128xf32> to vector<8x128xf32>
      %537 = vector.extract_strided_slice %440 {offsets = [0, 0], sizes = [1, 128], strides = [1, 1]} : vector<8x128xf32> to vector<1x128xf32>
      %538 = vector.shape_cast %537 : vector<1x128xf32> to vector<1x128xf32>
      %539 = vector.broadcast %538 : vector<1x128xf32> to vector<8x128xf32>
      %540 = arith.mulf %536, %539 : vector<8x128xf32>
      %541 = arith.addf %0, %540 : vector<8x128xf32>
      %c1_231 = arith.constant 1 : index
      %c0_232 = arith.constant 0 : index
      %c0_233 = arith.constant 0 : index
      %542 = vector.load %arg1[%c1_231, %c0_232, %c0_233] : memref<24x8x128xf32, #tpu.memory_space<vmem>>, vector<1x8x128xf32>
      %543 = vector.shape_cast %542 : vector<1x8x128xf32> to vector<8x128xf32>
      %544 = vector.extract_strided_slice %440 {offsets = [1, 0], sizes = [1, 128], strides = [1, 1]} : vector<8x128xf32> to vector<1x128xf32>
      %545 = vector.shape_cast %544 : vector<1x128xf32> to vector<1x128xf32>
      %546 = vector.broadcast %545 : vector<1x128xf32> to vector<8x128xf32>
      %547 = arith.mulf %543, %546 : vector<8x128xf32>
      %548 = arith.addf %541, %547 : vector<8x128xf32>
      %c2_234 = arith.constant 2 : index
      %c0_235 = arith.constant 0 : index
      %c0_236 = arith.constant 0 : index
      %549 = vector.load %arg1[%c2_234, %c0_235, %c0_236] : memref<24x8x128xf32, #tpu.memory_space<vmem>>, vector<1x8x128xf32>
      %550 = vector.shape_cast %549 : vector<1x8x128xf32> to vector<8x128xf32>
      %551 = vector.extract_strided_slice %440 {offsets = [2, 0], sizes = [1, 128], strides = [1, 1]} : vector<8x128xf32> to vector<1x128xf32>
      %552 = vector.shape_cast %551 : vector<1x128xf32> to vector<1x128xf32>
      %553 = vector.broadcast %552 : vector<1x128xf32> to vector<8x128xf32>
      %554 = arith.mulf %550, %553 : vector<8x128xf32>
      %555 = arith.addf %548, %554 : vector<8x128xf32>
      %c3_237 = arith.constant 3 : index
      %c0_238 = arith.constant 0 : index
      %c0_239 = arith.constant 0 : index
      %556 = vector.load %arg1[%c3_237, %c0_238, %c0_239] : memref<24x8x128xf32, #tpu.memory_space<vmem>>, vector<1x8x128xf32>
      %557 = vector.shape_cast %556 : vector<1x8x128xf32> to vector<8x128xf32>
      %558 = vector.extract_strided_slice %440 {offsets = [3, 0], sizes = [1, 128], strides = [1, 1]} : vector<8x128xf32> to vector<1x128xf32>
      %559 = vector.shape_cast %558 : vector<1x128xf32> to vector<1x128xf32>
      %560 = vector.broadcast %559 : vector<1x128xf32> to vector<8x128xf32>
      %561 = arith.mulf %557, %560 : vector<8x128xf32>
      %562 = arith.addf %555, %561 : vector<8x128xf32>
      %c4_240 = arith.constant 4 : index
      %c0_241 = arith.constant 0 : index
      %c0_242 = arith.constant 0 : index
      %563 = vector.load %arg1[%c4_240, %c0_241, %c0_242] : memref<24x8x128xf32, #tpu.memory_space<vmem>>, vector<1x8x128xf32>
      %564 = vector.shape_cast %563 : vector<1x8x128xf32> to vector<8x128xf32>
      %565 = vector.extract_strided_slice %440 {offsets = [4, 0], sizes = [1, 128], strides = [1, 1]} : vector<8x128xf32> to vector<1x128xf32>
      %566 = vector.shape_cast %565 : vector<1x128xf32> to vector<1x128xf32>
      %567 = vector.broadcast %566 : vector<1x128xf32> to vector<8x128xf32>
      %568 = arith.mulf %564, %567 : vector<8x128xf32>
      %569 = arith.addf %562, %568 : vector<8x128xf32>
      %c5_243 = arith.constant 5 : index
      %c0_244 = arith.constant 0 : index
      %c0_245 = arith.constant 0 : index
      %570 = vector.load %arg1[%c5_243, %c0_244, %c0_245] : memref<24x8x128xf32, #tpu.memory_space<vmem>>, vector<1x8x128xf32>
      %571 = vector.shape_cast %570 : vector<1x8x128xf32> to vector<8x128xf32>
      %572 = vector.extract_strided_slice %440 {offsets = [5, 0], sizes = [1, 128], strides = [1, 1]} : vector<8x128xf32> to vector<1x128xf32>
      %573 = vector.shape_cast %572 : vector<1x128xf32> to vector<1x128xf32>
      %574 = vector.broadcast %573 : vector<1x128xf32> to vector<8x128xf32>
      %575 = arith.mulf %571, %574 : vector<8x128xf32>
      %576 = arith.addf %569, %575 : vector<8x128xf32>
      %c6_246 = arith.constant 6 : index
      %c0_247 = arith.constant 0 : index
      %c0_248 = arith.constant 0 : index
      %577 = vector.load %arg1[%c6_246, %c0_247, %c0_248] : memref<24x8x128xf32, #tpu.memory_space<vmem>>, vector<1x8x128xf32>
      %578 = vector.shape_cast %577 : vector<1x8x128xf32> to vector<8x128xf32>
      %579 = vector.extract_strided_slice %440 {offsets = [6, 0], sizes = [1, 128], strides = [1, 1]} : vector<8x128xf32> to vector<1x128xf32>
      %580 = vector.shape_cast %579 : vector<1x128xf32> to vector<1x128xf32>
      %581 = vector.broadcast %580 : vector<1x128xf32> to vector<8x128xf32>
      %582 = arith.mulf %578, %581 : vector<8x128xf32>
      %583 = arith.addf %576, %582 : vector<8x128xf32>
      %c7_249 = arith.constant 7 : index
      %c0_250 = arith.constant 0 : index
      %c0_251 = arith.constant 0 : index
      %584 = vector.load %arg1[%c7_249, %c0_250, %c0_251] : memref<24x8x128xf32, #tpu.memory_space<vmem>>, vector<1x8x128xf32>
      %585 = vector.shape_cast %584 : vector<1x8x128xf32> to vector<8x128xf32>
      %586 = vector.extract_strided_slice %440 {offsets = [7, 0], sizes = [1, 128], strides = [1, 1]} : vector<8x128xf32> to vector<1x128xf32>
      %587 = vector.shape_cast %586 : vector<1x128xf32> to vector<1x128xf32>
      %588 = vector.broadcast %587 : vector<1x128xf32> to vector<8x128xf32>
      %589 = arith.mulf %585, %588 : vector<8x128xf32>
      %590 = arith.addf %583, %589 : vector<8x128xf32>
      %c8_252 = arith.constant 8 : index
      %c0_253 = arith.constant 0 : index
      %c0_254 = arith.constant 0 : index
      %591 = vector.load %arg1[%c8_252, %c0_253, %c0_254] : memref<24x8x128xf32, #tpu.memory_space<vmem>>, vector<1x8x128xf32>
      %592 = vector.shape_cast %591 : vector<1x8x128xf32> to vector<8x128xf32>
      %593 = vector.extract_strided_slice %531 {offsets = [0, 0], sizes = [1, 128], strides = [1, 1]} : vector<8x128xf32> to vector<1x128xf32>
      %594 = vector.shape_cast %593 : vector<1x128xf32> to vector<1x128xf32>
      %595 = vector.broadcast %594 : vector<1x128xf32> to vector<8x128xf32>
      %596 = arith.mulf %592, %595 : vector<8x128xf32>
      %597 = arith.addf %590, %596 : vector<8x128xf32>
      %c9_255 = arith.constant 9 : index
      %c0_256 = arith.constant 0 : index
      %c0_257 = arith.constant 0 : index
      %598 = vector.load %arg1[%c9_255, %c0_256, %c0_257] : memref<24x8x128xf32, #tpu.memory_space<vmem>>, vector<1x8x128xf32>
      %599 = vector.shape_cast %598 : vector<1x8x128xf32> to vector<8x128xf32>
      %600 = vector.extract_strided_slice %531 {offsets = [1, 0], sizes = [1, 128], strides = [1, 1]} : vector<8x128xf32> to vector<1x128xf32>
      %601 = vector.shape_cast %600 : vector<1x128xf32> to vector<1x128xf32>
      %602 = vector.broadcast %601 : vector<1x128xf32> to vector<8x128xf32>
      %603 = arith.mulf %599, %602 : vector<8x128xf32>
      %604 = arith.addf %597, %603 : vector<8x128xf32>
      %c10_258 = arith.constant 10 : index
      %c0_259 = arith.constant 0 : index
      %c0_260 = arith.constant 0 : index
      %605 = vector.load %arg1[%c10_258, %c0_259, %c0_260] : memref<24x8x128xf32, #tpu.memory_space<vmem>>, vector<1x8x128xf32>
      %606 = vector.shape_cast %605 : vector<1x8x128xf32> to vector<8x128xf32>
      %607 = vector.extract_strided_slice %531 {offsets = [2, 0], sizes = [1, 128], strides = [1, 1]} : vector<8x128xf32> to vector<1x128xf32>
      %608 = vector.shape_cast %607 : vector<1x128xf32> to vector<1x128xf32>
      %609 = vector.broadcast %608 : vector<1x128xf32> to vector<8x128xf32>
      %610 = arith.mulf %606, %609 : vector<8x128xf32>
      %611 = arith.addf %604, %610 : vector<8x128xf32>
      %c11_261 = arith.constant 11 : index
      %c0_262 = arith.constant 0 : index
      %c0_263 = arith.constant 0 : index
      %612 = vector.load %arg1[%c11_261, %c0_262, %c0_263] : memref<24x8x128xf32, #tpu.memory_space<vmem>>, vector<1x8x128xf32>
      %613 = vector.shape_cast %612 : vector<1x8x128xf32> to vector<8x128xf32>
      %614 = vector.extract_strided_slice %531 {offsets = [3, 0], sizes = [1, 128], strides = [1, 1]} : vector<8x128xf32> to vector<1x128xf32>
      %615 = vector.shape_cast %614 : vector<1x128xf32> to vector<1x128xf32>
      %616 = vector.broadcast %615 : vector<1x128xf32> to vector<8x128xf32>
      %617 = arith.mulf %613, %616 : vector<8x128xf32>
      %618 = arith.addf %611, %617 : vector<8x128xf32>
      %c12_264 = arith.constant 12 : index
      %c0_265 = arith.constant 0 : index
      %c0_266 = arith.constant 0 : index
      %619 = vector.load %arg1[%c12_264, %c0_265, %c0_266] : memref<24x8x128xf32, #tpu.memory_space<vmem>>, vector<1x8x128xf32>
      %620 = vector.shape_cast %619 : vector<1x8x128xf32> to vector<8x128xf32>
      %621 = vector.extract_strided_slice %531 {offsets = [4, 0], sizes = [1, 128], strides = [1, 1]} : vector<8x128xf32> to vector<1x128xf32>
      %622 = vector.shape_cast %621 : vector<1x128xf32> to vector<1x128xf32>
      %623 = vector.broadcast %622 : vector<1x128xf32> to vector<8x128xf32>
      %624 = arith.mulf %620, %623 : vector<8x128xf32>
      %625 = arith.addf %618, %624 : vector<8x128xf32>
      %c13_267 = arith.constant 13 : index
      %c0_268 = arith.constant 0 : index
      %c0_269 = arith.constant 0 : index
      %626 = vector.load %arg1[%c13_267, %c0_268, %c0_269] : memref<24x8x128xf32, #tpu.memory_space<vmem>>, vector<1x8x128xf32>
      %627 = vector.shape_cast %626 : vector<1x8x128xf32> to vector<8x128xf32>
      %628 = vector.extract_strided_slice %531 {offsets = [5, 0], sizes = [1, 128], strides = [1, 1]} : vector<8x128xf32> to vector<1x128xf32>
      %629 = vector.shape_cast %628 : vector<1x128xf32> to vector<1x128xf32>
      %630 = vector.broadcast %629 : vector<1x128xf32> to vector<8x128xf32>
      %631 = arith.mulf %627, %630 : vector<8x128xf32>
      %632 = arith.addf %625, %631 : vector<8x128xf32>
      %c14_270 = arith.constant 14 : index
      %c0_271 = arith.constant 0 : index
      %c0_272 = arith.constant 0 : index
      %633 = vector.load %arg1[%c14_270, %c0_271, %c0_272] : memref<24x8x128xf32, #tpu.memory_space<vmem>>, vector<1x8x128xf32>
      %634 = vector.shape_cast %633 : vector<1x8x128xf32> to vector<8x128xf32>
      %635 = vector.extract_strided_slice %531 {offsets = [6, 0], sizes = [1, 128], strides = [1, 1]} : vector<8x128xf32> to vector<1x128xf32>
      %636 = vector.shape_cast %635 : vector<1x128xf32> to vector<1x128xf32>
      %637 = vector.broadcast %636 : vector<1x128xf32> to vector<8x128xf32>
      %638 = arith.mulf %634, %637 : vector<8x128xf32>
      %639 = arith.addf %632, %638 : vector<8x128xf32>
      %c15_273 = arith.constant 15 : index
      %c0_274 = arith.constant 0 : index
      %c0_275 = arith.constant 0 : index
      %640 = vector.load %arg1[%c15_273, %c0_274, %c0_275] : memref<24x8x128xf32, #tpu.memory_space<vmem>>, vector<1x8x128xf32>
      %641 = vector.shape_cast %640 : vector<1x8x128xf32> to vector<8x128xf32>
      %642 = vector.extract_strided_slice %531 {offsets = [7, 0], sizes = [1, 128], strides = [1, 1]} : vector<8x128xf32> to vector<1x128xf32>
      %643 = vector.shape_cast %642 : vector<1x128xf32> to vector<1x128xf32>
      %644 = vector.broadcast %643 : vector<1x128xf32> to vector<8x128xf32>
      %645 = arith.mulf %641, %644 : vector<8x128xf32>
      %646 = arith.addf %639, %645 : vector<8x128xf32>
      %c16_276 = arith.constant 16 : index
      %c0_277 = arith.constant 0 : index
      %c0_278 = arith.constant 0 : index
      %647 = vector.load %arg1[%c16_276, %c0_277, %c0_278] : memref<24x8x128xf32, #tpu.memory_space<vmem>>, vector<1x8x128xf32>
      %648 = vector.shape_cast %647 : vector<1x8x128xf32> to vector<8x128xf32>
      %649 = vector.extract_strided_slice %534 {offsets = [0, 0], sizes = [1, 128], strides = [1, 1]} : vector<8x128xf32> to vector<1x128xf32>
      %650 = vector.shape_cast %649 : vector<1x128xf32> to vector<1x128xf32>
      %651 = vector.broadcast %650 : vector<1x128xf32> to vector<8x128xf32>
      %652 = arith.mulf %648, %651 : vector<8x128xf32>
      %653 = arith.addf %646, %652 : vector<8x128xf32>
      %c17_279 = arith.constant 17 : index
      %c0_280 = arith.constant 0 : index
      %c0_281 = arith.constant 0 : index
      %654 = vector.load %arg1[%c17_279, %c0_280, %c0_281] : memref<24x8x128xf32, #tpu.memory_space<vmem>>, vector<1x8x128xf32>
      %655 = vector.shape_cast %654 : vector<1x8x128xf32> to vector<8x128xf32>
      %656 = vector.extract_strided_slice %534 {offsets = [1, 0], sizes = [1, 128], strides = [1, 1]} : vector<8x128xf32> to vector<1x128xf32>
      %657 = vector.shape_cast %656 : vector<1x128xf32> to vector<1x128xf32>
      %658 = vector.broadcast %657 : vector<1x128xf32> to vector<8x128xf32>
      %659 = arith.mulf %655, %658 : vector<8x128xf32>
      %660 = arith.addf %653, %659 : vector<8x128xf32>
      %c18_282 = arith.constant 18 : index
      %c0_283 = arith.constant 0 : index
      %c0_284 = arith.constant 0 : index
      %661 = vector.load %arg1[%c18_282, %c0_283, %c0_284] : memref<24x8x128xf32, #tpu.memory_space<vmem>>, vector<1x8x128xf32>
      %662 = vector.shape_cast %661 : vector<1x8x128xf32> to vector<8x128xf32>
      %663 = vector.extract_strided_slice %534 {offsets = [2, 0], sizes = [1, 128], strides = [1, 1]} : vector<8x128xf32> to vector<1x128xf32>
      %664 = vector.shape_cast %663 : vector<1x128xf32> to vector<1x128xf32>
      %665 = vector.broadcast %664 : vector<1x128xf32> to vector<8x128xf32>
      %666 = arith.mulf %662, %665 : vector<8x128xf32>
      %667 = arith.addf %660, %666 : vector<8x128xf32>
      %c19_285 = arith.constant 19 : index
      %c0_286 = arith.constant 0 : index
      %c0_287 = arith.constant 0 : index
      %668 = vector.load %arg1[%c19_285, %c0_286, %c0_287] : memref<24x8x128xf32, #tpu.memory_space<vmem>>, vector<1x8x128xf32>
      %669 = vector.shape_cast %668 : vector<1x8x128xf32> to vector<8x128xf32>
      %670 = vector.extract_strided_slice %534 {offsets = [3, 0], sizes = [1, 128], strides = [1, 1]} : vector<8x128xf32> to vector<1x128xf32>
      %671 = vector.shape_cast %670 : vector<1x128xf32> to vector<1x128xf32>
      %672 = vector.broadcast %671 : vector<1x128xf32> to vector<8x128xf32>
      %673 = arith.mulf %669, %672 : vector<8x128xf32>
      %674 = arith.addf %667, %673 : vector<8x128xf32>
      %c20_288 = arith.constant 20 : index
      %c0_289 = arith.constant 0 : index
      %c0_290 = arith.constant 0 : index
      %675 = vector.load %arg1[%c20_288, %c0_289, %c0_290] : memref<24x8x128xf32, #tpu.memory_space<vmem>>, vector<1x8x128xf32>
      %676 = vector.shape_cast %675 : vector<1x8x128xf32> to vector<8x128xf32>
      %677 = vector.extract_strided_slice %534 {offsets = [4, 0], sizes = [1, 128], strides = [1, 1]} : vector<8x128xf32> to vector<1x128xf32>
      %678 = vector.shape_cast %677 : vector<1x128xf32> to vector<1x128xf32>
      %679 = vector.broadcast %678 : vector<1x128xf32> to vector<8x128xf32>
      %680 = arith.mulf %676, %679 : vector<8x128xf32>
      %681 = arith.addf %674, %680 : vector<8x128xf32>
      %c21_291 = arith.constant 21 : index
      %c0_292 = arith.constant 0 : index
      %c0_293 = arith.constant 0 : index
      %682 = vector.load %arg1[%c21_291, %c0_292, %c0_293] : memref<24x8x128xf32, #tpu.memory_space<vmem>>, vector<1x8x128xf32>
      %683 = vector.shape_cast %682 : vector<1x8x128xf32> to vector<8x128xf32>
      %684 = vector.extract_strided_slice %534 {offsets = [5, 0], sizes = [1, 128], strides = [1, 1]} : vector<8x128xf32> to vector<1x128xf32>
      %685 = vector.shape_cast %684 : vector<1x128xf32> to vector<1x128xf32>
      %686 = vector.broadcast %685 : vector<1x128xf32> to vector<8x128xf32>
      %687 = arith.mulf %683, %686 : vector<8x128xf32>
      %688 = arith.addf %681, %687 : vector<8x128xf32>
      %c22_294 = arith.constant 22 : index
      %c0_295 = arith.constant 0 : index
      %c0_296 = arith.constant 0 : index
      %689 = vector.load %arg1[%c22_294, %c0_295, %c0_296] : memref<24x8x128xf32, #tpu.memory_space<vmem>>, vector<1x8x128xf32>
      %690 = vector.shape_cast %689 : vector<1x8x128xf32> to vector<8x128xf32>
      %691 = vector.extract_strided_slice %534 {offsets = [6, 0], sizes = [1, 128], strides = [1, 1]} : vector<8x128xf32> to vector<1x128xf32>
      %692 = vector.shape_cast %691 : vector<1x128xf32> to vector<1x128xf32>
      %693 = vector.broadcast %692 : vector<1x128xf32> to vector<8x128xf32>
      %694 = arith.mulf %690, %693 : vector<8x128xf32>
      %695 = arith.addf %688, %694 : vector<8x128xf32>
      %c23_297 = arith.constant 23 : index
      %c0_298 = arith.constant 0 : index
      %c0_299 = arith.constant 0 : index
      %696 = vector.load %arg1[%c23_297, %c0_298, %c0_299] : memref<24x8x128xf32, #tpu.memory_space<vmem>>, vector<1x8x128xf32>
      %697 = vector.shape_cast %696 : vector<1x8x128xf32> to vector<8x128xf32>
      %698 = vector.extract_strided_slice %534 {offsets = [7, 0], sizes = [1, 128], strides = [1, 1]} : vector<8x128xf32> to vector<1x128xf32>
      %699 = vector.shape_cast %698 : vector<1x128xf32> to vector<1x128xf32>
      %700 = vector.broadcast %699 : vector<1x128xf32> to vector<8x128xf32>
      %701 = arith.mulf %697, %700 : vector<8x128xf32>
      %702 = arith.addf %695, %701 : vector<8x128xf32>
      %703 = arith.subf %440, %702 : vector<8x128xf32>
      %704 = arith.subf %703, %440 : vector<8x128xf32>
      %705 = arith.addf %703, %704 : vector<8x128xf32>
      %706 = vector.extract_strided_slice %705 {offsets = [0, 0], sizes = [1, 128], strides = [1, 1]} : vector<8x128xf32> to vector<1x128xf32>
      %707 = vector.shape_cast %706 : vector<1x128xf32> to vector<1x128xf32>
      %708 = vector.broadcast %707 : vector<1x128xf32> to vector<8x128xf32>
      %c0_300 = arith.constant 0 : index
      %c0_301 = arith.constant 0 : index
      %c0_302 = arith.constant 0 : index
      %709 = vector.load %arg3[%c0_300, %c0_301, %c0_302] : memref<8x8x128xf32, #tpu.memory_space<vmem>>, vector<1x8x128xf32>
      %710 = vector.shape_cast %709 : vector<1x8x128xf32> to vector<8x128xf32>
      %711 = arith.mulf %710, %708 : vector<8x128xf32>
      %712 = arith.addf %1, %711 : vector<8x128xf32>
      %c0_303 = arith.constant 0 : index
      %c0_304 = arith.constant 0 : index
      %c0_305 = arith.constant 0 : index
      %713 = vector.load %arg4[%c0_303, %c0_304, %c0_305] : memref<8x8x128xf32, #tpu.memory_space<vmem>>, vector<1x8x128xf32>
      %714 = vector.shape_cast %713 : vector<1x8x128xf32> to vector<8x128xf32>
      %715 = arith.mulf %714, %708 : vector<8x128xf32>
      %716 = arith.addf %2, %715 : vector<8x128xf32>
      %717 = vector.extract_strided_slice %705 {offsets = [1, 0], sizes = [1, 128], strides = [1, 1]} : vector<8x128xf32> to vector<1x128xf32>
      %718 = vector.shape_cast %717 : vector<1x128xf32> to vector<1x128xf32>
      %719 = vector.broadcast %718 : vector<1x128xf32> to vector<8x128xf32>
      %c1_306 = arith.constant 1 : index
      %c0_307 = arith.constant 0 : index
      %c0_308 = arith.constant 0 : index
      %720 = vector.load %arg3[%c1_306, %c0_307, %c0_308] : memref<8x8x128xf32, #tpu.memory_space<vmem>>, vector<1x8x128xf32>
      %721 = vector.shape_cast %720 : vector<1x8x128xf32> to vector<8x128xf32>
      %722 = arith.mulf %721, %719 : vector<8x128xf32>
      %723 = arith.addf %712, %722 : vector<8x128xf32>
      %c1_309 = arith.constant 1 : index
      %c0_310 = arith.constant 0 : index
      %c0_311 = arith.constant 0 : index
      %724 = vector.load %arg4[%c1_309, %c0_310, %c0_311] : memref<8x8x128xf32, #tpu.memory_space<vmem>>, vector<1x8x128xf32>
      %725 = vector.shape_cast %724 : vector<1x8x128xf32> to vector<8x128xf32>
      %726 = arith.mulf %725, %719 : vector<8x128xf32>
      %727 = arith.addf %716, %726 : vector<8x128xf32>
      %728 = vector.extract_strided_slice %705 {offsets = [2, 0], sizes = [1, 128], strides = [1, 1]} : vector<8x128xf32> to vector<1x128xf32>
      %729 = vector.shape_cast %728 : vector<1x128xf32> to vector<1x128xf32>
      %730 = vector.broadcast %729 : vector<1x128xf32> to vector<8x128xf32>
      %c2_312 = arith.constant 2 : index
      %c0_313 = arith.constant 0 : index
      %c0_314 = arith.constant 0 : index
      %731 = vector.load %arg3[%c2_312, %c0_313, %c0_314] : memref<8x8x128xf32, #tpu.memory_space<vmem>>, vector<1x8x128xf32>
      %732 = vector.shape_cast %731 : vector<1x8x128xf32> to vector<8x128xf32>
      %733 = arith.mulf %732, %730 : vector<8x128xf32>
      %734 = arith.addf %723, %733 : vector<8x128xf32>
      %c2_315 = arith.constant 2 : index
      %c0_316 = arith.constant 0 : index
      %c0_317 = arith.constant 0 : index
      %735 = vector.load %arg4[%c2_315, %c0_316, %c0_317] : memref<8x8x128xf32, #tpu.memory_space<vmem>>, vector<1x8x128xf32>
      %736 = vector.shape_cast %735 : vector<1x8x128xf32> to vector<8x128xf32>
      %737 = arith.mulf %736, %730 : vector<8x128xf32>
      %738 = arith.addf %727, %737 : vector<8x128xf32>
      %739 = vector.extract_strided_slice %705 {offsets = [3, 0], sizes = [1, 128], strides = [1, 1]} : vector<8x128xf32> to vector<1x128xf32>
      %740 = vector.shape_cast %739 : vector<1x128xf32> to vector<1x128xf32>
      %741 = vector.broadcast %740 : vector<1x128xf32> to vector<8x128xf32>
      %c3_318 = arith.constant 3 : index
      %c0_319 = arith.constant 0 : index
      %c0_320 = arith.constant 0 : index
      %742 = vector.load %arg3[%c3_318, %c0_319, %c0_320] : memref<8x8x128xf32, #tpu.memory_space<vmem>>, vector<1x8x128xf32>
      %743 = vector.shape_cast %742 : vector<1x8x128xf32> to vector<8x128xf32>
      %744 = arith.mulf %743, %741 : vector<8x128xf32>
      %745 = arith.addf %734, %744 : vector<8x128xf32>
      %c3_321 = arith.constant 3 : index
      %c0_322 = arith.constant 0 : index
      %c0_323 = arith.constant 0 : index
      %746 = vector.load %arg4[%c3_321, %c0_322, %c0_323] : memref<8x8x128xf32, #tpu.memory_space<vmem>>, vector<1x8x128xf32>
      %747 = vector.shape_cast %746 : vector<1x8x128xf32> to vector<8x128xf32>
      %748 = arith.mulf %747, %741 : vector<8x128xf32>
      %749 = arith.addf %738, %748 : vector<8x128xf32>
      %750 = vector.extract_strided_slice %705 {offsets = [4, 0], sizes = [1, 128], strides = [1, 1]} : vector<8x128xf32> to vector<1x128xf32>
      %751 = vector.shape_cast %750 : vector<1x128xf32> to vector<1x128xf32>
      %752 = vector.broadcast %751 : vector<1x128xf32> to vector<8x128xf32>
      %c4_324 = arith.constant 4 : index
      %c0_325 = arith.constant 0 : index
      %c0_326 = arith.constant 0 : index
      %753 = vector.load %arg3[%c4_324, %c0_325, %c0_326] : memref<8x8x128xf32, #tpu.memory_space<vmem>>, vector<1x8x128xf32>
      %754 = vector.shape_cast %753 : vector<1x8x128xf32> to vector<8x128xf32>
      %755 = arith.mulf %754, %752 : vector<8x128xf32>
      %756 = arith.addf %745, %755 : vector<8x128xf32>
      %c4_327 = arith.constant 4 : index
      %c0_328 = arith.constant 0 : index
      %c0_329 = arith.constant 0 : index
      %757 = vector.load %arg4[%c4_327, %c0_328, %c0_329] : memref<8x8x128xf32, #tpu.memory_space<vmem>>, vector<1x8x128xf32>
      %758 = vector.shape_cast %757 : vector<1x8x128xf32> to vector<8x128xf32>
      %759 = arith.mulf %758, %752 : vector<8x128xf32>
      %760 = arith.addf %749, %759 : vector<8x128xf32>
      %761 = vector.extract_strided_slice %705 {offsets = [5, 0], sizes = [1, 128], strides = [1, 1]} : vector<8x128xf32> to vector<1x128xf32>
      %762 = vector.shape_cast %761 : vector<1x128xf32> to vector<1x128xf32>
      %763 = vector.broadcast %762 : vector<1x128xf32> to vector<8x128xf32>
      %c5_330 = arith.constant 5 : index
      %c0_331 = arith.constant 0 : index
      %c0_332 = arith.constant 0 : index
      %764 = vector.load %arg3[%c5_330, %c0_331, %c0_332] : memref<8x8x128xf32, #tpu.memory_space<vmem>>, vector<1x8x128xf32>
      %765 = vector.shape_cast %764 : vector<1x8x128xf32> to vector<8x128xf32>
      %766 = arith.mulf %765, %763 : vector<8x128xf32>
      %767 = arith.addf %756, %766 : vector<8x128xf32>
      %c5_333 = arith.constant 5 : index
      %c0_334 = arith.constant 0 : index
      %c0_335 = arith.constant 0 : index
      %768 = vector.load %arg4[%c5_333, %c0_334, %c0_335] : memref<8x8x128xf32, #tpu.memory_space<vmem>>, vector<1x8x128xf32>
      %769 = vector.shape_cast %768 : vector<1x8x128xf32> to vector<8x128xf32>
      %770 = arith.mulf %769, %763 : vector<8x128xf32>
      %771 = arith.addf %760, %770 : vector<8x128xf32>
      %772 = vector.extract_strided_slice %705 {offsets = [6, 0], sizes = [1, 128], strides = [1, 1]} : vector<8x128xf32> to vector<1x128xf32>
      %773 = vector.shape_cast %772 : vector<1x128xf32> to vector<1x128xf32>
      %774 = vector.broadcast %773 : vector<1x128xf32> to vector<8x128xf32>
      %c6_336 = arith.constant 6 : index
      %c0_337 = arith.constant 0 : index
      %c0_338 = arith.constant 0 : index
      %775 = vector.load %arg3[%c6_336, %c0_337, %c0_338] : memref<8x8x128xf32, #tpu.memory_space<vmem>>, vector<1x8x128xf32>
      %776 = vector.shape_cast %775 : vector<1x8x128xf32> to vector<8x128xf32>
      %777 = arith.mulf %776, %774 : vector<8x128xf32>
      %778 = arith.addf %767, %777 : vector<8x128xf32>
      %c6_339 = arith.constant 6 : index
      %c0_340 = arith.constant 0 : index
      %c0_341 = arith.constant 0 : index
      %779 = vector.load %arg4[%c6_339, %c0_340, %c0_341] : memref<8x8x128xf32, #tpu.memory_space<vmem>>, vector<1x8x128xf32>
      %780 = vector.shape_cast %779 : vector<1x8x128xf32> to vector<8x128xf32>
      %781 = arith.mulf %780, %774 : vector<8x128xf32>
      %782 = arith.addf %771, %781 : vector<8x128xf32>
      %783 = vector.extract_strided_slice %705 {offsets = [7, 0], sizes = [1, 128], strides = [1, 1]} : vector<8x128xf32> to vector<1x128xf32>
      %784 = vector.shape_cast %783 : vector<1x128xf32> to vector<1x128xf32>
      %785 = vector.broadcast %784 : vector<1x128xf32> to vector<8x128xf32>
      %c7_342 = arith.constant 7 : index
      %c0_343 = arith.constant 0 : index
      %c0_344 = arith.constant 0 : index
      %786 = vector.load %arg3[%c7_342, %c0_343, %c0_344] : memref<8x8x128xf32, #tpu.memory_space<vmem>>, vector<1x8x128xf32>
      %787 = vector.shape_cast %786 : vector<1x8x128xf32> to vector<8x128xf32>
      %788 = arith.mulf %787, %785 : vector<8x128xf32>
      %789 = arith.addf %778, %788 : vector<8x128xf32>
      %c7_345 = arith.constant 7 : index
      %c0_346 = arith.constant 0 : index
      %c0_347 = arith.constant 0 : index
      %790 = vector.load %arg4[%c7_345, %c0_346, %c0_347] : memref<8x8x128xf32, #tpu.memory_space<vmem>>, vector<1x8x128xf32>
      %791 = vector.shape_cast %790 : vector<1x8x128xf32> to vector<8x128xf32>
      %792 = arith.mulf %791, %785 : vector<8x128xf32>
      %793 = arith.addf %782, %792 : vector<8x128xf32>
      %794 = arith.addf %531, %789 : vector<8x128xf32>
      %795 = arith.addf %534, %793 : vector<8x128xf32>
      %cst_348 = arith.constant 0.000000e+00 : f32
      %796 = vector.broadcast %cst_348 : f32 to vector<8x128xf32>
      %797 = arith.maximumf %795, %796 : vector<8x128xf32>
      %c0_349 = arith.constant 0 : index
      %c0_350 = arith.constant 0 : index
      %c0_351 = arith.constant 0 : index
      %798 = vector.load %arg1[%c0_349, %c0_350, %c0_351] : memref<24x8x128xf32, #tpu.memory_space<vmem>>, vector<1x8x128xf32>
      %799 = vector.shape_cast %798 : vector<1x8x128xf32> to vector<8x128xf32>
      %800 = vector.extract_strided_slice %703 {offsets = [0, 0], sizes = [1, 128], strides = [1, 1]} : vector<8x128xf32> to vector<1x128xf32>
      %801 = vector.shape_cast %800 : vector<1x128xf32> to vector<1x128xf32>
      %802 = vector.broadcast %801 : vector<1x128xf32> to vector<8x128xf32>
      %803 = arith.mulf %799, %802 : vector<8x128xf32>
      %804 = arith.addf %0, %803 : vector<8x128xf32>
      %c1_352 = arith.constant 1 : index
      %c0_353 = arith.constant 0 : index
      %c0_354 = arith.constant 0 : index
      %805 = vector.load %arg1[%c1_352, %c0_353, %c0_354] : memref<24x8x128xf32, #tpu.memory_space<vmem>>, vector<1x8x128xf32>
      %806 = vector.shape_cast %805 : vector<1x8x128xf32> to vector<8x128xf32>
      %807 = vector.extract_strided_slice %703 {offsets = [1, 0], sizes = [1, 128], strides = [1, 1]} : vector<8x128xf32> to vector<1x128xf32>
      %808 = vector.shape_cast %807 : vector<1x128xf32> to vector<1x128xf32>
      %809 = vector.broadcast %808 : vector<1x128xf32> to vector<8x128xf32>
      %810 = arith.mulf %806, %809 : vector<8x128xf32>
      %811 = arith.addf %804, %810 : vector<8x128xf32>
      %c2_355 = arith.constant 2 : index
      %c0_356 = arith.constant 0 : index
      %c0_357 = arith.constant 0 : index
      %812 = vector.load %arg1[%c2_355, %c0_356, %c0_357] : memref<24x8x128xf32, #tpu.memory_space<vmem>>, vector<1x8x128xf32>
      %813 = vector.shape_cast %812 : vector<1x8x128xf32> to vector<8x128xf32>
      %814 = vector.extract_strided_slice %703 {offsets = [2, 0], sizes = [1, 128], strides = [1, 1]} : vector<8x128xf32> to vector<1x128xf32>
      %815 = vector.shape_cast %814 : vector<1x128xf32> to vector<1x128xf32>
      %816 = vector.broadcast %815 : vector<1x128xf32> to vector<8x128xf32>
      %817 = arith.mulf %813, %816 : vector<8x128xf32>
      %818 = arith.addf %811, %817 : vector<8x128xf32>
      %c3_358 = arith.constant 3 : index
      %c0_359 = arith.constant 0 : index
      %c0_360 = arith.constant 0 : index
      %819 = vector.load %arg1[%c3_358, %c0_359, %c0_360] : memref<24x8x128xf32, #tpu.memory_space<vmem>>, vector<1x8x128xf32>
      %820 = vector.shape_cast %819 : vector<1x8x128xf32> to vector<8x128xf32>
      %821 = vector.extract_strided_slice %703 {offsets = [3, 0], sizes = [1, 128], strides = [1, 1]} : vector<8x128xf32> to vector<1x128xf32>
      %822 = vector.shape_cast %821 : vector<1x128xf32> to vector<1x128xf32>
      %823 = vector.broadcast %822 : vector<1x128xf32> to vector<8x128xf32>
      %824 = arith.mulf %820, %823 : vector<8x128xf32>
      %825 = arith.addf %818, %824 : vector<8x128xf32>
      %c4_361 = arith.constant 4 : index
      %c0_362 = arith.constant 0 : index
      %c0_363 = arith.constant 0 : index
      %826 = vector.load %arg1[%c4_361, %c0_362, %c0_363] : memref<24x8x128xf32, #tpu.memory_space<vmem>>, vector<1x8x128xf32>
      %827 = vector.shape_cast %826 : vector<1x8x128xf32> to vector<8x128xf32>
      %828 = vector.extract_strided_slice %703 {offsets = [4, 0], sizes = [1, 128], strides = [1, 1]} : vector<8x128xf32> to vector<1x128xf32>
      %829 = vector.shape_cast %828 : vector<1x128xf32> to vector<1x128xf32>
      %830 = vector.broadcast %829 : vector<1x128xf32> to vector<8x128xf32>
      %831 = arith.mulf %827, %830 : vector<8x128xf32>
      %832 = arith.addf %825, %831 : vector<8x128xf32>
      %c5_364 = arith.constant 5 : index
      %c0_365 = arith.constant 0 : index
      %c0_366 = arith.constant 0 : index
      %833 = vector.load %arg1[%c5_364, %c0_365, %c0_366] : memref<24x8x128xf32, #tpu.memory_space<vmem>>, vector<1x8x128xf32>
      %834 = vector.shape_cast %833 : vector<1x8x128xf32> to vector<8x128xf32>
      %835 = vector.extract_strided_slice %703 {offsets = [5, 0], sizes = [1, 128], strides = [1, 1]} : vector<8x128xf32> to vector<1x128xf32>
      %836 = vector.shape_cast %835 : vector<1x128xf32> to vector<1x128xf32>
      %837 = vector.broadcast %836 : vector<1x128xf32> to vector<8x128xf32>
      %838 = arith.mulf %834, %837 : vector<8x128xf32>
      %839 = arith.addf %832, %838 : vector<8x128xf32>
      %c6_367 = arith.constant 6 : index
      %c0_368 = arith.constant 0 : index
      %c0_369 = arith.constant 0 : index
      %840 = vector.load %arg1[%c6_367, %c0_368, %c0_369] : memref<24x8x128xf32, #tpu.memory_space<vmem>>, vector<1x8x128xf32>
      %841 = vector.shape_cast %840 : vector<1x8x128xf32> to vector<8x128xf32>
      %842 = vector.extract_strided_slice %703 {offsets = [6, 0], sizes = [1, 128], strides = [1, 1]} : vector<8x128xf32> to vector<1x128xf32>
      %843 = vector.shape_cast %842 : vector<1x128xf32> to vector<1x128xf32>
      %844 = vector.broadcast %843 : vector<1x128xf32> to vector<8x128xf32>
      %845 = arith.mulf %841, %844 : vector<8x128xf32>
      %846 = arith.addf %839, %845 : vector<8x128xf32>
      %c7_370 = arith.constant 7 : index
      %c0_371 = arith.constant 0 : index
      %c0_372 = arith.constant 0 : index
      %847 = vector.load %arg1[%c7_370, %c0_371, %c0_372] : memref<24x8x128xf32, #tpu.memory_space<vmem>>, vector<1x8x128xf32>
      %848 = vector.shape_cast %847 : vector<1x8x128xf32> to vector<8x128xf32>
      %849 = vector.extract_strided_slice %703 {offsets = [7, 0], sizes = [1, 128], strides = [1, 1]} : vector<8x128xf32> to vector<1x128xf32>
      %850 = vector.shape_cast %849 : vector<1x128xf32> to vector<1x128xf32>
      %851 = vector.broadcast %850 : vector<1x128xf32> to vector<8x128xf32>
      %852 = arith.mulf %848, %851 : vector<8x128xf32>
      %853 = arith.addf %846, %852 : vector<8x128xf32>
      %c8_373 = arith.constant 8 : index
      %c0_374 = arith.constant 0 : index
      %c0_375 = arith.constant 0 : index
      %854 = vector.load %arg1[%c8_373, %c0_374, %c0_375] : memref<24x8x128xf32, #tpu.memory_space<vmem>>, vector<1x8x128xf32>
      %855 = vector.shape_cast %854 : vector<1x8x128xf32> to vector<8x128xf32>
      %856 = vector.extract_strided_slice %794 {offsets = [0, 0], sizes = [1, 128], strides = [1, 1]} : vector<8x128xf32> to vector<1x128xf32>
      %857 = vector.shape_cast %856 : vector<1x128xf32> to vector<1x128xf32>
      %858 = vector.broadcast %857 : vector<1x128xf32> to vector<8x128xf32>
      %859 = arith.mulf %855, %858 : vector<8x128xf32>
      %860 = arith.addf %853, %859 : vector<8x128xf32>
      %c9_376 = arith.constant 9 : index
      %c0_377 = arith.constant 0 : index
      %c0_378 = arith.constant 0 : index
      %861 = vector.load %arg1[%c9_376, %c0_377, %c0_378] : memref<24x8x128xf32, #tpu.memory_space<vmem>>, vector<1x8x128xf32>
      %862 = vector.shape_cast %861 : vector<1x8x128xf32> to vector<8x128xf32>
      %863 = vector.extract_strided_slice %794 {offsets = [1, 0], sizes = [1, 128], strides = [1, 1]} : vector<8x128xf32> to vector<1x128xf32>
      %864 = vector.shape_cast %863 : vector<1x128xf32> to vector<1x128xf32>
      %865 = vector.broadcast %864 : vector<1x128xf32> to vector<8x128xf32>
      %866 = arith.mulf %862, %865 : vector<8x128xf32>
      %867 = arith.addf %860, %866 : vector<8x128xf32>
      %c10_379 = arith.constant 10 : index
      %c0_380 = arith.constant 0 : index
      %c0_381 = arith.constant 0 : index
      %868 = vector.load %arg1[%c10_379, %c0_380, %c0_381] : memref<24x8x128xf32, #tpu.memory_space<vmem>>, vector<1x8x128xf32>
      %869 = vector.shape_cast %868 : vector<1x8x128xf32> to vector<8x128xf32>
      %870 = vector.extract_strided_slice %794 {offsets = [2, 0], sizes = [1, 128], strides = [1, 1]} : vector<8x128xf32> to vector<1x128xf32>
      %871 = vector.shape_cast %870 : vector<1x128xf32> to vector<1x128xf32>
      %872 = vector.broadcast %871 : vector<1x128xf32> to vector<8x128xf32>
      %873 = arith.mulf %869, %872 : vector<8x128xf32>
      %874 = arith.addf %867, %873 : vector<8x128xf32>
      %c11_382 = arith.constant 11 : index
      %c0_383 = arith.constant 0 : index
      %c0_384 = arith.constant 0 : index
      %875 = vector.load %arg1[%c11_382, %c0_383, %c0_384] : memref<24x8x128xf32, #tpu.memory_space<vmem>>, vector<1x8x128xf32>
      %876 = vector.shape_cast %875 : vector<1x8x128xf32> to vector<8x128xf32>
      %877 = vector.extract_strided_slice %794 {offsets = [3, 0], sizes = [1, 128], strides = [1, 1]} : vector<8x128xf32> to vector<1x128xf32>
      %878 = vector.shape_cast %877 : vector<1x128xf32> to vector<1x128xf32>
      %879 = vector.broadcast %878 : vector<1x128xf32> to vector<8x128xf32>
      %880 = arith.mulf %876, %879 : vector<8x128xf32>
      %881 = arith.addf %874, %880 : vector<8x128xf32>
      %c12_385 = arith.constant 12 : index
      %c0_386 = arith.constant 0 : index
      %c0_387 = arith.constant 0 : index
      %882 = vector.load %arg1[%c12_385, %c0_386, %c0_387] : memref<24x8x128xf32, #tpu.memory_space<vmem>>, vector<1x8x128xf32>
      %883 = vector.shape_cast %882 : vector<1x8x128xf32> to vector<8x128xf32>
      %884 = vector.extract_strided_slice %794 {offsets = [4, 0], sizes = [1, 128], strides = [1, 1]} : vector<8x128xf32> to vector<1x128xf32>
      %885 = vector.shape_cast %884 : vector<1x128xf32> to vector<1x128xf32>
      %886 = vector.broadcast %885 : vector<1x128xf32> to vector<8x128xf32>
      %887 = arith.mulf %883, %886 : vector<8x128xf32>
      %888 = arith.addf %881, %887 : vector<8x128xf32>
      %c13_388 = arith.constant 13 : index
      %c0_389 = arith.constant 0 : index
      %c0_390 = arith.constant 0 : index
      %889 = vector.load %arg1[%c13_388, %c0_389, %c0_390] : memref<24x8x128xf32, #tpu.memory_space<vmem>>, vector<1x8x128xf32>
      %890 = vector.shape_cast %889 : vector<1x8x128xf32> to vector<8x128xf32>
      %891 = vector.extract_strided_slice %794 {offsets = [5, 0], sizes = [1, 128], strides = [1, 1]} : vector<8x128xf32> to vector<1x128xf32>
      %892 = vector.shape_cast %891 : vector<1x128xf32> to vector<1x128xf32>
      %893 = vector.broadcast %892 : vector<1x128xf32> to vector<8x128xf32>
      %894 = arith.mulf %890, %893 : vector<8x128xf32>
      %895 = arith.addf %888, %894 : vector<8x128xf32>
      %c14_391 = arith.constant 14 : index
      %c0_392 = arith.constant 0 : index
      %c0_393 = arith.constant 0 : index
      %896 = vector.load %arg1[%c14_391, %c0_392, %c0_393] : memref<24x8x128xf32, #tpu.memory_space<vmem>>, vector<1x8x128xf32>
      %897 = vector.shape_cast %896 : vector<1x8x128xf32> to vector<8x128xf32>
      %898 = vector.extract_strided_slice %794 {offsets = [6, 0], sizes = [1, 128], strides = [1, 1]} : vector<8x128xf32> to vector<1x128xf32>
      %899 = vector.shape_cast %898 : vector<1x128xf32> to vector<1x128xf32>
      %900 = vector.broadcast %899 : vector<1x128xf32> to vector<8x128xf32>
      %901 = arith.mulf %897, %900 : vector<8x128xf32>
      %902 = arith.addf %895, %901 : vector<8x128xf32>
      %c15_394 = arith.constant 15 : index
      %c0_395 = arith.constant 0 : index
      %c0_396 = arith.constant 0 : index
      %903 = vector.load %arg1[%c15_394, %c0_395, %c0_396] : memref<24x8x128xf32, #tpu.memory_space<vmem>>, vector<1x8x128xf32>
      %904 = vector.shape_cast %903 : vector<1x8x128xf32> to vector<8x128xf32>
      %905 = vector.extract_strided_slice %794 {offsets = [7, 0], sizes = [1, 128], strides = [1, 1]} : vector<8x128xf32> to vector<1x128xf32>
      %906 = vector.shape_cast %905 : vector<1x128xf32> to vector<1x128xf32>
      %907 = vector.broadcast %906 : vector<1x128xf32> to vector<8x128xf32>
      %908 = arith.mulf %904, %907 : vector<8x128xf32>
      %909 = arith.addf %902, %908 : vector<8x128xf32>
      %c16_397 = arith.constant 16 : index
      %c0_398 = arith.constant 0 : index
      %c0_399 = arith.constant 0 : index
      %910 = vector.load %arg1[%c16_397, %c0_398, %c0_399] : memref<24x8x128xf32, #tpu.memory_space<vmem>>, vector<1x8x128xf32>
      %911 = vector.shape_cast %910 : vector<1x8x128xf32> to vector<8x128xf32>
      %912 = vector.extract_strided_slice %797 {offsets = [0, 0], sizes = [1, 128], strides = [1, 1]} : vector<8x128xf32> to vector<1x128xf32>
      %913 = vector.shape_cast %912 : vector<1x128xf32> to vector<1x128xf32>
      %914 = vector.broadcast %913 : vector<1x128xf32> to vector<8x128xf32>
      %915 = arith.mulf %911, %914 : vector<8x128xf32>
      %916 = arith.addf %909, %915 : vector<8x128xf32>
      %c17_400 = arith.constant 17 : index
      %c0_401 = arith.constant 0 : index
      %c0_402 = arith.constant 0 : index
      %917 = vector.load %arg1[%c17_400, %c0_401, %c0_402] : memref<24x8x128xf32, #tpu.memory_space<vmem>>, vector<1x8x128xf32>
      %918 = vector.shape_cast %917 : vector<1x8x128xf32> to vector<8x128xf32>
      %919 = vector.extract_strided_slice %797 {offsets = [1, 0], sizes = [1, 128], strides = [1, 1]} : vector<8x128xf32> to vector<1x128xf32>
      %920 = vector.shape_cast %919 : vector<1x128xf32> to vector<1x128xf32>
      %921 = vector.broadcast %920 : vector<1x128xf32> to vector<8x128xf32>
      %922 = arith.mulf %918, %921 : vector<8x128xf32>
      %923 = arith.addf %916, %922 : vector<8x128xf32>
      %c18_403 = arith.constant 18 : index
      %c0_404 = arith.constant 0 : index
      %c0_405 = arith.constant 0 : index
      %924 = vector.load %arg1[%c18_403, %c0_404, %c0_405] : memref<24x8x128xf32, #tpu.memory_space<vmem>>, vector<1x8x128xf32>
      %925 = vector.shape_cast %924 : vector<1x8x128xf32> to vector<8x128xf32>
      %926 = vector.extract_strided_slice %797 {offsets = [2, 0], sizes = [1, 128], strides = [1, 1]} : vector<8x128xf32> to vector<1x128xf32>
      %927 = vector.shape_cast %926 : vector<1x128xf32> to vector<1x128xf32>
      %928 = vector.broadcast %927 : vector<1x128xf32> to vector<8x128xf32>
      %929 = arith.mulf %925, %928 : vector<8x128xf32>
      %930 = arith.addf %923, %929 : vector<8x128xf32>
      %c19_406 = arith.constant 19 : index
      %c0_407 = arith.constant 0 : index
      %c0_408 = arith.constant 0 : index
      %931 = vector.load %arg1[%c19_406, %c0_407, %c0_408] : memref<24x8x128xf32, #tpu.memory_space<vmem>>, vector<1x8x128xf32>
      %932 = vector.shape_cast %931 : vector<1x8x128xf32> to vector<8x128xf32>
      %933 = vector.extract_strided_slice %797 {offsets = [3, 0], sizes = [1, 128], strides = [1, 1]} : vector<8x128xf32> to vector<1x128xf32>
      %934 = vector.shape_cast %933 : vector<1x128xf32> to vector<1x128xf32>
      %935 = vector.broadcast %934 : vector<1x128xf32> to vector<8x128xf32>
      %936 = arith.mulf %932, %935 : vector<8x128xf32>
      %937 = arith.addf %930, %936 : vector<8x128xf32>
      %c20_409 = arith.constant 20 : index
      %c0_410 = arith.constant 0 : index
      %c0_411 = arith.constant 0 : index
      %938 = vector.load %arg1[%c20_409, %c0_410, %c0_411] : memref<24x8x128xf32, #tpu.memory_space<vmem>>, vector<1x8x128xf32>
      %939 = vector.shape_cast %938 : vector<1x8x128xf32> to vector<8x128xf32>
      %940 = vector.extract_strided_slice %797 {offsets = [4, 0], sizes = [1, 128], strides = [1, 1]} : vector<8x128xf32> to vector<1x128xf32>
      %941 = vector.shape_cast %940 : vector<1x128xf32> to vector<1x128xf32>
      %942 = vector.broadcast %941 : vector<1x128xf32> to vector<8x128xf32>
      %943 = arith.mulf %939, %942 : vector<8x128xf32>
      %944 = arith.addf %937, %943 : vector<8x128xf32>
      %c21_412 = arith.constant 21 : index
      %c0_413 = arith.constant 0 : index
      %c0_414 = arith.constant 0 : index
      %945 = vector.load %arg1[%c21_412, %c0_413, %c0_414] : memref<24x8x128xf32, #tpu.memory_space<vmem>>, vector<1x8x128xf32>
      %946 = vector.shape_cast %945 : vector<1x8x128xf32> to vector<8x128xf32>
      %947 = vector.extract_strided_slice %797 {offsets = [5, 0], sizes = [1, 128], strides = [1, 1]} : vector<8x128xf32> to vector<1x128xf32>
      %948 = vector.shape_cast %947 : vector<1x128xf32> to vector<1x128xf32>
      %949 = vector.broadcast %948 : vector<1x128xf32> to vector<8x128xf32>
      %950 = arith.mulf %946, %949 : vector<8x128xf32>
      %951 = arith.addf %944, %950 : vector<8x128xf32>
      %c22_415 = arith.constant 22 : index
      %c0_416 = arith.constant 0 : index
      %c0_417 = arith.constant 0 : index
      %952 = vector.load %arg1[%c22_415, %c0_416, %c0_417] : memref<24x8x128xf32, #tpu.memory_space<vmem>>, vector<1x8x128xf32>
      %953 = vector.shape_cast %952 : vector<1x8x128xf32> to vector<8x128xf32>
      %954 = vector.extract_strided_slice %797 {offsets = [6, 0], sizes = [1, 128], strides = [1, 1]} : vector<8x128xf32> to vector<1x128xf32>
      %955 = vector.shape_cast %954 : vector<1x128xf32> to vector<1x128xf32>
      %956 = vector.broadcast %955 : vector<1x128xf32> to vector<8x128xf32>
      %957 = arith.mulf %953, %956 : vector<8x128xf32>
      %958 = arith.addf %951, %957 : vector<8x128xf32>
      %c23_418 = arith.constant 23 : index
      %c0_419 = arith.constant 0 : index
      %c0_420 = arith.constant 0 : index
      %959 = vector.load %arg1[%c23_418, %c0_419, %c0_420] : memref<24x8x128xf32, #tpu.memory_space<vmem>>, vector<1x8x128xf32>
      %960 = vector.shape_cast %959 : vector<1x8x128xf32> to vector<8x128xf32>
      %961 = vector.extract_strided_slice %797 {offsets = [7, 0], sizes = [1, 128], strides = [1, 1]} : vector<8x128xf32> to vector<1x128xf32>
      %962 = vector.shape_cast %961 : vector<1x128xf32> to vector<1x128xf32>
      %963 = vector.broadcast %962 : vector<1x128xf32> to vector<8x128xf32>
      %964 = arith.mulf %960, %963 : vector<8x128xf32>
      %965 = arith.addf %958, %964 : vector<8x128xf32>
      %966 = arith.subf %703, %965 : vector<8x128xf32>
      %967 = arith.subf %966, %703 : vector<8x128xf32>
      %968 = arith.addf %966, %967 : vector<8x128xf32>
      %969 = vector.extract_strided_slice %968 {offsets = [0, 0], sizes = [1, 128], strides = [1, 1]} : vector<8x128xf32> to vector<1x128xf32>
      %970 = vector.shape_cast %969 : vector<1x128xf32> to vector<1x128xf32>
      %971 = vector.broadcast %970 : vector<1x128xf32> to vector<8x128xf32>
      %c0_421 = arith.constant 0 : index
      %c0_422 = arith.constant 0 : index
      %c0_423 = arith.constant 0 : index
      %972 = vector.load %arg3[%c0_421, %c0_422, %c0_423] : memref<8x8x128xf32, #tpu.memory_space<vmem>>, vector<1x8x128xf32>
      %973 = vector.shape_cast %972 : vector<1x8x128xf32> to vector<8x128xf32>
      %974 = arith.mulf %973, %971 : vector<8x128xf32>
      %975 = arith.addf %1, %974 : vector<8x128xf32>
      %c0_424 = arith.constant 0 : index
      %c0_425 = arith.constant 0 : index
      %c0_426 = arith.constant 0 : index
      %976 = vector.load %arg4[%c0_424, %c0_425, %c0_426] : memref<8x8x128xf32, #tpu.memory_space<vmem>>, vector<1x8x128xf32>
      %977 = vector.shape_cast %976 : vector<1x8x128xf32> to vector<8x128xf32>
      %978 = arith.mulf %977, %971 : vector<8x128xf32>
      %979 = arith.addf %2, %978 : vector<8x128xf32>
      %980 = vector.extract_strided_slice %968 {offsets = [1, 0], sizes = [1, 128], strides = [1, 1]} : vector<8x128xf32> to vector<1x128xf32>
      %981 = vector.shape_cast %980 : vector<1x128xf32> to vector<1x128xf32>
      %982 = vector.broadcast %981 : vector<1x128xf32> to vector<8x128xf32>
      %c1_427 = arith.constant 1 : index
      %c0_428 = arith.constant 0 : index
      %c0_429 = arith.constant 0 : index
      %983 = vector.load %arg3[%c1_427, %c0_428, %c0_429] : memref<8x8x128xf32, #tpu.memory_space<vmem>>, vector<1x8x128xf32>
      %984 = vector.shape_cast %983 : vector<1x8x128xf32> to vector<8x128xf32>
      %985 = arith.mulf %984, %982 : vector<8x128xf32>
      %986 = arith.addf %975, %985 : vector<8x128xf32>
      %c1_430 = arith.constant 1 : index
      %c0_431 = arith.constant 0 : index
      %c0_432 = arith.constant 0 : index
      %987 = vector.load %arg4[%c1_430, %c0_431, %c0_432] : memref<8x8x128xf32, #tpu.memory_space<vmem>>, vector<1x8x128xf32>
      %988 = vector.shape_cast %987 : vector<1x8x128xf32> to vector<8x128xf32>
      %989 = arith.mulf %988, %982 : vector<8x128xf32>
      %990 = arith.addf %979, %989 : vector<8x128xf32>
      %991 = vector.extract_strided_slice %968 {offsets = [2, 0], sizes = [1, 128], strides = [1, 1]} : vector<8x128xf32> to vector<1x128xf32>
      %992 = vector.shape_cast %991 : vector<1x128xf32> to vector<1x128xf32>
      %993 = vector.broadcast %992 : vector<1x128xf32> to vector<8x128xf32>
      %c2_433 = arith.constant 2 : index
      %c0_434 = arith.constant 0 : index
      %c0_435 = arith.constant 0 : index
      %994 = vector.load %arg3[%c2_433, %c0_434, %c0_435] : memref<8x8x128xf32, #tpu.memory_space<vmem>>, vector<1x8x128xf32>
      %995 = vector.shape_cast %994 : vector<1x8x128xf32> to vector<8x128xf32>
      %996 = arith.mulf %995, %993 : vector<8x128xf32>
      %997 = arith.addf %986, %996 : vector<8x128xf32>
      %c2_436 = arith.constant 2 : index
      %c0_437 = arith.constant 0 : index
      %c0_438 = arith.constant 0 : index
      %998 = vector.load %arg4[%c2_436, %c0_437, %c0_438] : memref<8x8x128xf32, #tpu.memory_space<vmem>>, vector<1x8x128xf32>
      %999 = vector.shape_cast %998 : vector<1x8x128xf32> to vector<8x128xf32>
      %1000 = arith.mulf %999, %993 : vector<8x128xf32>
      %1001 = arith.addf %990, %1000 : vector<8x128xf32>
      %1002 = vector.extract_strided_slice %968 {offsets = [3, 0], sizes = [1, 128], strides = [1, 1]} : vector<8x128xf32> to vector<1x128xf32>
      %1003 = vector.shape_cast %1002 : vector<1x128xf32> to vector<1x128xf32>
      %1004 = vector.broadcast %1003 : vector<1x128xf32> to vector<8x128xf32>
      %c3_439 = arith.constant 3 : index
      %c0_440 = arith.constant 0 : index
      %c0_441 = arith.constant 0 : index
      %1005 = vector.load %arg3[%c3_439, %c0_440, %c0_441] : memref<8x8x128xf32, #tpu.memory_space<vmem>>, vector<1x8x128xf32>
      %1006 = vector.shape_cast %1005 : vector<1x8x128xf32> to vector<8x128xf32>
      %1007 = arith.mulf %1006, %1004 : vector<8x128xf32>
      %1008 = arith.addf %997, %1007 : vector<8x128xf32>
      %c3_442 = arith.constant 3 : index
      %c0_443 = arith.constant 0 : index
      %c0_444 = arith.constant 0 : index
      %1009 = vector.load %arg4[%c3_442, %c0_443, %c0_444] : memref<8x8x128xf32, #tpu.memory_space<vmem>>, vector<1x8x128xf32>
      %1010 = vector.shape_cast %1009 : vector<1x8x128xf32> to vector<8x128xf32>
      %1011 = arith.mulf %1010, %1004 : vector<8x128xf32>
      %1012 = arith.addf %1001, %1011 : vector<8x128xf32>
      %1013 = vector.extract_strided_slice %968 {offsets = [4, 0], sizes = [1, 128], strides = [1, 1]} : vector<8x128xf32> to vector<1x128xf32>
      %1014 = vector.shape_cast %1013 : vector<1x128xf32> to vector<1x128xf32>
      %1015 = vector.broadcast %1014 : vector<1x128xf32> to vector<8x128xf32>
      %c4_445 = arith.constant 4 : index
      %c0_446 = arith.constant 0 : index
      %c0_447 = arith.constant 0 : index
      %1016 = vector.load %arg3[%c4_445, %c0_446, %c0_447] : memref<8x8x128xf32, #tpu.memory_space<vmem>>, vector<1x8x128xf32>
      %1017 = vector.shape_cast %1016 : vector<1x8x128xf32> to vector<8x128xf32>
      %1018 = arith.mulf %1017, %1015 : vector<8x128xf32>
      %1019 = arith.addf %1008, %1018 : vector<8x128xf32>
      %c4_448 = arith.constant 4 : index
      %c0_449 = arith.constant 0 : index
      %c0_450 = arith.constant 0 : index
      %1020 = vector.load %arg4[%c4_448, %c0_449, %c0_450] : memref<8x8x128xf32, #tpu.memory_space<vmem>>, vector<1x8x128xf32>
      %1021 = vector.shape_cast %1020 : vector<1x8x128xf32> to vector<8x128xf32>
      %1022 = arith.mulf %1021, %1015 : vector<8x128xf32>
      %1023 = arith.addf %1012, %1022 : vector<8x128xf32>
      %1024 = vector.extract_strided_slice %968 {offsets = [5, 0], sizes = [1, 128], strides = [1, 1]} : vector<8x128xf32> to vector<1x128xf32>
      %1025 = vector.shape_cast %1024 : vector<1x128xf32> to vector<1x128xf32>
      %1026 = vector.broadcast %1025 : vector<1x128xf32> to vector<8x128xf32>
      %c5_451 = arith.constant 5 : index
      %c0_452 = arith.constant 0 : index
      %c0_453 = arith.constant 0 : index
      %1027 = vector.load %arg3[%c5_451, %c0_452, %c0_453] : memref<8x8x128xf32, #tpu.memory_space<vmem>>, vector<1x8x128xf32>
      %1028 = vector.shape_cast %1027 : vector<1x8x128xf32> to vector<8x128xf32>
      %1029 = arith.mulf %1028, %1026 : vector<8x128xf32>
      %1030 = arith.addf %1019, %1029 : vector<8x128xf32>
      %c5_454 = arith.constant 5 : index
      %c0_455 = arith.constant 0 : index
      %c0_456 = arith.constant 0 : index
      %1031 = vector.load %arg4[%c5_454, %c0_455, %c0_456] : memref<8x8x128xf32, #tpu.memory_space<vmem>>, vector<1x8x128xf32>
      %1032 = vector.shape_cast %1031 : vector<1x8x128xf32> to vector<8x128xf32>
      %1033 = arith.mulf %1032, %1026 : vector<8x128xf32>
      %1034 = arith.addf %1023, %1033 : vector<8x128xf32>
      %1035 = vector.extract_strided_slice %968 {offsets = [6, 0], sizes = [1, 128], strides = [1, 1]} : vector<8x128xf32> to vector<1x128xf32>
      %1036 = vector.shape_cast %1035 : vector<1x128xf32> to vector<1x128xf32>
      %1037 = vector.broadcast %1036 : vector<1x128xf32> to vector<8x128xf32>
      %c6_457 = arith.constant 6 : index
      %c0_458 = arith.constant 0 : index
      %c0_459 = arith.constant 0 : index
      %1038 = vector.load %arg3[%c6_457, %c0_458, %c0_459] : memref<8x8x128xf32, #tpu.memory_space<vmem>>, vector<1x8x128xf32>
      %1039 = vector.shape_cast %1038 : vector<1x8x128xf32> to vector<8x128xf32>
      %1040 = arith.mulf %1039, %1037 : vector<8x128xf32>
      %1041 = arith.addf %1030, %1040 : vector<8x128xf32>
      %c6_460 = arith.constant 6 : index
      %c0_461 = arith.constant 0 : index
      %c0_462 = arith.constant 0 : index
      %1042 = vector.load %arg4[%c6_460, %c0_461, %c0_462] : memref<8x8x128xf32, #tpu.memory_space<vmem>>, vector<1x8x128xf32>
      %1043 = vector.shape_cast %1042 : vector<1x8x128xf32> to vector<8x128xf32>
      %1044 = arith.mulf %1043, %1037 : vector<8x128xf32>
      %1045 = arith.addf %1034, %1044 : vector<8x128xf32>
      %1046 = vector.extract_strided_slice %968 {offsets = [7, 0], sizes = [1, 128], strides = [1, 1]} : vector<8x128xf32> to vector<1x128xf32>
      %1047 = vector.shape_cast %1046 : vector<1x128xf32> to vector<1x128xf32>
      %1048 = vector.broadcast %1047 : vector<1x128xf32> to vector<8x128xf32>
      %c7_463 = arith.constant 7 : index
      %c0_464 = arith.constant 0 : index
      %c0_465 = arith.constant 0 : index
      %1049 = vector.load %arg3[%c7_463, %c0_464, %c0_465] : memref<8x8x128xf32, #tpu.memory_space<vmem>>, vector<1x8x128xf32>
      %1050 = vector.shape_cast %1049 : vector<1x8x128xf32> to vector<8x128xf32>
      %1051 = arith.mulf %1050, %1048 : vector<8x128xf32>
      %1052 = arith.addf %1041, %1051 : vector<8x128xf32>
      %c7_466 = arith.constant 7 : index
      %c0_467 = arith.constant 0 : index
      %c0_468 = arith.constant 0 : index
      %1053 = vector.load %arg4[%c7_466, %c0_467, %c0_468] : memref<8x8x128xf32, #tpu.memory_space<vmem>>, vector<1x8x128xf32>
      %1054 = vector.shape_cast %1053 : vector<1x8x128xf32> to vector<8x128xf32>
      %1055 = arith.mulf %1054, %1048 : vector<8x128xf32>
      %1056 = arith.addf %1045, %1055 : vector<8x128xf32>
      %1057 = arith.addf %794, %1052 : vector<8x128xf32>
      %1058 = arith.addf %797, %1056 : vector<8x128xf32>
      %cst_469 = arith.constant 0.000000e+00 : f32
      %1059 = vector.broadcast %cst_469 : f32 to vector<8x128xf32>
      %1060 = arith.maximumf %1058, %1059 : vector<8x128xf32>
      scf.yield %966, %1057, %1060 : vector<8x128xf32>, vector<8x128xf32>, vector<8x128xf32>
    }
    %c0_7 = arith.constant 0 : index
    %c0_8 = arith.constant 0 : index
    %8 = vector.load %arg7[%c0_7, %c0_8] : memref<8x128xf32, #tpu.memory_space<vmem>>, vector<8x128xf32>
    tpu.vector_store %arg7[%c0_7, %c0_8], %7#0 {strides = array<i32>} : memref<8x128xf32, #tpu.memory_space<vmem>>, vector<8x128xf32>,
    return
  }
  func.func @transform_0(%arg0: i32) -> (i32, i32, i32) {
    %c0_i32 = arith.constant 0 : i32
    %c0_i32_0 = arith.constant 0 : i32
    %c0_i32_1 = arith.constant 0 : i32
    return %c0_i32, %c0_i32_0, %arg0 : i32, i32, i32
  }
  func.func @transform_1(%arg0: i32) -> (i32, i32) {
    %c0_i32 = arith.constant 0 : i32
    %c0_i32_0 = arith.constant 0 : i32
    return %c0_i32, %arg0 : i32, i32
  }
  func.func @transform_2(%arg0: i32) -> (i32, i32, i32) {
    %c0_i32 = arith.constant 0 : i32
    %c0_i32_0 = arith.constant 0 : i32
    %c0_i32_1 = arith.constant 0 : i32
    return %c0_i32, %c0_i32_0, %arg0 : i32, i32, i32
  }
  func.func @transform_3(%arg0: i32) -> (i32, i32, i32) {
    %c0_i32 = arith.constant 0 : i32
    %c0_i32_0 = arith.constant 0 : i32
    %c0_i32_1 = arith.constant 0 : i32
    return %c0_i32, %c0_i32_0, %arg0 : i32, i32, i32
  }
  func.func @transform_4(%arg0: i32) -> (i32, i32) {
    %c0_i32 = arith.constant 0 : i32
    %c0_i32_0 = arith.constant 0 : i32
    return %c0_i32, %arg0 : i32, i32
  }
  func.func @transform_5(%arg0: i32) -> (i32, i32) {
    %c0_i32 = arith.constant 0 : i32
    %c0_i32_0 = arith.constant 0 : i32
    return %c0_i32, %arg0 : i32, i32
  }
  func.func @transform_6(%arg0: i32) -> (i32, i32) {
    %c0_i32 = arith.constant 0 : i32
    %c0_i32_0 = arith.constant 0 : i32
    return %c0_i32, %arg0 : i32, i32
  }
}

</mosaic_0001>

<bundles_post_ra>
// kernel: qp_casadilayer_forward.1
= control target key start
LH: loop header
LB: loop body
LE: loop exit
PB: predicated region body
PF: predicated region fallthrough
CT: control target
= control target key end

     0   :  { %v1138_v3 = vmov 0.0   ;;  %v1140_v4 = vmov 0.0   ;;  %v1142_v5 = vmov 0.0   ;;  %s1144_s27 = smov 0   ;;  %s1822_s0 = inlined_call_operand.vmem [shape: f32[24,8,128], index: 0, kind: input, shape index: {}]   ;;  %s1823_s1 = inlined_call_operand.vmem [shape: f32[8,128], index: 1, kind: input, shape index: {}]   ;;  %s1824_s2 = inlined_call_operand.vmem [shape: f32[8,8,128], index: 2, kind: input, shape index: {}]   ;;  %s1825_s3 = inlined_call_operand.vmem [shape: f32[8,8,128], index: 3, kind: input, shape index: {}]   ;;  %s1826_s4 = inlined_call_operand.vmem [shape: f32[8,128], index: 4, kind: input, shape index: {}]   ;;  %s1827_s5 = inlined_call_operand.vmem [shape: f32[8,128], index: 5, kind: input, shape index: {}]   ;;  %s1828_s6 = inlined_call_operand.vmem [shape: f32[8,128], index: 6, kind: output, shape index: {}]  }
   0x1   :  { %v1126_v0 = vld [vmem:[%s1823_s1] sm:$0xff] }
   0x2   :  { %1868 = vst [vmem:[#allocation2_spill] sm:$0xff] %v1126_v0  ;;  %v1131_v1 = vld [vmem:[%s1826_s4] sm:$0xff] }
   0x3   :  { %1869 = vst [vmem:[#allocation3_spill] sm:$0xff] %v1131_v1  ;;  %v1136_v2 = vld [vmem:[%s1827_s5] sm:$0xff] }
   0x4   :  { %1870 = vst [vmem:[#allocation4_spill] sm:$0xff] %v1136_v2 }
   0x5 LB: > { %v36_v6 = vlaneseq  ;;  %v1169_v12 = vld [vmem:[%s1822_s0] sm:$0xff]  ;;  %v1174_v13 = vld [vmem:[%s1822_s0 + $0x8] sm:$0xff]  ;;  %v1187_v18 = vld [vmem:[%s1822_s0 + $0x10] sm:$0xff]  ;;  %s31_s27 = sadd.s32 1, %s1086_s27   ;;  %v1074_v3 = vphi %v1138_v3, %v967_v3   ;;  %s1086_s27 = sphi %s1144_s27, %s31_s27   ;;  %v1082_v5 = vphi %v1142_v5, %v1937_v5   ;;  %v1078_v4 = vphi %v1140_v4, %v965_v4  }
   0x6   : > { %1872 = vst [vmem:[#allocation5_spill] sm:$0xff] %v1169_v12  ;;  %1873 = vst [vmem:[#allocation6_spill] sm:$0xff] %v1174_v13  ;;  %v1198_v23 = vld [vmem:[%s1822_s0 + $0x18] sm:$0xff]  ;;  %v1209_v28 = vld [vmem:[%s1822_s0 + $0x20] sm:$0xff]  ;;  %p28_p0 = scmp.ge.s32.totalorder %s31_s27, 750  }
   0x7   : > { %v37_v7 = vshrl.u32 %v36_v6, 7  ;;  %1874 = vst [vmem:[#allocation7_spill] sm:$0xff] %v1187_v18  ;;  %1875 = vst [vmem:[#allocation8_spill] sm:$0xff] %v1198_v23  ;;  %v1219_v33 = vld [vmem:[%s1822_s0 + $0x28] sm:$0xff]  ;;  %v1227_v37 = vld [vmem:[%s1822_s0 + $0x30] sm:$0xff] }
   0x8   : > { %v1235_v41 = vld [vmem:[%s1822_s0 + $0x38] sm:$0xff]  ;;  %v1243_v45 = vld [vmem:[%s1822_s0 + $0x40] sm:$0xff]  ;;  %v1251_v49 = vld [vmem:[%s1822_s0 + $0x48] sm:$0xff] }
   0x9   : > { %v1871_v0 = vld [vmem:[#allocation2_spill] sm:$0xff]  ;;  %v1158_v8 = vsub.s32 0, %v37_v7  ;;  %v1160_v9 = vsub.s32 1, %v37_v7  ;;  %v1162_v10 = vsub.s32 2, %v37_v7  ;;  %v1164_v11 = vsub.s32 3, %v37_v7  ;;  %v1259_v53 = vld [vmem:[%s1822_s0 + $0x50] sm:$0xff] }
   0xa   : > { %v1182_v17 = vsub.s32 4, %v37_v7  ;;  %v1193_v22 = vsub.s32 5, %v37_v7  ;;  %v1204_v27 = vsub.s32 6, %v37_v7  ;;  %v1214_v32 = vsub.s32 7, %v37_v7  ;;  %v1267_v57 = vld [vmem:[%s1822_s0 + $0x58] sm:$0xff]  ;;  %v1275_v61 = vld [vmem:[%s1822_s0 + $0x60] sm:$0xff] }
   0xb   : > { %v39_v14 = vrot.slane %v1082_v5, %v1158_v8  ;;  %v47_v15 = vrot.slane %v1082_v5, %v1160_v9  ;;  %v55_v16 = vrot.slane %v1082_v5, %v1162_v10  ;;  %v63_v21 = vrot.slane %v1082_v5, %v1164_v11  ;;  %v1283_v7 = vld [vmem:[%s1822_s0 + $0x68] sm:$0xff]  ;;  %v1889_v1 = vld [vmem:[#allocation3_spill] sm:$0xff]  ;;  %v1890_v2 = vld [vmem:[#allocation4_spill] sm:$0xff] }
   0xc   : > { %v71_v26 = vrot.slane %v1082_v5, %v1182_v17  ;;  %v79_v31 = vrot.slane %v1082_v5, %v1193_v22  ;;  %v87_v36 = vrot.slane %v1082_v5, %v1204_v27  ;;  %v95_v40 = vrot.slane %v1082_v5, %v1214_v32 }
   0xd   : > { %v40_v19 = vmul.f32 %v39_v14, %v1169_v12  ;;  %v48_v20 = vmul.f32 %v1174_v13, %v47_v15  ;;  %v56_v25 = vmul.f32 %v1187_v18, %v55_v16  ;;  %v64_v30 = vmul.f32 %v1198_v23, %v63_v21 }
   0xe   : > { %v72_v35 = vmul.f32 %v1209_v28, %v71_v26  ;;  %v80_v39 = vmul.f32 %v1219_v33, %v79_v31  ;;  %v88_v43 = vmul.f32 %v1227_v37, %v87_v36  ;;  %v103_v44 = vrot.slane %v1078_v4, %v1158_v8  ;;  %v1307_v31 = vld [vmem:[%s1822_s0 + $0x80] sm:$0xff] }
   0xf   : > { %v41_v24 = vadd.f32 %v40_v19, %v1871_v0  ;;  %v96_v47 = vmul.f32 %v1235_v41, %v95_v40  ;;  %v111_v48 = vrot.slane %v1078_v4, %v1160_v9  ;;  %v119_v52 = vrot.slane %v1078_v4, %v1162_v10  ;;  %v1291_v19 = vld [vmem:[%s1822_s0 + $0x70] sm:$0xff] }
  0x10   : > { %v104_v51 = vmul.f32 %v1243_v45, %v103_v44  ;;  %v127_v56 = vrot.slane %v1078_v4, %v1164_v11  ;;  %v135_v60 = vrot.slane %v1078_v4, %v1182_v17  ;;  %v143_v6 = vrot.slane %v1078_v4, %v1193_v22 }
  0x11   : > { %v49_v29 = vadd.f32 %v48_v20, %v41_v24  ;;  %v112_v55 = vmul.f32 %v1251_v49, %v111_v48  ;;  %v120_v59 = vmul.f32 %v1259_v53, %v119_v52  ;;  %v151_v16 = vrot.slane %v1078_v4, %v1204_v27  ;;  %v1331_v48 = vld [vmem:[%s1822_s0 + $0x98] sm:$0xff] }
  0x12   : > { %v128_v63 = vmul.f32 %v1267_v57, %v127_v56  ;;  %v136_v15 = vmul.f32 %v1275_v61, %v135_v60  ;;  %v144_v21 = vmul.f32 %v1283_v7, %v143_v6  ;;  %v159_v24 = vrot.slane %v1078_v4, %v1214_v32  ;;  %1876 = vst [vmem:[#allocation9_spill] sm:$0xff] %v1331_v48  ;;  %v1355_v6 = vld [vmem:[%s1822_s0 + $0xb0] sm:$0xff] }
  0x13   : > { %v57_v34 = vadd.f32 %v56_v25, %v49_v29  ;;  %v1299_v25 = vld [vmem:[%s1822_s0 + $0x78] sm:$0xff]  ;;  %v152_v29 = vmul.f32 %v1291_v19, %v151_v16  ;;  %v175_v36 = vrot.slane %v1074_v3, %v1160_v9  ;;  %v199_v52 = vrot.slane %v1074_v3, %v1182_v17  ;;  %1879 = vst [vmem:[#allocation12_spill] sm:$0xff] %v1355_v6 }
  0x14   : > { %v223_v16 = vrot.slane %v1074_v3, %v1214_v32 }
  0x15   : > { %v65_v38 = vadd.f32 %v64_v30, %v57_v34  ;;  %v167_v30 = vrot.slane %v1074_v3, %v1158_v8 }
  0x17   : > { %v73_v42 = vadd.f32 %v72_v35, %v65_v38  ;;  %v160_v35 = vmul.f32 %v1299_v25, %v159_v24  ;;  %v1315_v38 = vld [vmem:[%s1822_s0 + $0x88] sm:$0xff]  ;;  %v168_v40 = vmul.f32 %v1307_v31, %v167_v30 }
  0x19   : > { %v81_v46 = vadd.f32 %v80_v39, %v73_v42  ;;  %v183_v42 = vrot.slane %v1074_v3, %v1162_v10 }
  0x1b   : > { %v89_v50 = vadd.f32 %v88_v43, %v81_v46  ;;  %v1323_v43 = vld [vmem:[%s1822_s0 + $0x90] sm:$0xff]  ;;  %v176_v46 = vmul.f32 %v1315_v38, %v175_v36 }
  0x1d   : > { %v97_v54 = vadd.f32 %v96_v47, %v89_v50  ;;  %v191_v47 = vrot.slane %v1074_v3, %v1164_v11 }
  0x1f   : > { %v105_v58 = vadd.f32 %v104_v51, %v97_v54  ;;  %v184_v51 = vmul.f32 %v1323_v43, %v183_v42  ;;  %v1339_v54 = vld [vmem:[%s1822_s0 + $0xa0] sm:$0xff]  ;;  %v192_v56 = vmul.f32 %v1331_v48, %v191_v47 }
  0x20   : > { %1877 = vst [vmem:[#allocation10_spill] sm:$0xff] %v1339_v54  ;;  %v1381_v42 = vld [vmem:[%s1825_s3] sm:$0xff] }
  0x21   : > { %v113_v62 = vadd.f32 %v112_v55, %v105_v58  ;;  %v207_v58 = vrot.slane %v1074_v3, %v1193_v22  ;;  %1882 = vst [vmem:[#allocation15_spill] sm:$0xff] %v1381_v42 }
  0x23   : > { %v121_v14 = vadd.f32 %v120_v59, %v113_v62  ;;  %v1347_v59 = vld [vmem:[%s1822_s0 + $0xa8] sm:$0xff]  ;;  %v200_v62 = vmul.f32 %v1339_v54, %v199_v52  ;;  %v1401_v52 = vld [vmem:[%s1824_s2 + $0x10] sm:$0xff] }
  0x24   : > { %1878 = vst [vmem:[#allocation11_spill] sm:$0xff] %v1347_v59  ;;  %1885 = vst [vmem:[#allocation18_spill] sm:$0xff] %v1401_v52 }
  0x25   : > { %v129_v20 = vadd.f32 %v128_v63, %v121_v14  ;;  %v215_v63 = vrot.slane %v1074_v3, %v1204_v27 }
  0x27   : > { %v137_v26 = vadd.f32 %v136_v15, %v129_v20  ;;  %v208_v15 = vmul.f32 %v1347_v59, %v207_v58  ;;  %v1363_v20 = vld [vmem:[%s1822_s0 + $0xb8] sm:$0xff]  ;;  %v216_v24 = vmul.f32 %v1355_v6, %v215_v63 }
  0x28   : > { %1880 = vst [vmem:[#allocation13_spill] sm:$0xff] %v1363_v20 }
  0x29   : > { %v145_v34 = vadd.f32 %v144_v21, %v137_v26 }
  0x2b   : > { %v153_v39 = vadd.f32 %v152_v29, %v145_v34  ;;  %v224_v29 = vmul.f32 %v1363_v20, %v223_v16  ;;  %v1423_v16 = vld [vmem:[%s1825_s3 + $0x18] sm:$0xff] }
  0x2c   : > { %1888 = vst [vmem:[#allocation21_spill] sm:$0xff] %v1423_v16 }
  0x2d   : > { %v161_v44 = vadd.f32 %v160_v35, %v153_v39 }
  0x2f   : > { %v169_v50 = vadd.f32 %v168_v40, %v161_v44  ;;  %v1376_v40 = vld [vmem:[%s1824_s2] sm:$0xff]  ;;  %v1386_v44 = vld [vmem:[%s1824_s2 + $0x8] sm:$0xff] }
  0x30   : > { %1881 = vst [vmem:[#allocation14_spill] sm:$0xff] %v1376_v40  ;;  %1883 = vst [vmem:[#allocation16_spill] sm:$0xff] %v1386_v44 }
  0x31   : > { %v177_v55 = vadd.f32 %v176_v46, %v169_v50 }
  0x33   : > { %v185_v60 = vadd.f32 %v184_v51, %v177_v55  ;;  %v1406_v55 = vld [vmem:[%s1825_s3 + $0x10] sm:$0xff] }
  0x34   : > { %1886 = vst [vmem:[#allocation19_spill] sm:$0xff] %v1406_v55 }
  0x35   : > { %v193_v14 = vadd.f32 %v192_v56, %v185_v60 }
  0x37   : > { %v201_v21 = vadd.f32 %v200_v62, %v193_v14 }
  0x39   : > { %v209_v26 = vadd.f32 %v208_v15, %v201_v21  ;;  %v1418_v15 = vld [vmem:[%s1824_s2 + $0x18] sm:$0xff] }
  0x3a   : > { %1887 = vst [vmem:[#allocation20_spill] sm:$0xff] %v1418_v15 }
  0x3b   : > { %v217_v30 = vadd.f32 %v216_v24, %v209_v26 }
  0x3d   : > { %v225_v34 = vadd.f32 %v224_v29, %v217_v30 }
  0x3f   : > { %v1368_v35 = vsub.f32 %v1082_v5, %v225_v34 }
  0x41   : > { %v227_v36 = vsub.f32 %v1368_v35, %v1082_v5  ;;  %v1391_v5 = vld [vmem:[%s1825_s3 + $0x8] sm:$0xff]  ;;  %v329_v46 = vrot.slane %v1368_v35, %v1158_v8  ;;  %v335_v58 = vrot.slane %v1368_v35, %v1160_v9  ;;  %v341_v26 = vrot.slane %v1368_v35, %v1162_v10 }
  0x42   : > { %1884 = vst [vmem:[#allocation17_spill] sm:$0xff] %v1391_v5 }
  0x43   : > { %v228_v39 = vadd.f32 %v227_v36, %v1368_v35  ;;  %v330_v24 = vmul.f32 %v329_v46, %v1169_v12  ;;  %v1441_v46 = vld [vmem:[%s1825_s3 + $0x20] sm:$0xff]  ;;  %v1457_v12 = vld [vmem:[%s1825_s3 + $0x28] sm:$0xff] }
  0x44   : > { %1892 = vst [vmem:[#allocation23_spill] sm:$0xff] %v1457_v12 }
  0x45   : > { %v232_v47 = vrot.slane %v228_v39, %v1158_v8  ;;  %v242_v50 = vrot.slane %v228_v39, %v1160_v9  ;;  %v254_v51 = vrot.slane %v228_v39, %v1162_v10  ;;  %v266_v56 = vrot.slane %v228_v39, %v1164_v11 }
  0x46   : > { %v278_v21 = vrot.slane %v228_v39, %v1182_v17 }
  0x47   : > { %v234_v60 = vmul.f32 %v1376_v40, %v232_v47  ;;  %v237_v62 = vmul.f32 %v1381_v42, %v232_v47  ;;  %v245_v63 = vmul.f32 %v1386_v44, %v242_v50  ;;  %v249_v14 = vmul.f32 %v1391_v5, %v242_v50  ;;  %v1436_v47 = vld [vmem:[%s1824_s2 + $0x20] sm:$0xff] }
  0x48   : > { %v257_v34 = vmul.f32 %v1401_v52, %v254_v51  ;;  %v261_v36 = vmul.f32 %v1406_v55, %v254_v51  ;;  %v290_v50 = vrot.slane %v228_v39, %v1193_v22  ;;  %v269_v51 = vmul.f32 %v1418_v15, %v266_v56  ;;  %v1469_v15 = vld [vmem:[%s1824_s2 + $0x30] sm:$0xff] }
  0x49   : > { %v235_v29 = vadd.f32 %v234_v60, %v1889_v1  ;;  %v238_v30 = vadd.f32 %v237_v62, %v1890_v2  ;;  %v336_v60 = vmul.f32 %v1174_v13, %v335_v58  ;;  %v347_v62 = vrot.slane %v1368_v35, %v1164_v11  ;;  %v1452_v1 = vld [vmem:[%s1824_s2 + $0x28] sm:$0xff] }
  0x4a   : > { %v273_v55 = vmul.f32 %v1423_v16, %v266_v56  ;;  %1891 = vst [vmem:[#allocation22_spill] sm:$0xff] %v1452_v1  ;;  %v302_v58 = vrot.slane %v228_v39, %v1204_v27  ;;  %v331_v13 = vadd.f32 %v330_v24, %v1871_v0  ;;  %v285_v16 = vmul.f32 %v1441_v46, %v278_v21 }
  0x4b   : > { %v246_v52 = vadd.f32 %v245_v63, %v235_v29  ;;  %v250_v2 = vadd.f32 %v249_v14, %v238_v30  ;;  %v342_v63 = vmul.f32 %v1187_v18, %v341_v26  ;;  %v353_v14 = vrot.slane %v1368_v35, %v1182_v17 }
  0x4c   : > { %v281_v30 = vmul.f32 %v1436_v47, %v278_v21  ;;  %v314_v5 = vrot.slane %v228_v39, %v1214_v32  ;;  %v337_v44 = vadd.f32 %v336_v60, %v331_v13  ;;  %v348_v24 = vmul.f32 %v1198_v23, %v347_v62  ;;  %v1480_v21 = vld [vmem:[%s1825_s3 + $0x30] sm:$0xff]  ;;  %v1485_v13 = vld [vmem:[%s1824_s2 + $0x38] sm:$0xff] }
  0x4d   : > { %v258_v56 = vadd.f32 %v257_v34, %v246_v52  ;;  %v262_v29 = vadd.f32 %v261_v36, %v250_v2  ;;  %v359_v26 = vrot.slane %v1368_v35, %v1193_v22  ;;  %v293_v2 = vmul.f32 %v1452_v1, %v290_v50 }
  0x4e   : > { %v297_v34 = vmul.f32 %v1457_v12, %v290_v50  ;;  %v343_v39 = vadd.f32 %v342_v63, %v337_v44  ;;  %v354_v36 = vmul.f32 %v1209_v28, %v353_v14  ;;  %v305_v50 = vmul.f32 %v1469_v15, %v302_v58  ;;  %v1497_v44 = vld [vmem:[%s1825_s3 + $0x38] sm:$0xff] }
  0x4f   : > { %v270_v18 = vadd.f32 %v269_v51, %v258_v56  ;;  %v274_v52 = vadd.f32 %v273_v55, %v262_v29  ;;  %v365_v55 = vrot.slane %v1368_v35, %v1204_v27  ;;  %v309_v51 = vmul.f32 %v1480_v21, %v302_v58 }
  0x50   : > { %v349_v56 = vadd.f32 %v348_v24, %v343_v39  ;;  %v360_v29 = vmul.f32 %v1219_v33, %v359_v26  ;;  %v317_v23 = vmul.f32 %v1485_v13, %v314_v5 }
  0x51   : > { %v282_v60 = vadd.f32 %v281_v30, %v270_v18  ;;  %v286_v62 = vadd.f32 %v285_v16, %v274_v52  ;;  %v371_v18 = vrot.slane %v1368_v35, %v1214_v32  ;;  %v366_v63 = vmul.f32 %v1227_v37, %v365_v55 }
  0x52   : > { %v355_v16 = vadd.f32 %v354_v36, %v349_v56  ;;  %v321_v30 = vmul.f32 %v1497_v44, %v314_v5 }
  0x53   : > { %v294_v12 = vadd.f32 %v293_v2, %v282_v60  ;;  %v298_v1 = vadd.f32 %v297_v34, %v286_v62  ;;  %v372_v52 = vmul.f32 %v1235_v41, %v371_v18 }
  0x54   : > { %v361_v24 = vadd.f32 %v360_v29, %v355_v16 }
  0x55   : > { %v306_v14 = vadd.f32 %v305_v50, %v294_v12  ;;  %v310_v58 = vadd.f32 %v309_v51, %v298_v1 }
  0x56   : > { %v367_v2 = vadd.f32 %v366_v63, %v361_v24 }
  0x57   : > { %v318_v26 = vadd.f32 %v317_v23, %v306_v14  ;;  %v322_v39 = vadd.f32 %v321_v30, %v310_v58 }
  0x58   : > { %v373_v60 = vadd.f32 %v372_v52, %v367_v2 }
  0x59   : > { %v1505_v34 = vadd.f32 %v1078_v4, %v318_v26  ;;  %v324_v4 = vadd.f32 %v1074_v3, %v322_v39 }
  0x5b   : > { %v377_v62 = vrot.slane %v1505_v34, %v1158_v8  ;;  %v383_v36 = vrot.slane %v1505_v34, %v1160_v9  ;;  %v389_v1 = vrot.slane %v1505_v34, %v1162_v10  ;;  %v395_v5 = vrot.slane %v1505_v34, %v1164_v11 }
  0x5c   : > { %v401_v51 = vrot.slane %v1505_v34, %v1182_v17  ;;  %v407_v18 = vrot.slane %v1505_v34, %v1193_v22  ;;  %v1524_v16 = vmax.f32 %v324_v4, 0.0  ;;  %v413_v3 = vrot.slane %v1505_v34, %v1204_v27 }
  0x5d   : > { %v378_v12 = vmul.f32 %v1243_v45, %v377_v62  ;;  %v384_v23 = vmul.f32 %v1251_v49, %v383_v36  ;;  %v390_v50 = vmul.f32 %v1259_v53, %v389_v1  ;;  %v396_v29 = vmul.f32 %v1267_v57, %v395_v5 }
  0x5e   : > { %v402_v14 = vmul.f32 %v1275_v61, %v401_v51  ;;  %v408_v30 = vmul.f32 %v1283_v7, %v407_v18  ;;  %v419_v24 = vrot.slane %v1505_v34, %v1214_v32  ;;  %v414_v52 = vmul.f32 %v1291_v19, %v413_v3 }
  0x5f   : > { %v379_v55 = vadd.f32 %v378_v12, %v373_v60  ;;  %v425_v2 = vrot.slane %v1524_v16, %v1158_v8  ;;  %v431_v62 = vrot.slane %v1524_v16, %v1160_v9  ;;  %v437_v12 = vrot.slane %v1524_v16, %v1162_v10 }
  0x60   : > { %v420_v60 = vmul.f32 %v1299_v25, %v419_v24  ;;  %v443_v4 = vrot.slane %v1524_v16, %v1164_v11  ;;  %v449_v51 = vrot.slane %v1524_v16, %v1182_v17  ;;  %v455_v18 = vrot.slane %v1524_v16, %v1193_v22 }
  0x61   : > { %v385_v56 = vadd.f32 %v384_v23, %v379_v55  ;;  %v426_v1 = vmul.f32 %v1307_v31, %v425_v2  ;;  %v432_v5 = vmul.f32 %v1315_v38, %v431_v62  ;;  %v461_v3 = vrot.slane %v1524_v16, %v1204_v27 }
  0x62   : > { %v467_v24 = vrot.slane %v1524_v16, %v1214_v32 }
  0x63   : > { %v391_v63 = vadd.f32 %v390_v50, %v385_v56  ;;  %v438_v50 = vmul.f32 %v1323_v43, %v437_v12 }
  0x65   : > { %v397_v58 = vadd.f32 %v396_v29, %v391_v63  ;;  %v444_v29 = vmul.f32 %v1331_v48, %v443_v4 }
  0x67   : > { %v403_v26 = vadd.f32 %v402_v14, %v397_v58  ;;  %v450_v14 = vmul.f32 %v1339_v54, %v449_v51 }
  0x69   : > { %v409_v39 = vadd.f32 %v408_v30, %v403_v26  ;;  %v456_v30 = vmul.f32 %v1347_v59, %v455_v18 }
  0x6b   : > { %v415_v36 = vadd.f32 %v414_v52, %v409_v39  ;;  %v462_v52 = vmul.f32 %v1355_v6, %v461_v3  ;;  %v468_v39 = vmul.f32 %v1363_v20, %v467_v24  ;;  %v1902_v6 = vld [vmem:[#allocation21_spill] sm:$0xff] }
  0x6d   : > { %v421_v23 = vadd.f32 %v420_v60, %v415_v36 }
  0x6f   : > { %v427_v55 = vadd.f32 %v426_v1, %v421_v23 }
  0x71   : > { %v433_v56 = vadd.f32 %v432_v5, %v427_v55 }
  0x73   : > { %v439_v63 = vadd.f32 %v438_v50, %v433_v56 }
  0x75   : > { %v445_v58 = vadd.f32 %v444_v29, %v439_v63  ;;  %v1893_v29 = vld [vmem:[#allocation16_spill] sm:$0xff]  ;;  %v1894_v63 = vld [vmem:[#allocation17_spill] sm:$0xff] }
  0x77   : > { %v451_v26 = vadd.f32 %v450_v14, %v445_v58  ;;  %v1895_v58 = vld [vmem:[#allocation5_spill] sm:$0xff] }
  0x79   : > { %v457_v2 = vadd.f32 %v456_v30, %v451_v26  ;;  %v1896_v26 = vld [vmem:[#allocation3_spill] sm:$0xff] }
  0x7b   : > { %v463_v60 = vadd.f32 %v462_v52, %v457_v2  ;;  %v1897_v2 = vld [vmem:[#allocation4_spill] sm:$0xff] }
  0x7d   : > { %v469_v62 = vadd.f32 %v468_v39, %v463_v60  ;;  %v1898_v60 = vld [vmem:[#allocation18_spill] sm:$0xff] }
  0x7f   : > { %v1559_v36 = vsub.f32 %v1368_v35, %v469_v62 }
  0x81   : > { %v471_v1 = vsub.f32 %v1559_v36, %v1368_v35  ;;  %v543_v23 = vrot.slane %v1559_v36, %v1158_v8  ;;  %v549_v51 = vrot.slane %v1559_v36, %v1160_v9  ;;  %v555_v24 = vrot.slane %v1559_v36, %v1162_v10 }
  0x83   : > { %v472_v12 = vadd.f32 %v471_v1, %v1559_v36  ;;  %v544_v30 = vmul.f32 %v543_v23, %v1895_v58  ;;  %v1899_v1 = vld [vmem:[#allocation19_spill] sm:$0xff]  ;;  %v1901_v58 = vld [vmem:[#allocation20_spill] sm:$0xff] }
  0x85   : > { %v476_v5 = vrot.slane %v472_v12, %v1158_v8  ;;  %v484_v4 = vrot.slane %v472_v12, %v1160_v9  ;;  %v492_v55 = vrot.slane %v472_v12, %v1162_v10  ;;  %v500_v50 = vrot.slane %v472_v12, %v1164_v11 }
  0x86   : > { %v508_v3 = vrot.slane %v472_v12, %v1182_v17 }
  0x87   : > { %v477_v56 = vmul.f32 %v476_v5, %v1376_v40  ;;  %v479_v35 = vmul.f32 %v476_v5, %v1381_v42  ;;  %v485_v18 = vmul.f32 %v1893_v29, %v484_v4  ;;  %v487_v14 = vmul.f32 %v1894_v63, %v484_v4  ;;  %v1900_v29 = vld [vmem:[#allocation6_spill] sm:$0xff] }
  0x88   : > { %v493_v62 = vmul.f32 %v1898_v60, %v492_v55  ;;  %v495_v40 = vmul.f32 %v1899_v1, %v492_v55  ;;  %v516_v5 = vrot.slane %v472_v12, %v1193_v22  ;;  %v550_v42 = vmul.f32 %v1900_v29, %v549_v51  ;;  %v1903_v60 = vld [vmem:[#allocation7_spill] sm:$0xff] }
  0x89   : > { %v478_v52 = vadd.f32 %v477_v56, %v1896_v26  ;;  %v480_v39 = vadd.f32 %v479_v35, %v1897_v2  ;;  %v561_v4 = vrot.slane %v1559_v36, %v1164_v11  ;;  %v501_v20 = vmul.f32 %v1901_v58, %v500_v50  ;;  %v1906_v58 = vld [vmem:[#allocation23_spill] sm:$0xff] }
  0x8a   : > { %v503_v59 = vmul.f32 %v1902_v6, %v500_v50  ;;  %v524_v56 = vrot.slane %v472_v12, %v1204_v27  ;;  %v545_v35 = vadd.f32 %v544_v30, %v1871_v0  ;;  %v556_v2 = vmul.f32 %v1903_v60, %v555_v24  ;;  %v1905_v24 = vld [vmem:[#allocation22_spill] sm:$0xff] }
  0x8b   : > { %v486_v63 = vadd.f32 %v485_v18, %v478_v52  ;;  %v488_v23 = vadd.f32 %v487_v14, %v480_v39  ;;  %v567_v55 = vrot.slane %v1559_v36, %v1182_v17  ;;  %v509_v29 = vmul.f32 %v1436_v47, %v508_v3  ;;  %v1904_v39 = vld [vmem:[#allocation8_spill] sm:$0xff] }
  0x8c   : > { %v511_v18 = vmul.f32 %v1441_v46, %v508_v3  ;;  %v532_v14 = vrot.slane %v472_v12, %v1214_v32  ;;  %v551_v52 = vadd.f32 %v550_v42, %v545_v35  ;;  %v562_v50 = vmul.f32 %v1904_v39, %v561_v4 }
  0x8d   : > { %v494_v1 = vadd.f32 %v493_v62, %v486_v63  ;;  %v496_v51 = vadd.f32 %v495_v40, %v488_v23  ;;  %v573_v6 = vrot.slane %v1559_v36, %v1193_v22  ;;  %v517_v60 = vmul.f32 %v1905_v24, %v516_v5 }
  0x8e   : > { %v519_v26 = vmul.f32 %v1906_v58, %v516_v5  ;;  %v557_v63 = vadd.f32 %v556_v2, %v551_v52  ;;  %v568_v40 = vmul.f32 %v1209_v28, %v567_v55  ;;  %v579_v3 = vrot.slane %v1559_v36, %v1204_v27 }
  0x8f   : > { %v502_v30 = vadd.f32 %v501_v20, %v494_v1  ;;  %v504_v0 = vadd.f32 %v503_v59, %v496_v51  ;;  %v525_v42 = vmul.f32 %v1469_v15, %v524_v56  ;;  %v527_v4 = vmul.f32 %v1480_v21, %v524_v56 }
  0x90   : > { %v563_v23 = vadd.f32 %v562_v50, %v557_v63  ;;  %v574_v20 = vmul.f32 %v1219_v33, %v573_v6  ;;  %v533_v35 = vmul.f32 %v1485_v13, %v532_v14  ;;  %v585_v2 = vrot.slane %v1559_v36, %v1214_v32 }
  0x91   : > { %v510_v62 = vadd.f32 %v509_v29, %v502_v30  ;;  %v512_v12 = vadd.f32 %v511_v18, %v504_v0  ;;  %v580_v55 = vmul.f32 %v1227_v37, %v579_v3  ;;  %v535_v0 = vmul.f32 %v1497_v44, %v532_v14 }
  0x92   : > { %v569_v5 = vadd.f32 %v568_v40, %v563_v23  ;;  %v586_v56 = vmul.f32 %v1235_v41, %v585_v2 }
  0x93   : > { %v518_v59 = vadd.f32 %v517_v60, %v510_v62  ;;  %v520_v1 = vadd.f32 %v519_v26, %v512_v12 }
  0x94   : > { %v575_v18 = vadd.f32 %v574_v20, %v569_v5 }
  0x95   : > { %v526_v51 = vadd.f32 %v525_v42, %v518_v59  ;;  %v528_v29 = vadd.f32 %v527_v4, %v520_v1 }
  0x96   : > { %v581_v50 = vadd.f32 %v580_v55, %v575_v18 }
  0x97   : > { %v534_v52 = vadd.f32 %v533_v35, %v526_v51  ;;  %v536_v26 = vadd.f32 %v535_v0, %v528_v29 }
  0x98   : > { %v587_v60 = vadd.f32 %v586_v56, %v581_v50 }
  0x99   : > { %v1616_v6 = vadd.f32 %v534_v52, %v1505_v34  ;;  %v538_v34 = vadd.f32 %v536_v26, %v1524_v16 }
  0x9b   : > { %v591_v30 = vrot.slane %v1616_v6, %v1158_v8  ;;  %v597_v63 = vrot.slane %v1616_v6, %v1160_v9  ;;  %v603_v40 = vrot.slane %v1616_v6, %v1162_v10  ;;  %v609_v62 = vrot.slane %v1616_v6, %v1164_v11 }
  0x9c   : > { %v615_v4 = vrot.slane %v1616_v6, %v1182_v17  ;;  %v621_v59 = vrot.slane %v1616_v6, %v1193_v22  ;;  %v1635_v1 = vmax.f32 %v538_v34, 0.0  ;;  %v627_v16 = vrot.slane %v1616_v6, %v1204_v27 }
  0x9d   : > { %v592_v14 = vmul.f32 %v1243_v45, %v591_v30  ;;  %v598_v3 = vmul.f32 %v1251_v49, %v597_v63  ;;  %v604_v42 = vmul.f32 %v1259_v53, %v603_v40  ;;  %v610_v20 = vmul.f32 %v1267_v57, %v609_v62 }
  0x9e   : > { %v616_v2 = vmul.f32 %v1275_v61, %v615_v4  ;;  %v622_v55 = vmul.f32 %v1283_v7, %v621_v59  ;;  %v633_v51 = vrot.slane %v1616_v6, %v1214_v32  ;;  %v628_v0 = vmul.f32 %v1291_v19, %v627_v16 }
  0x9f   : > { %v593_v12 = vadd.f32 %v592_v14, %v587_v60  ;;  %v639_v18 = vrot.slane %v1635_v1, %v1158_v8  ;;  %v645_v50 = vrot.slane %v1635_v1, %v1160_v9  ;;  %v651_v30 = vrot.slane %v1635_v1, %v1162_v10 }
  0xa0   : > { %v634_v56 = vmul.f32 %v1299_v25, %v633_v51  ;;  %v657_v14 = vrot.slane %v1635_v1, %v1164_v11  ;;  %v663_v34 = vrot.slane %v1635_v1, %v1182_v17  ;;  %v669_v4 = vrot.slane %v1635_v1, %v1193_v22  ;;  %v1908_v51 = vld [vmem:[#allocation12_spill] sm:$0xff] }
  0xa1   : > { %v599_v23 = vadd.f32 %v598_v3, %v593_v12  ;;  %v640_v60 = vmul.f32 %v1307_v31, %v639_v18  ;;  %v646_v40 = vmul.f32 %v1315_v38, %v645_v50  ;;  %v652_v62 = vmul.f32 %v1323_v43, %v651_v30  ;;  %v1909_v18 = vld [vmem:[#allocation13_spill] sm:$0xff] }
  0xa2   : > { %v675_v59 = vrot.slane %v1635_v1, %v1204_v27 }
  0xa3   : > { %v605_v35 = vadd.f32 %v604_v42, %v599_v23  ;;  %v658_v42 = vmul.f32 %v1331_v48, %v657_v14 }
  0xa5   : > { %v611_v5 = vadd.f32 %v610_v20, %v605_v35  ;;  %v664_v20 = vmul.f32 %v1339_v54, %v663_v34  ;;  %v1921_v54 = vld [vmem:[#allocation21_spill] sm:$0xff] }
  0xa7   : > { %v617_v29 = vadd.f32 %v616_v2, %v611_v5  ;;  %v1907_v2 = vld [vmem:[#allocation11_spill] sm:$0xff]  ;;  %v681_v5 = vrot.slane %v1635_v1, %v1214_v32 }
  0xa8   : > { %v670_v16 = vmul.f32 %v1907_v2, %v669_v4  ;;  %v1911_v4 = vld [vmem:[#allocation15_spill] sm:$0xff] }
  0xa9   : > { %v623_v52 = vadd.f32 %v622_v55, %v617_v29  ;;  %v676_v29 = vmul.f32 %v1908_v51, %v675_v59  ;;  %v1913_v59 = vld [vmem:[#allocation17_spill] sm:$0xff] }
  0xab   : > { %v629_v26 = vadd.f32 %v628_v0, %v623_v52  ;;  %v682_v52 = vmul.f32 %v1909_v18, %v681_v5  ;;  %v1914_v5 = vld [vmem:[#allocation5_spill] sm:$0xff] }
  0xad   : > { %v635_v63 = vadd.f32 %v634_v56, %v629_v26 }
  0xaf   : > { %v641_v3 = vadd.f32 %v640_v60, %v635_v63 }
  0xb1   : > { %v647_v12 = vadd.f32 %v646_v40, %v641_v3 }
  0xb3   : > { %v653_v23 = vadd.f32 %v652_v62, %v647_v12  ;;  %v1910_v12 = vld [vmem:[#allocation14_spill] sm:$0xff] }
  0xb5   : > { %v659_v35 = vadd.f32 %v658_v42, %v653_v23  ;;  %v1912_v23 = vld [vmem:[#allocation16_spill] sm:$0xff] }
  0xb7   : > { %v665_v55 = vadd.f32 %v664_v20, %v659_v35 }
  0xb9   : > { %v671_v0 = vadd.f32 %v670_v16, %v665_v55 }
  0xbb   : > { %v677_v56 = vadd.f32 %v676_v29, %v671_v0  ;;  %v1915_v0 = vld [vmem:[#allocation3_spill] sm:$0xff] }
  0xbd   : > { %v683_v50 = vadd.f32 %v682_v52, %v677_v56  ;;  %v1916_v56 = vld [vmem:[#allocation4_spill] sm:$0xff] }
  0xbf   : > { %v1670_v26 = vsub.f32 %v1559_v36, %v683_v50 }
  0xc1   : > { %v685_v60 = vsub.f32 %v1670_v26, %v1559_v36  ;;  %v757_v63 = vrot.slane %v1670_v26, %v1158_v8  ;;  %v763_v34 = vrot.slane %v1670_v26, %v1160_v9  ;;  %v769_v29 = vrot.slane %v1670_v26, %v1162_v10 }
  0xc3   : > { %v686_v30 = vadd.f32 %v685_v60, %v1670_v26  ;;  %v758_v55 = vmul.f32 %v757_v63, %v1914_v5  ;;  %v1917_v60 = vld [vmem:[#allocation18_spill] sm:$0xff]  ;;  %v1920_v5 = vld [vmem:[#allocation20_spill] sm:$0xff] }
  0xc5   : > { %v690_v40 = vrot.slane %v686_v30, %v1158_v8  ;;  %v698_v14 = vrot.slane %v686_v30, %v1160_v9  ;;  %v706_v3 = vrot.slane %v686_v30, %v1162_v10  ;;  %v714_v62 = vrot.slane %v686_v30, %v1164_v11 }
  0xc6   : > { %v722_v16 = vrot.slane %v686_v30, %v1182_v17 }
  0xc7   : > { %v691_v42 = vmul.f32 %v690_v40, %v1910_v12  ;;  %v693_v36 = vmul.f32 %v690_v40, %v1911_v4  ;;  %v699_v20 = vmul.f32 %v1912_v23, %v698_v14  ;;  %v701_v35 = vmul.f32 %v1913_v59, %v698_v14  ;;  %v1918_v12 = vld [vmem:[#allocation19_spill] sm:$0xff]  ;;  %v1919_v23 = vld [vmem:[#allocation6_spill] sm:$0xff] }
  0xc8   : > { %v707_v18 = vmul.f32 %v1917_v60, %v706_v3  ;;  %v709_v51 = vmul.f32 %v1918_v12, %v706_v3  ;;  %v730_v40 = vrot.slane %v686_v30, %v1193_v22  ;;  %v764_v4 = vmul.f32 %v1919_v23, %v763_v34  ;;  %v1923_v60 = vld [vmem:[#allocation7_spill] sm:$0xff] }
  0xc9   : > { %v692_v52 = vadd.f32 %v691_v42, %v1915_v0  ;;  %v694_v50 = vadd.f32 %v693_v36, %v1916_v56  ;;  %v775_v14 = vrot.slane %v1670_v26, %v1164_v11  ;;  %v715_v2 = vmul.f32 %v1920_v5, %v714_v62  ;;  %v1922_v36 = vld [vmem:[#allocation2_spill] sm:$0xff] }
  0xca   : > { %v717_v48 = vmul.f32 %v1921_v54, %v714_v62  ;;  %v738_v42 = vrot.slane %v686_v30, %v1204_v27  ;;  %v759_v56 = vadd.f32 %v758_v55, %v1922_v36  ;;  %v770_v0 = vmul.f32 %v1923_v60, %v769_v29 }
  0xcb   : > { %v700_v59 = vadd.f32 %v699_v20, %v692_v52  ;;  %v702_v63 = vadd.f32 %v701_v35, %v694_v50  ;;  %v781_v3 = vrot.slane %v1670_v26, %v1182_v17  ;;  %v723_v23 = vmul.f32 %v1436_v47, %v722_v16 }
  0xcc   : > { %v725_v20 = vmul.f32 %v1441_v46, %v722_v16  ;;  %v746_v35 = vrot.slane %v686_v30, %v1214_v32  ;;  %v765_v52 = vadd.f32 %v764_v4, %v759_v56  ;;  %v776_v62 = vmul.f32 %v1904_v39, %v775_v14 }
  0xcd   : > { %v708_v12 = vadd.f32 %v707_v18, %v700_v59  ;;  %v710_v34 = vadd.f32 %v709_v51, %v702_v63  ;;  %v787_v50 = vrot.slane %v1670_v26, %v1193_v22  ;;  %v731_v29 = vmul.f32 %v1905_v24, %v730_v40 }
  0xce   : > { %v733_v60 = vmul.f32 %v1906_v58, %v730_v40  ;;  %v771_v18 = vadd.f32 %v770_v0, %v765_v52  ;;  %v782_v51 = vmul.f32 %v1209_v28, %v781_v3  ;;  %v793_v59 = vrot.slane %v1670_v26, %v1204_v27 }
  0xcf   : > { %v716_v55 = vadd.f32 %v715_v2, %v708_v12  ;;  %v718_v36 = vadd.f32 %v717_v48, %v710_v34  ;;  %v739_v4 = vmul.f32 %v1469_v15, %v738_v42  ;;  %v741_v39 = vmul.f32 %v1480_v21, %v738_v42 }
  0xd0   : > { %v747_v56 = vmul.f32 %v1485_v13, %v746_v35  ;;  %v777_v2 = vadd.f32 %v776_v62, %v771_v18  ;;  %v788_v48 = vmul.f32 %v1219_v33, %v787_v50  ;;  %v749_v0 = vmul.f32 %v1497_v44, %v746_v35 }
  0xd1   : > { %v724_v16 = vadd.f32 %v723_v23, %v716_v55  ;;  %v726_v30 = vadd.f32 %v725_v20, %v718_v36  ;;  %v799_v28 = vrot.slane %v1670_v26, %v1214_v32  ;;  %v794_v63 = vmul.f32 %v1227_v37, %v793_v59 }
  0xd2   : > { %v783_v40 = vadd.f32 %v782_v51, %v777_v2 }
  0xd3   : > { %v732_v12 = vadd.f32 %v731_v29, %v724_v16  ;;  %v734_v14 = vadd.f32 %v733_v60, %v726_v30  ;;  %v800_v52 = vmul.f32 %v1235_v41, %v799_v28 }
  0xd4   : > { %v789_v23 = vadd.f32 %v788_v48, %v783_v40 }
  0xd5   : > { %v740_v3 = vadd.f32 %v739_v4, %v732_v12  ;;  %v742_v34 = vadd.f32 %v741_v39, %v734_v14 }
  0xd6   : > { %v795_v62 = vadd.f32 %v794_v63, %v789_v23 }
  0xd7   : > { %v748_v20 = vadd.f32 %v747_v56, %v740_v3  ;;  %v750_v42 = vadd.f32 %v749_v0, %v742_v34 }
  0xd8   : > { %v801_v35 = vadd.f32 %v800_v52, %v795_v62  ;;  %v1925_v62 = vld [vmem:[#allocation10_spill] sm:$0xff] }
  0xd9   : > { %v1727_v33 = vadd.f32 %v748_v20, %v1616_v6  ;;  %v752_v50 = vadd.f32 %v750_v42, %v1635_v1  ;;  %v1924_v20 = vld [vmem:[#allocation9_spill] sm:$0xff] }
  0xdb   : > { %v805_v55 = vrot.slane %v1727_v33, %v1158_v8  ;;  %v811_v37 = vrot.slane %v1727_v33, %v1160_v9  ;;  %v817_v36 = vrot.slane %v1727_v33, %v1162_v10  ;;  %v823_v6 = vrot.slane %v1727_v33, %v1164_v11 }
  0xdc   : > { %v829_v18 = vrot.slane %v1727_v33, %v1182_v17  ;;  %v835_v16 = vrot.slane %v1727_v33, %v1193_v22  ;;  %v1746_v30 = vmax.f32 %v752_v50, 0.0  ;;  %v841_v4 = vrot.slane %v1727_v33, %v1204_v27 }
  0xdd   : > { %v806_v29 = vmul.f32 %v1243_v45, %v805_v55  ;;  %v812_v41 = vmul.f32 %v1251_v49, %v811_v37  ;;  %v818_v1 = vmul.f32 %v1259_v53, %v817_v36  ;;  %v824_v59 = vmul.f32 %v1267_v57, %v823_v6  ;;  %v1926_v55 = vld [vmem:[#allocation11_spill] sm:$0xff] }
  0xde   : > { %v830_v49 = vmul.f32 %v1275_v61, %v829_v18  ;;  %v836_v53 = vmul.f32 %v1283_v7, %v835_v16  ;;  %v847_v56 = vrot.slane %v1727_v33, %v1214_v32  ;;  %v842_v57 = vmul.f32 %v1291_v19, %v841_v4 }
  0xdf   : > { %v807_v60 = vadd.f32 %v806_v29, %v801_v35  ;;  %v853_v48 = vrot.slane %v1746_v30, %v1158_v8  ;;  %v859_v61 = vrot.slane %v1746_v30, %v1160_v9  ;;  %v865_v7 = vrot.slane %v1746_v30, %v1162_v10  ;;  %v1927_v29 = vld [vmem:[#allocation12_spill] sm:$0xff] }
  0xe0   : > { %v848_v14 = vmul.f32 %v1299_v25, %v847_v56  ;;  %v871_v19 = vrot.slane %v1746_v30, %v1164_v11  ;;  %v877_v25 = vrot.slane %v1746_v30, %v1182_v17  ;;  %v1929_v56 = vld [vmem:[#allocation14_spill] sm:$0xff] }
  0xe1   : > { %v813_v51 = vadd.f32 %v812_v41, %v807_v60  ;;  %v854_v28 = vmul.f32 %v1307_v31, %v853_v48  ;;  %v860_v63 = vmul.f32 %v1315_v38, %v859_v61  ;;  %v866_v34 = vmul.f32 %v1323_v43, %v865_v7  ;;  %v1928_v60 = vld [vmem:[#allocation13_spill] sm:$0xff] }
  0xe2   : > { %v872_v42 = vmul.f32 %v1924_v20, %v871_v19  ;;  %v883_v31 = vrot.slane %v1746_v30, %v1193_v22  ;;  %v878_v50 = vmul.f32 %v1925_v62, %v877_v25  ;;  %v889_v38 = vrot.slane %v1746_v30, %v1204_v27  ;;  %v1932_v61 = vld [vmem:[#allocation17_spill] sm:$0xff]  ;;  %v1936_v19 = vld [vmem:[#allocation19_spill] sm:$0xff] }
  0xe3   : > { %v819_v45 = vadd.f32 %v818_v1, %v813_v51  ;;  %v895_v43 = vrot.slane %v1746_v30, %v1214_v32 }
  0xe4   : > { %v884_v37 = vmul.f32 %v1926_v55, %v883_v31  ;;  %v890_v41 = vmul.f32 %v1927_v29, %v889_v38 }
  0xe5   : > { %v825_v39 = vadd.f32 %v824_v59, %v819_v45  ;;  %v896_v1 = vmul.f32 %v1928_v60, %v895_v43 }
  0xe7   : > { %v831_v2 = vadd.f32 %v830_v49, %v825_v39 }
  0xe9   : > { %v837_v12 = vadd.f32 %v836_v53, %v831_v2 }
  0xeb   : > { %v843_v0 = vadd.f32 %v842_v57, %v837_v12  ;;  %v1930_v57 = vld [vmem:[#allocation15_spill] sm:$0xff]  ;;  %v1931_v12 = vld [vmem:[#allocation16_spill] sm:$0xff] }
  0xed   : > { %v849_v40 = vadd.f32 %v848_v14, %v843_v0 }
  0xef   : > { %v855_v3 = vadd.f32 %v854_v28, %v849_v40  ;;  %v1934_v40 = vld [vmem:[#allocation4_spill] sm:$0xff] }
  0xf1   : > { %v861_v23 = vadd.f32 %v860_v63, %v855_v3  ;;  %v1935_v63 = vld [vmem:[#allocation18_spill] sm:$0xff] }
  0xf3   : > { %v867_v52 = vadd.f32 %v866_v34, %v861_v23 }
  0xf5   : > { %v873_v35 = vadd.f32 %v872_v42, %v867_v52 }
  0xf7   : > { %v879_v36 = vadd.f32 %v878_v50, %v873_v35 }
  0xf9   : > { %v885_v6 = vadd.f32 %v884_v37, %v879_v36 }
  0xfb   : > { %v891_v18 = vadd.f32 %v890_v41, %v885_v6 }
  0xfd   : > { %v897_v51 = vadd.f32 %v896_v1, %v891_v18 }
  0xff   : > { %v898_v59 = vsub.f32 %v1670_v26, %v897_v51  }
 0x101   : > { %v899_v16 = vsub.f32 %v898_v59, %v1670_v26  ;;  %v1933_v26 = vld [vmem:[#allocation3_spill] sm:$0xff]  ;;  %968 = vst [vmem:[%s1828_s6] sm:$0xff] (%p28_p0), %v898_v59 }
 0x103   : > { %v900_v45 = vadd.f32 %v899_v16, %v898_v59 }
 0x105   : > { %v904_v49 = vrot.slane %v900_v45, %v1158_v8  ;;  %v912_v4 = vrot.slane %v900_v45, %v1160_v9  ;;  %v920_v39 = vrot.slane %v900_v45, %v1162_v10  ;;  %v928_v53 = vrot.slane %v900_v45, %v1164_v11 }
 0x106   : > { %v936_v28 = vrot.slane %v900_v45, %v1182_v17  ;;  %v944_v11 = vrot.slane %v900_v45, %v1193_v22  ;;  %v952_v20 = vrot.slane %v900_v45, %v1204_v27  ;;  %v960_v62 = vrot.slane %v900_v45, %v1214_v32 }
 0x107   : > { %v905_v2 = vmul.f32 %v904_v49, %v1929_v56  ;;  %v907_v48 = vmul.f32 %v904_v49, %v1930_v57  ;;  %v913_v14 = vmul.f32 %v1931_v12, %v912_v4  ;;  %v915_v0 = vmul.f32 %v1932_v61, %v912_v4 }
 0x108   : > { %v921_v9 = vmul.f32 %v1935_v63, %v920_v39  ;;  %v923_v10 = vmul.f32 %v1936_v19, %v920_v39  ;;  %v929_v25 = vmul.f32 %v1920_v5, %v928_v53  ;;  %v931_v23 = vmul.f32 %v1921_v54, %v928_v53 }
 0x109   : > { %v906_v7 = vadd.f32 %v905_v2, %v1933_v26  ;;  %v908_v8 = vadd.f32 %v907_v48, %v1934_v40  ;;  %v937_v31 = vmul.f32 %v1436_v47, %v936_v28  ;;  %v939_v52 = vmul.f32 %v1441_v46, %v936_v28 }
 0x10a   : > { %v945_v22 = vmul.f32 %v1905_v24, %v944_v11  ;;  %v947_v35 = vmul.f32 %v1906_v58, %v944_v11  ;;  %v953_v54 = vmul.f32 %v1469_v15, %v952_v20  ;;  %v955_v27 = vmul.f32 %v1480_v21, %v952_v20 }
 0x10b   : > { %v914_v3 = vadd.f32 %v913_v14, %v906_v7  ;;  %v916_v34 = vadd.f32 %v915_v0, %v908_v8  ;;  %v961_v47 = vmul.f32 %v1485_v13, %v960_v62  ;;  %v963_v46 = vmul.f32 %v1497_v44, %v960_v62 }
 0x10d   : > { %v922_v42 = vadd.f32 %v921_v9, %v914_v3  ;;  %v924_v17 = vadd.f32 %v923_v10, %v916_v34 }
 0x10f   : > { %v930_v50 = vadd.f32 %v929_v25, %v922_v42  ;;  %v932_v38 = vadd.f32 %v931_v23, %v924_v17 }
 0x111   : > { %v938_v55 = vadd.f32 %v937_v31, %v930_v50  ;;  %v940_v5 = vadd.f32 %v939_v52, %v932_v38 }
 0x113   : > { %v946_v37 = vadd.f32 %v945_v22, %v938_v55  ;;  %v948_v43 = vadd.f32 %v947_v35, %v940_v5  ;;  %v1937_v5 = vmov %v898_v59 }
 0x115   : > { %v954_v36 = vadd.f32 %v953_v54, %v946_v37  ;;  %v956_v32 = vadd.f32 %v955_v27, %v948_v43  ;;  %30 = sbr.rel (!%p28_p0) target bundleno = 5 (0x5), region = 88 }
 0x117   : > { %v962_v29 = vadd.f32 %v961_v47, %v954_v36  ;;  %v964_v41 = vadd.f32 %v963_v46, %v956_v32 }
 0x119   : > { %v965_v4 = vadd.f32 %v962_v29, %v1727_v33   ;;  %v966_v58 = vadd.f32 %v964_v41, %v1746_v30 }
 0x11b   : > { %v967_v3 = vmax.f32 %v966_v58, 0.0  }

</bundles_post_ra>
